<compile_context>
chip_gen: v7x
topology: tpu7x:2x2x1
jax: 0.10.0
libtpu: 0.0.40
codegen_flags: <defaults>
</compile_context>

<pallas_src>
import math

import jax
import jax.numpy as jnp
from jax.experimental import pallas as pl
from jax.experimental.pallas import tpu as pltpu

# ----------------------------- configuration --------------------------------
BATCH = 2
CHANNELS = 4
IMG = 16
PATCH = 8
HIDDEN = 32
NUM_LAYERS = 2
NUM_HEADS = 4
HEAD_DIM = HIDDEN // NUM_HEADS
INTERMEDIATE = 64
GRID_P = IMG // PATCH
NUM_PATCHES = GRID_P * GRID_P            # 4
SEQ = NUM_PATCHES + 1                    # 5 (CLS + patches)
NUM_CLASSES = 3
CPP = CHANNELS * PATCH * PATCH           # 256 (flattened patch length)
PAD_CLASSES = 128                        # lane-dense padded logits width
OUT_SUBLANES = 8                         # sublane-dense padded logits height
LN_EPS = 1e-12                           # ViTConfig.layer_norm_eps default


# ------------------------------ kernel helpers -------------------------------
def _layernorm(x, g, b, eps=LN_EPS):
    mu = jnp.mean(x, axis=-1, keepdims=True)
    var = jnp.mean((x - mu) ** 2, axis=-1, keepdims=True)
    return (x - mu) * jax.lax.rsqrt(var + eps) * g + b


def _gelu_exact(x):
    # HF ViT hidden_act="gelu" (exact, erf-based)
    return 0.5 * x * (1.0 + jax.lax.erf(x * (1.0 / math.sqrt(2.0))))


# ------------------------------ fused Pallas kernel --------------------------
def vit_fused_kernel(patches_ref,    # (B*NP, CPP)  f32  flattened patches
                     embadd_ref,     # (SEQ, HIDDEN) f32 [cls+pos0 ; patch_b+pos]
                     patchw_ref,     # (CPP, HIDDEN)          bf16
                     wqkv_ref,       # (L, HIDDEN, 3*HIDDEN)  bf16 (q pre-scaled)
                     bqkv_ref,       # (L, 1, 3*HIDDEN)       f32  (q pre-scaled)
                     wo_ref,         # (L, HIDDEN, HIDDEN)    bf16
                     w1_ref,         # (L, HIDDEN, INTERMEDIATE) bf16
                     b1_ref,         # (L, 1, INTERMEDIATE)   f32
                     w2_ref,         # (L, INTERMEDIATE, HIDDEN) bf16
                     lnvec_ref,      # (L, 8, HIDDEN) f32 [ln1_g,ln1_b,ln2_g,ln2_b,bo,b2,0,0]
                     finln_ref,      # (2, HIDDEN) f32 [gamma, beta]
                     headw_ref,      # (HIDDEN, PAD_CLASSES)  bf16
                     headb_ref,      # (1, PAD_CLASSES)       f32
                     out_ref):       # (8, PAD_CLASSES)       f32
    # ---- patch embedding for the whole batch: one MXU push ----
    proj = jnp.dot(patches_ref[...].astype(jnp.bfloat16), patchw_ref[...],
                   preferred_element_type=jnp.float32)          # (B*NP, H) f32
    emb = embadd_ref[...]                                       # (SEQ, H)
    zero_row = jnp.zeros((1, HIDDEN), jnp.float32)
    img_blocks = []
    for bi in range(BATCH):                                     # static unroll
        rows = proj[bi * NUM_PATCHES:(bi + 1) * NUM_PATCHES]    # (NP, H)
        # row 0 of emb is cls+pos0; rows 1.. are patch_b+pos -> reproduces the
        # CLS/patch concat + position-embedding add with a cheap sublane pad.
        img_blocks.append(jnp.concatenate([zero_row, rows], axis=0) + emb)
    x = jnp.concatenate(img_blocks, axis=0)                     # (B*SEQ, H) f32

    # ---- transformer encoder, statically unrolled over layers ----
    for l in range(NUM_LAYERS):
        vecs = lnvec_ref[l]                                     # (8, HIDDEN)
        ln1_g, ln1_b = vecs[0:1], vecs[1:2]
        ln2_g, ln2_b = vecs[2:3], vecs[3:4]
        bo, b2 = vecs[4:5], vecs[5:6]

        # -- self-attention block (pre-LN); packed QKV matmul for full batch --
        h = _layernorm(x, ln1_g, ln1_b)
        qkv = (jnp.dot(h.astype(jnp.bfloat16), wqkv_ref[l],
                       preferred_element_type=jnp.float32)
               + bqkv_ref[l])                                   # (B*SEQ, 3H) f32

        # per-image, per-head attention (static loops; no in-kernel transpose)
        ctx_blocks = []
        for bi in range(BATCH):
            r0 = bi * SEQ
            head_ctx = []
            for hd in range(NUM_HEADS):
                lo = hd * HEAD_DIM
                hi = lo + HEAD_DIM
                qh = qkv[r0:r0 + SEQ, lo:hi].astype(jnp.bfloat16)
                kh = qkv[r0:r0 + SEQ, HIDDEN + lo:HIDDEN + hi].astype(jnp.bfloat16)
                vh = qkv[r0:r0 + SEQ,
                         2 * HIDDEN + lo:2 * HIDDEN + hi].astype(jnp.bfloat16)
                # scale already folded into Wq/bq at init
                s = jax.lax.dot_general(
                    qh, kh, (((1,), (1,)), ((), ())),
                    preferred_element_type=jnp.float32)         # (SEQ, SEQ) f32
                s = s - jnp.max(s, axis=-1, keepdims=True)
                p = jnp.exp(s)
                p = p * pl.reciprocal(jnp.sum(p, axis=-1, keepdims=True),
                                      approx=True)              # EUP, not VALU
                head_ctx.append(jnp.dot(p.astype(jnp.bfloat16), vh,
                                        preferred_element_type=jnp.float32))
            ctx_blocks.append(jnp.concatenate(head_ctx, axis=-1))  # (SEQ, H)
        ctx = jnp.concatenate(ctx_blocks, axis=0)               # (B*SEQ, H)

        # single Wo matmul per layer for the whole batch
        x = x + jnp.dot(ctx.astype(jnp.bfloat16), wo_ref[l],
                        preferred_element_type=jnp.float32) + bo

        # -- MLP block (pre-LN) --
        h2 = _layernorm(x, ln2_g, ln2_b)
        m = (jnp.dot(h2.astype(jnp.bfloat16), w1_ref[l],
                     preferred_element_type=jnp.float32)
             + b1_ref[l])
        m = _gelu_exact(m)
        x = x + jnp.dot(m.astype(jnp.bfloat16), w2_ref[l],
                        preferred_element_type=jnp.float32) + b2

    # ---- final LN on the CLS rows only + classification head ----
    fin = finln_ref[...]
    cls_rows = jnp.concatenate(
        [x[bi * SEQ:bi * SEQ + 1, :] for bi in range(BATCH)], axis=0)  # (B, H)
    cls = _layernorm(cls_rows, fin[0:1], fin[1:2])
    logits = (jnp.dot(cls.astype(jnp.bfloat16), headw_ref[...],
                      preferred_element_type=jnp.float32)
              + headb_ref[...])                                 # (B, PAD)
    # Lane/sublane-dense (8, 128) tile store; wrapper slices [:B, :NUM_CLASSES].
    out_ref[...] = jnp.concatenate(
        [logits, jnp.zeros((OUT_SUBLANES - BATCH, PAD_CLASSES), jnp.float32)],
        axis=0)


# ------------------------------ pallas wrapper --------------------------------
def _const_spec(shape):
    zero = (0,) * len(shape)
    return pl.BlockSpec(shape, lambda i, _z=zero: _z)


def vit_forward(params, pixel_values):
    b = pixel_values.shape[0]
    assert b == BATCH, "kernel is specialized (statically unrolled) for BATCH"

    # Patch extraction (Conv2d kernel=stride=PATCH == unfold); plain-JAX glue.
    x = pixel_values.reshape(b, CHANNELS, GRID_P, PATCH, GRID_P, PATCH)
    x = x.transpose(0, 2, 4, 1, 3, 5)                           # (B,gh,gw,C,P,P)
    patches = x.reshape(b * NUM_PATCHES, CPP)                   # (B*NP, CPP)

    in_specs = [
        _const_spec((b * NUM_PATCHES, CPP)),                    # patches
        _const_spec((SEQ, HIDDEN)),                             # embed_add
        _const_spec((CPP, HIDDEN)),                             # patch_w
        _const_spec((NUM_LAYERS, HIDDEN, 3 * HIDDEN)),          # wqkv
        _const_spec((NUM_LAYERS, 1, 3 * HIDDEN)),               # bqkv
        _const_spec((NUM_LAYERS, HIDDEN, HIDDEN)),              # wo
        _const_spec((NUM_LAYERS, HIDDEN, INTERMEDIATE)),        # w1
        _const_spec((NUM_LAYERS, 1, INTERMEDIATE)),             # b1
        _const_spec((NUM_LAYERS, INTERMEDIATE, HIDDEN)),        # w2
        _const_spec((NUM_LAYERS, 8, HIDDEN)),                   # ln/bias slab
        _const_spec((2, HIDDEN)),                               # final LN
        _const_spec((HIDDEN, PAD_CLASSES)),                     # head_w (padded)
        _const_spec((1, PAD_CLASSES)),                          # head_b (padded)
    ]

    out = pl.pallas_call(
        vit_fused_kernel,
        out_shape=jax.ShapeDtypeStruct((OUT_SUBLANES, PAD_CLASSES), jnp.float32),
        grid=(1,),                                              # single step
        in_specs=in_specs,
        out_specs=pl.BlockSpec((OUT_SUBLANES, PAD_CLASSES), lambda i: (0, 0)),
        compiler_params=pltpu.CompilerParams(
            dimension_semantics=("arbitrary",)),
    )(patches, params["embed_add"], params["patch_w2d"],
      params["wqkv"], params["bqkv"], params["wo"],
      params["w1"], params["b1"], params["w2"],
      params["lnvec"], params["finln"],
      params["head_w_pad"], params["head_b_pad"])

    return out[:b, :NUM_CLASSES]                                # (B, NUM_CLASSES)


# ------------------------------ parameter init -------------------------------
def init_params(key):
    def nrm(k, shape, scale=0.02):
        return (scale * jax.random.normal(k, shape)).astype(jnp.float32)

    attn_scale = 1.0 / math.sqrt(HEAD_DIM)
    keys = iter(jax.random.split(key, 4 + 6 * NUM_LAYERS))
    zeros_h = jnp.zeros((HIDDEN,), jnp.float32)
    ones_h = jnp.ones((HIDDEN,), jnp.float32)

    patch_w = nrm(next(keys), (HIDDEN, CHANNELS, PATCH, PATCH))
    patch_b = jnp.zeros((HIDDEN,), jnp.float32)
    cls = nrm(next(keys), (1, 1, HIDDEN))
    pos = nrm(next(keys), (1, SEQ, HIDDEN))

    wqkv_l, bqkv_l, wo_l, w1_l, b1_l, w2_l, lnvec_l = [], [], [], [], [], [], []
    for _ in range(NUM_LAYERS):
        wq = nrm(next(keys), (HIDDEN, HIDDEN))
        wk = nrm(next(keys), (HIDDEN, HIDDEN))
        wv = nrm(next(keys), (HIDDEN, HIDDEN))
        wo = nrm(next(keys), (HIDDEN, HIDDEN))
        w1 = nrm(next(keys), (HIDDEN, INTERMEDIATE))
        w2 = nrm(next(keys), (INTERMEDIATE, HIDDEN))
        bq = bk = bv = bo = b2 = zeros_h
        b1 = jnp.zeros((INTERMEDIATE,), jnp.float32)
        ln1_g = ln2_g = ones_h
        ln1_b = ln2_b = zeros_h

        # 1/sqrt(HEAD_DIM) attention scale folded into Wq / bq at init.
        wqkv_l.append(jnp.concatenate([wq * attn_scale, wk, wv], axis=1))
        bqkv_l.append(jnp.concatenate([bq * attn_scale, bk, bv])[None, :])
        wo_l.append(wo)
        w1_l.append(w1)
        b1_l.append(b1[None, :])                                   # (1, I)
        w2_l.append(w2)
        lnvec_l.append(jnp.stack([ln1_g, ln1_b, ln2_g, ln2_b, bo, b2,
                                  zeros_h, zeros_h], axis=0))      # (8, H)

    head_w = nrm(next(keys), (HIDDEN, NUM_CLASSES))
    head_b = jnp.zeros((NUM_CLASSES,), jnp.float32)

    # Fused-kernel packed layout (packing + bf16 cast done once at init).
    embed_add = jnp.concatenate(
        [cls[0] + pos[0, 0:1], patch_b[None, :] + pos[0, 1:]], axis=0)  # (SEQ, H)

    return {
        "patch_w2d": patch_w.reshape(HIDDEN, -1).T.astype(jnp.bfloat16),
        "embed_add": embed_add,                                    # f32
        "wqkv": jnp.stack(wqkv_l).astype(jnp.bfloat16),            # (L, H, 3H)
        "bqkv": jnp.stack(bqkv_l),                                 # (L, 1, 3H) f32
        "wo": jnp.stack(wo_l).astype(jnp.bfloat16),                # (L, H, H)
        "w1": jnp.stack(w1_l).astype(jnp.bfloat16),                # (L, H, I)
        "b1": jnp.stack(b1_l),                                     # (L, 1, I) f32
        "w2": jnp.stack(w2_l).astype(jnp.bfloat16),                # (L, I, H)
        "lnvec": jnp.stack(lnvec_l),                               # (L, 8, H) f32
        "finln": jnp.stack([ones_h, zeros_h], axis=0),             # (2, H) f32
        "head_w_pad": jnp.pad(
            head_w, ((0, 0), (0, PAD_CLASSES - NUM_CLASSES))
        ).astype(jnp.bfloat16),
        "head_b_pad": jnp.pad(head_b,
                              (0, PAD_CLASSES - NUM_CLASSES))[None, :],
    }


# ---------------------------------- main --------------------------------------
if __name__ == "__main__":
    key = jax.random.PRNGKey(0)
    pkey, xkey = jax.random.split(key)
    params = init_params(pkey)
    pixel_values = jax.random.normal(
        xkey, (BATCH, CHANNELS, IMG, IMG), dtype=jnp.float32)

    logits = jax.jit(vit_forward)(params, pixel_values)
    logits = jax.block_until_ready(logits)
    assert logits.shape == (BATCH, NUM_CLASSES)
    assert bool(jnp.all(jnp.isfinite(logits)))
    print("KERNEL_OK")
</pallas_src>

<mosaic_0001>
module attributes {stable_mosaic.version = 11 : i64} {
  func.func @vit_fused_kernel(%arg0: i32, %arg1: memref<8x256xf32, #tpu.memory_space<vmem>>, %arg2: memref<5x32xf32, #tpu.memory_space<vmem>>, %arg3: memref<256x32xbf16, #tpu.memory_space<vmem>>, %arg4: memref<2x32x96xbf16, #tpu.memory_space<vmem>>, %arg5: memref<2x1x96xf32, #tpu.memory_space<vmem>>, %arg6: memref<2x32x32xbf16, #tpu.memory_space<vmem>>, %arg7: memref<2x32x64xbf16, #tpu.memory_space<vmem>>, %arg8: memref<2x1x64xf32, #tpu.memory_space<vmem>>, %arg9: memref<2x64x32xbf16, #tpu.memory_space<vmem>>, %arg10: memref<2x8x32xf32, #tpu.memory_space<vmem>>, %arg11: memref<2x32xf32, #tpu.memory_space<vmem>>, %arg12: memref<32x128xbf16, #tpu.memory_space<vmem>>, %arg13: memref<1x128xf32, #tpu.memory_space<vmem>>, %arg14: memref<8x128xf32, #tpu.memory_space<vmem>>) attributes {dimension_semantics = [#tpu.dimension_semantics<arbitrary>], iteration_bounds = array<i64: 1>, scalar_prefetch = 0 : i64, scratch_operands = 0 : i64, tpu.core_type = #tpu.core_type<tc>, window_params = [{pipeline_mode = #tpu.pipeline_mode<synchronous>, transform_indices = @transform_0, window_bounds = array<i64: 8, 256>}, {pipeline_mode = #tpu.pipeline_mode<synchronous>, transform_indices = @transform_1, window_bounds = array<i64: 5, 32>}, {pipeline_mode = #tpu.pipeline_mode<synchronous>, transform_indices = @transform_2, window_bounds = array<i64: 256, 32>}, {pipeline_mode = #tpu.pipeline_mode<synchronous>, transform_indices = @transform_3, window_bounds = array<i64: 2, 32, 96>}, {pipeline_mode = #tpu.pipeline_mode<synchronous>, transform_indices = @transform_4, window_bounds = array<i64: 2, 1, 96>}, {pipeline_mode = #tpu.pipeline_mode<synchronous>, transform_indices = @transform_5, window_bounds = array<i64: 2, 32, 32>}, {pipeline_mode = #tpu.pipeline_mode<synchronous>, transform_indices = @transform_6, window_bounds = array<i64: 2, 32, 64>}, {pipeline_mode = #tpu.pipeline_mode<synchronous>, transform_indices = @transform_7, window_bounds = array<i64: 2, 1, 64>}, {pipeline_mode = #tpu.pipeline_mode<synchronous>, transform_indices = @transform_8, window_bounds = array<i64: 2, 64, 32>}, {pipeline_mode = #tpu.pipeline_mode<synchronous>, transform_indices = @transform_9, window_bounds = array<i64: 2, 8, 32>}, {pipeline_mode = #tpu.pipeline_mode<synchronous>, transform_indices = @transform_10, window_bounds = array<i64: 2, 32>}, {pipeline_mode = #tpu.pipeline_mode<synchronous>, transform_indices = @transform_11, window_bounds = array<i64: 32, 128>}, {pipeline_mode = #tpu.pipeline_mode<synchronous>, transform_indices = @transform_12, window_bounds = array<i64: 1, 128>}, {pipeline_mode = #tpu.pipeline_mode<synchronous>, transform_indices = @transform_13, window_bounds = array<i64: 8, 128>}]} {
    %c0 = arith.constant 0 : index
    %c0_0 = arith.constant 0 : index
    %0 = vector.load %arg1[%c0, %c0_0] : memref<8x256xf32, #tpu.memory_space<vmem>>, vector<8x256xf32>
    %1 = arith.truncf %0 : vector<8x256xf32> to vector<8x256xbf16>
    %c0_1 = arith.constant 0 : index
    %c0_2 = arith.constant 0 : index
    %2 = vector.load %arg3[%c0_1, %c0_2] : memref<256x32xbf16, #tpu.memory_space<vmem>>, vector<256x32xbf16>
    %cst = arith.constant dense<0.000000e+00> : vector<8x32xf32>
    %3 = tpu.matmul %1, %2, %cst {dimension_numbers = #tpu.dot_dimension_numbers<[1], [0], [0], [1], [0, 0, 1, 1], [], []>} : vector<8x256xbf16>, vector<256x32xbf16>, vector<8x32xf32> -> vector<8x32xf32>
    %c0_3 = arith.constant 0 : index
    %c0_4 = arith.constant 0 : index
    %4 = vector.load %arg2[%c0_3, %c0_4] : memref<5x32xf32, #tpu.memory_space<vmem>>, vector<5x32xf32>
    %cst_5 = arith.constant 0.000000e+00 : f32
    %5 = vector.broadcast %cst_5 : f32 to vector<1x32xf32>
    %6 = vector.extract_strided_slice %3 {offsets = [0, 0], sizes = [4, 32], strides = [1, 1]} : vector<8x32xf32> to vector<4x32xf32>
    %7 = tpu.concatenate %5, %6 in 0 : vector<1x32xf32>, vector<4x32xf32> -> vector<5x32xf32>
    %8 = arith.addf %7, %4 : vector<5x32xf32>
    %9 = vector.extract_strided_slice %3 {offsets = [4, 0], sizes = [4, 32], strides = [1, 1]} : vector<8x32xf32> to vector<4x32xf32>
    %10 = tpu.concatenate %5, %9 in 0 : vector<1x32xf32>, vector<4x32xf32> -> vector<5x32xf32>
    %11 = arith.addf %10, %4 : vector<5x32xf32>
    %12 = tpu.concatenate %8, %11 in 0 : vector<5x32xf32>, vector<5x32xf32> -> vector<10x32xf32>
    %c0_6 = arith.constant 0 : index
    %c0_7 = arith.constant 0 : index
    %c0_8 = arith.constant 0 : index
    %13 = vector.load %arg10[%c0_6, %c0_7, %c0_8] : memref<2x8x32xf32, #tpu.memory_space<vmem>>, vector<1x8x32xf32>
    %14 = vector.shape_cast %13 : vector<1x8x32xf32> to vector<8x32xf32>
    %15 = vector.extract_strided_slice %14 {offsets = [0, 0], sizes = [1, 32], strides = [1, 1]} : vector<8x32xf32> to vector<1x32xf32>
    %16 = vector.extract_strided_slice %14 {offsets = [1, 0], sizes = [1, 32], strides = [1, 1]} : vector<8x32xf32> to vector<1x32xf32>
    %17 = vector.extract_strided_slice %14 {offsets = [2, 0], sizes = [1, 32], strides = [1, 1]} : vector<8x32xf32> to vector<1x32xf32>
    %18 = vector.extract_strided_slice %14 {offsets = [3, 0], sizes = [1, 32], strides = [1, 1]} : vector<8x32xf32> to vector<1x32xf32>
    %19 = vector.extract_strided_slice %14 {offsets = [4, 0], sizes = [1, 32], strides = [1, 1]} : vector<8x32xf32> to vector<1x32xf32>
    %20 = vector.extract_strided_slice %14 {offsets = [5, 0], sizes = [1, 32], strides = [1, 1]} : vector<8x32xf32> to vector<1x32xf32>
    %cst_9 = arith.constant dense<0.000000e+00> : vector<10xf32>
    %21 = vector.multi_reduction <add>, %12, %cst_9 [1] : vector<10x32xf32> to vector<10xf32>
    %22 = vector.shape_cast %21 : vector<10xf32> to vector<10x1xf32>
    %cst_10 = arith.constant 3.200000e+01 : f32
    %23 = vector.broadcast %cst_10 : f32 to vector<10x1xf32>
    %24 = arith.divf %22, %23 : vector<10x1xf32>
    %25 = vector.broadcast %24 : vector<10x1xf32> to vector<10x32xf32>
    %26 = arith.subf %12, %25 : vector<10x32xf32>
    %27 = arith.mulf %26, %26 : vector<10x32xf32>
    %cst_11 = arith.constant dense<0.000000e+00> : vector<10xf32>
    %28 = vector.multi_reduction <add>, %27, %cst_11 [1] : vector<10x32xf32> to vector<10xf32>
    %29 = vector.shape_cast %28 : vector<10xf32> to vector<10x1xf32>
    %cst_12 = arith.constant 3.200000e+01 : f32
    %30 = vector.broadcast %cst_12 : f32 to vector<10x1xf32>
    %31 = arith.divf %29, %30 : vector<10x1xf32>
    %32 = vector.broadcast %24 : vector<10x1xf32> to vector<10x32xf32>
    %33 = arith.subf %12, %32 : vector<10x32xf32>
    %cst_13 = arith.constant 9.99999996E-13 : f32
    %34 = vector.broadcast %cst_13 : f32 to vector<10x1xf32>
    %35 = arith.addf %31, %34 : vector<10x1xf32>
    %36 = math.rsqrt %35 : vector<10x1xf32>
    %37 = vector.broadcast %36 : vector<10x1xf32> to vector<10x32xf32>
    %38 = arith.mulf %33, %37 : vector<10x32xf32>
    %39 = vector.broadcast %15 : vector<1x32xf32> to vector<10x32xf32>
    %40 = arith.mulf %38, %39 : vector<10x32xf32>
    %41 = vector.broadcast %16 : vector<1x32xf32> to vector<10x32xf32>
    %42 = arith.addf %40, %41 : vector<10x32xf32>
    %43 = arith.truncf %42 : vector<10x32xf32> to vector<10x32xbf16>
    %c0_14 = arith.constant 0 : index
    %c0_15 = arith.constant 0 : index
    %c0_16 = arith.constant 0 : index
    %44 = vector.load %arg4[%c0_14, %c0_15, %c0_16] : memref<2x32x96xbf16, #tpu.memory_space<vmem>>, vector<1x32x96xbf16>
    %45 = vector.shape_cast %44 : vector<1x32x96xbf16> to vector<32x96xbf16>
    %cst_17 = arith.constant dense<0.000000e+00> : vector<10x96xf32>
    %46 = tpu.matmul %43, %45, %cst_17 {dimension_numbers = #tpu.dot_dimension_numbers<[1], [0], [0], [1], [0, 0, 1, 1], [], []>} : vector<10x32xbf16>, vector<32x96xbf16>, vector<10x96xf32> -> vector<10x96xf32>
    %c0_18 = arith.constant 0 : index
    %c0_19 = arith.constant 0 : index
    %c0_20 = arith.constant 0 : index
    %47 = vector.load %arg5[%c0_18, %c0_19, %c0_20] : memref<2x1x96xf32, #tpu.memory_space<vmem>>, vector<1x1x96xf32>
    %48 = vector.shape_cast %47 : vector<1x1x96xf32> to vector<1x96xf32>
    %49 = vector.broadcast %48 : vector<1x96xf32> to vector<10x96xf32>
    %50 = arith.addf %46, %49 : vector<10x96xf32>
    %51 = vector.extract_strided_slice %50 {offsets = [0, 0], sizes = [5, 8], strides = [1, 1]} : vector<10x96xf32> to vector<5x8xf32>
    %52 = arith.truncf %51 : vector<5x8xf32> to vector<5x8xbf16>
    %53 = vector.extract_strided_slice %50 {offsets = [0, 32], sizes = [5, 8], strides = [1, 1]} : vector<10x96xf32> to vector<5x8xf32>
    %54 = arith.truncf %53 : vector<5x8xf32> to vector<5x8xbf16>
    %55 = vector.extract_strided_slice %50 {offsets = [0, 64], sizes = [5, 8], strides = [1, 1]} : vector<10x96xf32> to vector<5x8xf32>
    %56 = arith.truncf %55 : vector<5x8xf32> to vector<5x8xbf16>
    %cst_21 = arith.constant dense<0.000000e+00> : vector<5x5xf32>
    %57 = tpu.matmul %52, %54, %cst_21 {dimension_numbers = #tpu.dot_dimension_numbers<[1], [1], [0], [0], [0, 0, 1, 0], [], []>} : vector<5x8xbf16>, vector<5x8xbf16>, vector<5x5xf32> -> vector<5x5xf32>
    %cst_22 = arith.constant dense<0xFF800000> : vector<5xf32>
    %58 = vector.multi_reduction <maximumf>, %57, %cst_22 [1] : vector<5x5xf32> to vector<5xf32>
    %59 = vector.shape_cast %58 : vector<5xf32> to vector<5x1xf32>
    %60 = vector.broadcast %59 : vector<5x1xf32> to vector<5x5xf32>
    %61 = arith.subf %57, %60 : vector<5x5xf32>
    %62 = math.exp %61 : vector<5x5xf32>
    %cst_23 = arith.constant dense<0.000000e+00> : vector<5xf32>
    %63 = vector.multi_reduction <add>, %62, %cst_23 [1] : vector<5x5xf32> to vector<5xf32>
    %64 = vector.shape_cast %63 : vector<5xf32> to vector<5x1xf32>
    %65 = tpu.reciprocal %64 {approx = true} : vector<5x1xf32> -> vector<5x1xf32>
    %66 = vector.broadcast %65 : vector<5x1xf32> to vector<5x5xf32>
    %67 = arith.mulf %62, %66 : vector<5x5xf32>
    %68 = arith.truncf %67 : vector<5x5xf32> to vector<5x5xbf16>
    %cst_24 = arith.constant dense<0.000000e+00> : vector<5x8xf32>
    %69 = tpu.matmul %68, %56, %cst_24 {dimension_numbers = #tpu.dot_dimension_numbers<[1], [0], [0], [1], [0, 0, 1, 1], [], []>} : vector<5x5xbf16>, vector<5x8xbf16>, vector<5x8xf32> -> vector<5x8xf32>
    %70 = vector.extract_strided_slice %50 {offsets = [0, 8], sizes = [5, 8], strides = [1, 1]} : vector<10x96xf32> to vector<5x8xf32>
    %71 = arith.truncf %70 : vector<5x8xf32> to vector<5x8xbf16>
    %72 = vector.extract_strided_slice %50 {offsets = [0, 40], sizes = [5, 8], strides = [1, 1]} : vector<10x96xf32> to vector<5x8xf32>
    %73 = arith.truncf %72 : vector<5x8xf32> to vector<5x8xbf16>
    %74 = vector.extract_strided_slice %50 {offsets = [0, 72], sizes = [5, 8], strides = [1, 1]} : vector<10x96xf32> to vector<5x8xf32>
    %75 = arith.truncf %74 : vector<5x8xf32> to vector<5x8xbf16>
    %cst_25 = arith.constant dense<0.000000e+00> : vector<5x5xf32>
    %76 = tpu.matmul %71, %73, %cst_25 {dimension_numbers = #tpu.dot_dimension_numbers<[1], [1], [0], [0], [0, 0, 1, 0], [], []>} : vector<5x8xbf16>, vector<5x8xbf16>, vector<5x5xf32> -> vector<5x5xf32>
    %cst_26 = arith.constant dense<0xFF800000> : vector<5xf32>
    %77 = vector.multi_reduction <maximumf>, %76, %cst_26 [1] : vector<5x5xf32> to vector<5xf32>
    %78 = vector.shape_cast %77 : vector<5xf32> to vector<5x1xf32>
    %79 = vector.broadcast %78 : vector<5x1xf32> to vector<5x5xf32>
    %80 = arith.subf %76, %79 : vector<5x5xf32>
    %81 = math.exp %80 : vector<5x5xf32>
    %cst_27 = arith.constant dense<0.000000e+00> : vector<5xf32>
    %82 = vector.multi_reduction <add>, %81, %cst_27 [1] : vector<5x5xf32> to vector<5xf32>
    %83 = vector.shape_cast %82 : vector<5xf32> to vector<5x1xf32>
    %84 = tpu.reciprocal %83 {approx = true} : vector<5x1xf32> -> vector<5x1xf32>
    %85 = vector.broadcast %84 : vector<5x1xf32> to vector<5x5xf32>
    %86 = arith.mulf %81, %85 : vector<5x5xf32>
    %87 = arith.truncf %86 : vector<5x5xf32> to vector<5x5xbf16>
    %cst_28 = arith.constant dense<0.000000e+00> : vector<5x8xf32>
    %88 = tpu.matmul %87, %75, %cst_28 {dimension_numbers = #tpu.dot_dimension_numbers<[1], [0], [0], [1], [0, 0, 1, 1], [], []>} : vector<5x5xbf16>, vector<5x8xbf16>, vector<5x8xf32> -> vector<5x8xf32>
    %89 = vector.extract_strided_slice %50 {offsets = [0, 16], sizes = [5, 8], strides = [1, 1]} : vector<10x96xf32> to vector<5x8xf32>
    %90 = arith.truncf %89 : vector<5x8xf32> to vector<5x8xbf16>
    %91 = vector.extract_strided_slice %50 {offsets = [0, 48], sizes = [5, 8], strides = [1, 1]} : vector<10x96xf32> to vector<5x8xf32>
    %92 = arith.truncf %91 : vector<5x8xf32> to vector<5x8xbf16>
    %93 = vector.extract_strided_slice %50 {offsets = [0, 80], sizes = [5, 8], strides = [1, 1]} : vector<10x96xf32> to vector<5x8xf32>
    %94 = arith.truncf %93 : vector<5x8xf32> to vector<5x8xbf16>
    %cst_29 = arith.constant dense<0.000000e+00> : vector<5x5xf32>
    %95 = tpu.matmul %90, %92, %cst_29 {dimension_numbers = #tpu.dot_dimension_numbers<[1], [1], [0], [0], [0, 0, 1, 0], [], []>} : vector<5x8xbf16>, vector<5x8xbf16>, vector<5x5xf32> -> vector<5x5xf32>
    %cst_30 = arith.constant dense<0xFF800000> : vector<5xf32>
    %96 = vector.multi_reduction <maximumf>, %95, %cst_30 [1] : vector<5x5xf32> to vector<5xf32>
    %97 = vector.shape_cast %96 : vector<5xf32> to vector<5x1xf32>
    %98 = vector.broadcast %97 : vector<5x1xf32> to vector<5x5xf32>
    %99 = arith.subf %95, %98 : vector<5x5xf32>
    %100 = math.exp %99 : vector<5x5xf32>
    %cst_31 = arith.constant dense<0.000000e+00> : vector<5xf32>
    %101 = vector.multi_reduction <add>, %100, %cst_31 [1] : vector<5x5xf32> to vector<5xf32>
    %102 = vector.shape_cast %101 : vector<5xf32> to vector<5x1xf32>
    %103 = tpu.reciprocal %102 {approx = true} : vector<5x1xf32> -> vector<5x1xf32>
    %104 = vector.broadcast %103 : vector<5x1xf32> to vector<5x5xf32>
    %105 = arith.mulf %100, %104 : vector<5x5xf32>
    %106 = arith.truncf %105 : vector<5x5xf32> to vector<5x5xbf16>
    %cst_32 = arith.constant dense<0.000000e+00> : vector<5x8xf32>
    %107 = tpu.matmul %106, %94, %cst_32 {dimension_numbers = #tpu.dot_dimension_numbers<[1], [0], [0], [1], [0, 0, 1, 1], [], []>} : vector<5x5xbf16>, vector<5x8xbf16>, vector<5x8xf32> -> vector<5x8xf32>
    %108 = vector.extract_strided_slice %50 {offsets = [0, 24], sizes = [5, 8], strides = [1, 1]} : vector<10x96xf32> to vector<5x8xf32>
    %109 = arith.truncf %108 : vector<5x8xf32> to vector<5x8xbf16>
    %110 = vector.extract_strided_slice %50 {offsets = [0, 56], sizes = [5, 8], strides = [1, 1]} : vector<10x96xf32> to vector<5x8xf32>
    %111 = arith.truncf %110 : vector<5x8xf32> to vector<5x8xbf16>
    %112 = vector.extract_strided_slice %50 {offsets = [0, 88], sizes = [5, 8], strides = [1, 1]} : vector<10x96xf32> to vector<5x8xf32>
    %113 = arith.truncf %112 : vector<5x8xf32> to vector<5x8xbf16>
    %cst_33 = arith.constant dense<0.000000e+00> : vector<5x5xf32>
    %114 = tpu.matmul %109, %111, %cst_33 {dimension_numbers = #tpu.dot_dimension_numbers<[1], [1], [0], [0], [0, 0, 1, 0], [], []>} : vector<5x8xbf16>, vector<5x8xbf16>, vector<5x5xf32> -> vector<5x5xf32>
    %cst_34 = arith.constant dense<0xFF800000> : vector<5xf32>
    %115 = vector.multi_reduction <maximumf>, %114, %cst_34 [1] : vector<5x5xf32> to vector<5xf32>
    %116 = vector.shape_cast %115 : vector<5xf32> to vector<5x1xf32>
    %117 = vector.broadcast %116 : vector<5x1xf32> to vector<5x5xf32>
    %118 = arith.subf %114, %117 : vector<5x5xf32>
    %119 = math.exp %118 : vector<5x5xf32>
    %cst_35 = arith.constant dense<0.000000e+00> : vector<5xf32>
    %120 = vector.multi_reduction <add>, %119, %cst_35 [1] : vector<5x5xf32> to vector<5xf32>
    %121 = vector.shape_cast %120 : vector<5xf32> to vector<5x1xf32>
    %122 = tpu.reciprocal %121 {approx = true} : vector<5x1xf32> -> vector<5x1xf32>
    %123 = vector.broadcast %122 : vector<5x1xf32> to vector<5x5xf32>
    %124 = arith.mulf %119, %123 : vector<5x5xf32>
    %125 = arith.truncf %124 : vector<5x5xf32> to vector<5x5xbf16>
    %cst_36 = arith.constant dense<0.000000e+00> : vector<5x8xf32>
    %126 = tpu.matmul %125, %113, %cst_36 {dimension_numbers = #tpu.dot_dimension_numbers<[1], [0], [0], [1], [0, 0, 1, 1], [], []>} : vector<5x5xbf16>, vector<5x8xbf16>, vector<5x8xf32> -> vector<5x8xf32>
    %127 = tpu.concatenate %69, %88, %107, %126 in 1 : vector<5x8xf32>, vector<5x8xf32>, vector<5x8xf32>, vector<5x8xf32> -> vector<5x32xf32>
    %128 = vector.extract_strided_slice %50 {offsets = [5, 0], sizes = [5, 8], strides = [1, 1]} : vector<10x96xf32> to vector<5x8xf32>
    %129 = arith.truncf %128 : vector<5x8xf32> to vector<5x8xbf16>
    %130 = vector.extract_strided_slice %50 {offsets = [5, 32], sizes = [5, 8], strides = [1, 1]} : vector<10x96xf32> to vector<5x8xf32>
    %131 = arith.truncf %130 : vector<5x8xf32> to vector<5x8xbf16>
    %132 = vector.extract_strided_slice %50 {offsets = [5, 64], sizes = [5, 8], strides = [1, 1]} : vector<10x96xf32> to vector<5x8xf32>
    %133 = arith.truncf %132 : vector<5x8xf32> to vector<5x8xbf16>
    %cst_37 = arith.constant dense<0.000000e+00> : vector<5x5xf32>
    %134 = tpu.matmul %129, %131, %cst_37 {dimension_numbers = #tpu.dot_dimension_numbers<[1], [1], [0], [0], [0, 0, 1, 0], [], []>} : vector<5x8xbf16>, vector<5x8xbf16>, vector<5x5xf32> -> vector<5x5xf32>
    %cst_38 = arith.constant dense<0xFF800000> : vector<5xf32>
    %135 = vector.multi_reduction <maximumf>, %134, %cst_38 [1] : vector<5x5xf32> to vector<5xf32>
    %136 = vector.shape_cast %135 : vector<5xf32> to vector<5x1xf32>
    %137 = vector.broadcast %136 : vector<5x1xf32> to vector<5x5xf32>
    %138 = arith.subf %134, %137 : vector<5x5xf32>
    %139 = math.exp %138 : vector<5x5xf32>
    %cst_39 = arith.constant dense<0.000000e+00> : vector<5xf32>
    %140 = vector.multi_reduction <add>, %139, %cst_39 [1] : vector<5x5xf32> to vector<5xf32>
    %141 = vector.shape_cast %140 : vector<5xf32> to vector<5x1xf32>
    %142 = tpu.reciprocal %141 {approx = true} : vector<5x1xf32> -> vector<5x1xf32>
    %143 = vector.broadcast %142 : vector<5x1xf32> to vector<5x5xf32>
    %144 = arith.mulf %139, %143 : vector<5x5xf32>
    %145 = arith.truncf %144 : vector<5x5xf32> to vector<5x5xbf16>
    %cst_40 = arith.constant dense<0.000000e+00> : vector<5x8xf32>
    %146 = tpu.matmul %145, %133, %cst_40 {dimension_numbers = #tpu.dot_dimension_numbers<[1], [0], [0], [1], [0, 0, 1, 1], [], []>} : vector<5x5xbf16>, vector<5x8xbf16>, vector<5x8xf32> -> vector<5x8xf32>
    %147 = vector.extract_strided_slice %50 {offsets = [5, 8], sizes = [5, 8], strides = [1, 1]} : vector<10x96xf32> to vector<5x8xf32>
    %148 = arith.truncf %147 : vector<5x8xf32> to vector<5x8xbf16>
    %149 = vector.extract_strided_slice %50 {offsets = [5, 40], sizes = [5, 8], strides = [1, 1]} : vector<10x96xf32> to vector<5x8xf32>
    %150 = arith.truncf %149 : vector<5x8xf32> to vector<5x8xbf16>
    %151 = vector.extract_strided_slice %50 {offsets = [5, 72], sizes = [5, 8], strides = [1, 1]} : vector<10x96xf32> to vector<5x8xf32>
    %152 = arith.truncf %151 : vector<5x8xf32> to vector<5x8xbf16>
    %cst_41 = arith.constant dense<0.000000e+00> : vector<5x5xf32>
    %153 = tpu.matmul %148, %150, %cst_41 {dimension_numbers = #tpu.dot_dimension_numbers<[1], [1], [0], [0], [0, 0, 1, 0], [], []>} : vector<5x8xbf16>, vector<5x8xbf16>, vector<5x5xf32> -> vector<5x5xf32>
    %cst_42 = arith.constant dense<0xFF800000> : vector<5xf32>
    %154 = vector.multi_reduction <maximumf>, %153, %cst_42 [1] : vector<5x5xf32> to vector<5xf32>
    %155 = vector.shape_cast %154 : vector<5xf32> to vector<5x1xf32>
    %156 = vector.broadcast %155 : vector<5x1xf32> to vector<5x5xf32>
    %157 = arith.subf %153, %156 : vector<5x5xf32>
    %158 = math.exp %157 : vector<5x5xf32>
    %cst_43 = arith.constant dense<0.000000e+00> : vector<5xf32>
    %159 = vector.multi_reduction <add>, %158, %cst_43 [1] : vector<5x5xf32> to vector<5xf32>
    %160 = vector.shape_cast %159 : vector<5xf32> to vector<5x1xf32>
    %161 = tpu.reciprocal %160 {approx = true} : vector<5x1xf32> -> vector<5x1xf32>
    %162 = vector.broadcast %161 : vector<5x1xf32> to vector<5x5xf32>
    %163 = arith.mulf %158, %162 : vector<5x5xf32>
    %164 = arith.truncf %163 : vector<5x5xf32> to vector<5x5xbf16>
    %cst_44 = arith.constant dense<0.000000e+00> : vector<5x8xf32>
    %165 = tpu.matmul %164, %152, %cst_44 {dimension_numbers = #tpu.dot_dimension_numbers<[1], [0], [0], [1], [0, 0, 1, 1], [], []>} : vector<5x5xbf16>, vector<5x8xbf16>, vector<5x8xf32> -> vector<5x8xf32>
    %166 = vector.extract_strided_slice %50 {offsets = [5, 16], sizes = [5, 8], strides = [1, 1]} : vector<10x96xf32> to vector<5x8xf32>
    %167 = arith.truncf %166 : vector<5x8xf32> to vector<5x8xbf16>
    %168 = vector.extract_strided_slice %50 {offsets = [5, 48], sizes = [5, 8], strides = [1, 1]} : vector<10x96xf32> to vector<5x8xf32>
    %169 = arith.truncf %168 : vector<5x8xf32> to vector<5x8xbf16>
    %170 = vector.extract_strided_slice %50 {offsets = [5, 80], sizes = [5, 8], strides = [1, 1]} : vector<10x96xf32> to vector<5x8xf32>
    %171 = arith.truncf %170 : vector<5x8xf32> to vector<5x8xbf16>
    %cst_45 = arith.constant dense<0.000000e+00> : vector<5x5xf32>
    %172 = tpu.matmul %167, %169, %cst_45 {dimension_numbers = #tpu.dot_dimension_numbers<[1], [1], [0], [0], [0, 0, 1, 0], [], []>} : vector<5x8xbf16>, vector<5x8xbf16>, vector<5x5xf32> -> vector<5x5xf32>
    %cst_46 = arith.constant dense<0xFF800000> : vector<5xf32>
    %173 = vector.multi_reduction <maximumf>, %172, %cst_46 [1] : vector<5x5xf32> to vector<5xf32>
    %174 = vector.shape_cast %173 : vector<5xf32> to vector<5x1xf32>
    %175 = vector.broadcast %174 : vector<5x1xf32> to vector<5x5xf32>
    %176 = arith.subf %172, %175 : vector<5x5xf32>
    %177 = math.exp %176 : vector<5x5xf32>
    %cst_47 = arith.constant dense<0.000000e+00> : vector<5xf32>
    %178 = vector.multi_reduction <add>, %177, %cst_47 [1] : vector<5x5xf32> to vector<5xf32>
    %179 = vector.shape_cast %178 : vector<5xf32> to vector<5x1xf32>
    %180 = tpu.reciprocal %179 {approx = true} : vector<5x1xf32> -> vector<5x1xf32>
    %181 = vector.broadcast %180 : vector<5x1xf32> to vector<5x5xf32>
    %182 = arith.mulf %177, %181 : vector<5x5xf32>
    %183 = arith.truncf %182 : vector<5x5xf32> to vector<5x5xbf16>
    %cst_48 = arith.constant dense<0.000000e+00> : vector<5x8xf32>
    %184 = tpu.matmul %183, %171, %cst_48 {dimension_numbers = #tpu.dot_dimension_numbers<[1], [0], [0], [1], [0, 0, 1, 1], [], []>} : vector<5x5xbf16>, vector<5x8xbf16>, vector<5x8xf32> -> vector<5x8xf32>
    %185 = vector.extract_strided_slice %50 {offsets = [5, 24], sizes = [5, 8], strides = [1, 1]} : vector<10x96xf32> to vector<5x8xf32>
    %186 = arith.truncf %185 : vector<5x8xf32> to vector<5x8xbf16>
    %187 = vector.extract_strided_slice %50 {offsets = [5, 56], sizes = [5, 8], strides = [1, 1]} : vector<10x96xf32> to vector<5x8xf32>
    %188 = arith.truncf %187 : vector<5x8xf32> to vector<5x8xbf16>
    %189 = vector.extract_strided_slice %50 {offsets = [5, 88], sizes = [5, 8], strides = [1, 1]} : vector<10x96xf32> to vector<5x8xf32>
    %190 = arith.truncf %189 : vector<5x8xf32> to vector<5x8xbf16>
    %cst_49 = arith.constant dense<0.000000e+00> : vector<5x5xf32>
    %191 = tpu.matmul %186, %188, %cst_49 {dimension_numbers = #tpu.dot_dimension_numbers<[1], [1], [0], [0], [0, 0, 1, 0], [], []>} : vector<5x8xbf16>, vector<5x8xbf16>, vector<5x5xf32> -> vector<5x5xf32>
    %cst_50 = arith.constant dense<0xFF800000> : vector<5xf32>
    %192 = vector.multi_reduction <maximumf>, %191, %cst_50 [1] : vector<5x5xf32> to vector<5xf32>
    %193 = vector.shape_cast %192 : vector<5xf32> to vector<5x1xf32>
    %194 = vector.broadcast %193 : vector<5x1xf32> to vector<5x5xf32>
    %195 = arith.subf %191, %194 : vector<5x5xf32>
    %196 = math.exp %195 : vector<5x5xf32>
    %cst_51 = arith.constant dense<0.000000e+00> : vector<5xf32>
    %197 = vector.multi_reduction <add>, %196, %cst_51 [1] : vector<5x5xf32> to vector<5xf32>
    %198 = vector.shape_cast %197 : vector<5xf32> to vector<5x1xf32>
    %199 = tpu.reciprocal %198 {approx = true} : vector<5x1xf32> -> vector<5x1xf32>
    %200 = vector.broadcast %199 : vector<5x1xf32> to vector<5x5xf32>
    %201 = arith.mulf %196, %200 : vector<5x5xf32>
    %202 = arith.truncf %201 : vector<5x5xf32> to vector<5x5xbf16>
    %cst_52 = arith.constant dense<0.000000e+00> : vector<5x8xf32>
    %203 = tpu.matmul %202, %190, %cst_52 {dimension_numbers = #tpu.dot_dimension_numbers<[1], [0], [0], [1], [0, 0, 1, 1], [], []>} : vector<5x5xbf16>, vector<5x8xbf16>, vector<5x8xf32> -> vector<5x8xf32>
    %204 = tpu.concatenate %146, %165, %184, %203 in 1 : vector<5x8xf32>, vector<5x8xf32>, vector<5x8xf32>, vector<5x8xf32> -> vector<5x32xf32>
    %205 = tpu.concatenate %127, %204 in 0 : vector<5x32xf32>, vector<5x32xf32> -> vector<10x32xf32>
    %206 = arith.truncf %205 : vector<10x32xf32> to vector<10x32xbf16>
    %c0_53 = arith.constant 0 : index
    %c0_54 = arith.constant 0 : index
    %c0_55 = arith.constant 0 : index
    %207 = vector.load %arg6[%c0_53, %c0_54, %c0_55] : memref<2x32x32xbf16, #tpu.memory_space<vmem>>, vector<1x32x32xbf16>
    %208 = vector.shape_cast %207 : vector<1x32x32xbf16> to vector<32x32xbf16>
    %cst_56 = arith.constant dense<0.000000e+00> : vector<10x32xf32>
    %209 = tpu.matmul %206, %208, %cst_56 {dimension_numbers = #tpu.dot_dimension_numbers<[1], [0], [0], [1], [0, 0, 1, 1], [], []>} : vector<10x32xbf16>, vector<32x32xbf16>, vector<10x32xf32> -> vector<10x32xf32>
    %210 = arith.addf %12, %209 : vector<10x32xf32>
    %211 = vector.broadcast %19 : vector<1x32xf32> to vector<10x32xf32>
    %212 = arith.addf %210, %211 : vector<10x32xf32>
    %cst_57 = arith.constant dense<0.000000e+00> : vector<10xf32>
    %213 = vector.multi_reduction <add>, %212, %cst_57 [1] : vector<10x32xf32> to vector<10xf32>
    %214 = vector.shape_cast %213 : vector<10xf32> to vector<10x1xf32>
    %cst_58 = arith.constant 3.200000e+01 : f32
    %215 = vector.broadcast %cst_58 : f32 to vector<10x1xf32>
    %216 = arith.divf %214, %215 : vector<10x1xf32>
    %217 = vector.broadcast %216 : vector<10x1xf32> to vector<10x32xf32>
    %218 = arith.subf %212, %217 : vector<10x32xf32>
    %219 = arith.mulf %218, %218 : vector<10x32xf32>
    %cst_59 = arith.constant dense<0.000000e+00> : vector<10xf32>
    %220 = vector.multi_reduction <add>, %219, %cst_59 [1] : vector<10x32xf32> to vector<10xf32>
    %221 = vector.shape_cast %220 : vector<10xf32> to vector<10x1xf32>
    %cst_60 = arith.constant 3.200000e+01 : f32
    %222 = vector.broadcast %cst_60 : f32 to vector<10x1xf32>
    %223 = arith.divf %221, %222 : vector<10x1xf32>
    %224 = vector.broadcast %216 : vector<10x1xf32> to vector<10x32xf32>
    %225 = arith.subf %212, %224 : vector<10x32xf32>
    %cst_61 = arith.constant 9.99999996E-13 : f32
    %226 = vector.broadcast %cst_61 : f32 to vector<10x1xf32>
    %227 = arith.addf %223, %226 : vector<10x1xf32>
    %228 = math.rsqrt %227 : vector<10x1xf32>
    %229 = vector.broadcast %228 : vector<10x1xf32> to vector<10x32xf32>
    %230 = arith.mulf %225, %229 : vector<10x32xf32>
    %231 = vector.broadcast %17 : vector<1x32xf32> to vector<10x32xf32>
    %232 = arith.mulf %230, %231 : vector<10x32xf32>
    %233 = vector.broadcast %18 : vector<1x32xf32> to vector<10x32xf32>
    %234 = arith.addf %232, %233 : vector<10x32xf32>
    %235 = arith.truncf %234 : vector<10x32xf32> to vector<10x32xbf16>
    %c0_62 = arith.constant 0 : index
    %c0_63 = arith.constant 0 : index
    %c0_64 = arith.constant 0 : index
    %236 = vector.load %arg7[%c0_62, %c0_63, %c0_64] : memref<2x32x64xbf16, #tpu.memory_space<vmem>>, vector<1x32x64xbf16>
    %237 = vector.shape_cast %236 : vector<1x32x64xbf16> to vector<32x64xbf16>
    %cst_65 = arith.constant dense<0.000000e+00> : vector<10x64xf32>
    %238 = tpu.matmul %235, %237, %cst_65 {dimension_numbers = #tpu.dot_dimension_numbers<[1], [0], [0], [1], [0, 0, 1, 1], [], []>} : vector<10x32xbf16>, vector<32x64xbf16>, vector<10x64xf32> -> vector<10x64xf32>
    %c0_66 = arith.constant 0 : index
    %c0_67 = arith.constant 0 : index
    %c0_68 = arith.constant 0 : index
    %239 = vector.load %arg8[%c0_66, %c0_67, %c0_68] : memref<2x1x64xf32, #tpu.memory_space<vmem>>, vector<1x1x64xf32>
    %240 = vector.shape_cast %239 : vector<1x1x64xf32> to vector<1x64xf32>
    %241 = vector.broadcast %240 : vector<1x64xf32> to vector<10x64xf32>
    %242 = arith.addf %238, %241 : vector<10x64xf32>
    %cst_69 = arith.constant 5.000000e-01 : f32
    %243 = vector.broadcast %cst_69 : f32 to vector<10x64xf32>
    %244 = arith.mulf %243, %242 : vector<10x64xf32>
    %cst_70 = arith.constant 0.707106769 : f32
    %245 = vector.broadcast %cst_70 : f32 to vector<10x64xf32>
    %246 = arith.mulf %242, %245 : vector<10x64xf32>
    %247 = math.erf %246 : vector<10x64xf32>
    %cst_71 = arith.constant 1.000000e+00 : f32
    %248 = vector.broadcast %cst_71 : f32 to vector<10x64xf32>
    %249 = arith.addf %248, %247 : vector<10x64xf32>
    %250 = arith.mulf %244, %249 : vector<10x64xf32>
    %251 = arith.truncf %250 : vector<10x64xf32> to vector<10x64xbf16>
    %c0_72 = arith.constant 0 : index
    %c0_73 = arith.constant 0 : index
    %c0_74 = arith.constant 0 : index
    %252 = vector.load %arg9[%c0_72, %c0_73, %c0_74] : memref<2x64x32xbf16, #tpu.memory_space<vmem>>, vector<1x64x32xbf16>
    %253 = vector.shape_cast %252 : vector<1x64x32xbf16> to vector<64x32xbf16>
    %cst_75 = arith.constant dense<0.000000e+00> : vector<10x32xf32>
    %254 = tpu.matmul %251, %253, %cst_75 {dimension_numbers = #tpu.dot_dimension_numbers<[1], [0], [0], [1], [0, 0, 1, 1], [], []>} : vector<10x64xbf16>, vector<64x32xbf16>, vector<10x32xf32> -> vector<10x32xf32>
    %255 = arith.addf %212, %254 : vector<10x32xf32>
    %256 = vector.broadcast %20 : vector<1x32xf32> to vector<10x32xf32>
    %257 = arith.addf %255, %256 : vector<10x32xf32>
    %c1 = arith.constant 1 : index
    %c0_76 = arith.constant 0 : index
    %c0_77 = arith.constant 0 : index
    %258 = vector.load %arg10[%c1, %c0_76, %c0_77] : memref<2x8x32xf32, #tpu.memory_space<vmem>>, vector<1x8x32xf32>
    %259 = vector.shape_cast %258 : vector<1x8x32xf32> to vector<8x32xf32>
    %260 = vector.extract_strided_slice %259 {offsets = [0, 0], sizes = [1, 32], strides = [1, 1]} : vector<8x32xf32> to vector<1x32xf32>
    %261 = vector.extract_strided_slice %259 {offsets = [1, 0], sizes = [1, 32], strides = [1, 1]} : vector<8x32xf32> to vector<1x32xf32>
    %262 = vector.extract_strided_slice %259 {offsets = [2, 0], sizes = [1, 32], strides = [1, 1]} : vector<8x32xf32> to vector<1x32xf32>
    %263 = vector.extract_strided_slice %259 {offsets = [3, 0], sizes = [1, 32], strides = [1, 1]} : vector<8x32xf32> to vector<1x32xf32>
    %264 = vector.extract_strided_slice %259 {offsets = [4, 0], sizes = [1, 32], strides = [1, 1]} : vector<8x32xf32> to vector<1x32xf32>
    %265 = vector.extract_strided_slice %259 {offsets = [5, 0], sizes = [1, 32], strides = [1, 1]} : vector<8x32xf32> to vector<1x32xf32>
    %cst_78 = arith.constant dense<0.000000e+00> : vector<10xf32>
    %266 = vector.multi_reduction <add>, %257, %cst_78 [1] : vector<10x32xf32> to vector<10xf32>
    %267 = vector.shape_cast %266 : vector<10xf32> to vector<10x1xf32>
    %cst_79 = arith.constant 3.200000e+01 : f32
    %268 = vector.broadcast %cst_79 : f32 to vector<10x1xf32>
    %269 = arith.divf %267, %268 : vector<10x1xf32>
    %270 = vector.broadcast %269 : vector<10x1xf32> to vector<10x32xf32>
    %271 = arith.subf %257, %270 : vector<10x32xf32>
    %272 = arith.mulf %271, %271 : vector<10x32xf32>
    %cst_80 = arith.constant dense<0.000000e+00> : vector<10xf32>
    %273 = vector.multi_reduction <add>, %272, %cst_80 [1] : vector<10x32xf32> to vector<10xf32>
    %274 = vector.shape_cast %273 : vector<10xf32> to vector<10x1xf32>
    %cst_81 = arith.constant 3.200000e+01 : f32
    %275 = vector.broadcast %cst_81 : f32 to vector<10x1xf32>
    %276 = arith.divf %274, %275 : vector<10x1xf32>
    %277 = vector.broadcast %269 : vector<10x1xf32> to vector<10x32xf32>
    %278 = arith.subf %257, %277 : vector<10x32xf32>
    %cst_82 = arith.constant 9.99999996E-13 : f32
    %279 = vector.broadcast %cst_82 : f32 to vector<10x1xf32>
    %280 = arith.addf %276, %279 : vector<10x1xf32>
    %281 = math.rsqrt %280 : vector<10x1xf32>
    %282 = vector.broadcast %281 : vector<10x1xf32> to vector<10x32xf32>
    %283 = arith.mulf %278, %282 : vector<10x32xf32>
    %284 = vector.broadcast %260 : vector<1x32xf32> to vector<10x32xf32>
    %285 = arith.mulf %283, %284 : vector<10x32xf32>
    %286 = vector.broadcast %261 : vector<1x32xf32> to vector<10x32xf32>
    %287 = arith.addf %285, %286 : vector<10x32xf32>
    %288 = arith.truncf %287 : vector<10x32xf32> to vector<10x32xbf16>
    %c1_83 = arith.constant 1 : index
    %c0_84 = arith.constant 0 : index
    %c0_85 = arith.constant 0 : index
    %289 = vector.load %arg4[%c1_83, %c0_84, %c0_85] : memref<2x32x96xbf16, #tpu.memory_space<vmem>>, vector<1x32x96xbf16>
    %290 = vector.shape_cast %289 : vector<1x32x96xbf16> to vector<32x96xbf16>
    %cst_86 = arith.constant dense<0.000000e+00> : vector<10x96xf32>
    %291 = tpu.matmul %288, %290, %cst_86 {dimension_numbers = #tpu.dot_dimension_numbers<[1], [0], [0], [1], [0, 0, 1, 1], [], []>} : vector<10x32xbf16>, vector<32x96xbf16>, vector<10x96xf32> -> vector<10x96xf32>
    %c1_87 = arith.constant 1 : index
    %c0_88 = arith.constant 0 : index
    %c0_89 = arith.constant 0 : index
    %292 = vector.load %arg5[%c1_87, %c0_88, %c0_89] : memref<2x1x96xf32, #tpu.memory_space<vmem>>, vector<1x1x96xf32>
    %293 = vector.shape_cast %292 : vector<1x1x96xf32> to vector<1x96xf32>
    %294 = vector.broadcast %293 : vector<1x96xf32> to vector<10x96xf32>
    %295 = arith.addf %291, %294 : vector<10x96xf32>
    %296 = vector.extract_strided_slice %295 {offsets = [0, 0], sizes = [5, 8], strides = [1, 1]} : vector<10x96xf32> to vector<5x8xf32>
    %297 = arith.truncf %296 : vector<5x8xf32> to vector<5x8xbf16>
    %298 = vector.extract_strided_slice %295 {offsets = [0, 32], sizes = [5, 8], strides = [1, 1]} : vector<10x96xf32> to vector<5x8xf32>
    %299 = arith.truncf %298 : vector<5x8xf32> to vector<5x8xbf16>
    %300 = vector.extract_strided_slice %295 {offsets = [0, 64], sizes = [5, 8], strides = [1, 1]} : vector<10x96xf32> to vector<5x8xf32>
    %301 = arith.truncf %300 : vector<5x8xf32> to vector<5x8xbf16>
    %cst_90 = arith.constant dense<0.000000e+00> : vector<5x5xf32>
    %302 = tpu.matmul %297, %299, %cst_90 {dimension_numbers = #tpu.dot_dimension_numbers<[1], [1], [0], [0], [0, 0, 1, 0], [], []>} : vector<5x8xbf16>, vector<5x8xbf16>, vector<5x5xf32> -> vector<5x5xf32>
    %cst_91 = arith.constant dense<0xFF800000> : vector<5xf32>
    %303 = vector.multi_reduction <maximumf>, %302, %cst_91 [1] : vector<5x5xf32> to vector<5xf32>
    %304 = vector.shape_cast %303 : vector<5xf32> to vector<5x1xf32>
    %305 = vector.broadcast %304 : vector<5x1xf32> to vector<5x5xf32>
    %306 = arith.subf %302, %305 : vector<5x5xf32>
    %307 = math.exp %306 : vector<5x5xf32>
    %cst_92 = arith.constant dense<0.000000e+00> : vector<5xf32>
    %308 = vector.multi_reduction <add>, %307, %cst_92 [1] : vector<5x5xf32> to vector<5xf32>
    %309 = vector.shape_cast %308 : vector<5xf32> to vector<5x1xf32>
    %310 = tpu.reciprocal %309 {approx = true} : vector<5x1xf32> -> vector<5x1xf32>
    %311 = vector.broadcast %310 : vector<5x1xf32> to vector<5x5xf32>
    %312 = arith.mulf %307, %311 : vector<5x5xf32>
    %313 = arith.truncf %312 : vector<5x5xf32> to vector<5x5xbf16>
    %cst_93 = arith.constant dense<0.000000e+00> : vector<5x8xf32>
    %314 = tpu.matmul %313, %301, %cst_93 {dimension_numbers = #tpu.dot_dimension_numbers<[1], [0], [0], [1], [0, 0, 1, 1], [], []>} : vector<5x5xbf16>, vector<5x8xbf16>, vector<5x8xf32> -> vector<5x8xf32>
    %315 = vector.extract_strided_slice %295 {offsets = [0, 8], sizes = [5, 8], strides = [1, 1]} : vector<10x96xf32> to vector<5x8xf32>
    %316 = arith.truncf %315 : vector<5x8xf32> to vector<5x8xbf16>
    %317 = vector.extract_strided_slice %295 {offsets = [0, 40], sizes = [5, 8], strides = [1, 1]} : vector<10x96xf32> to vector<5x8xf32>
    %318 = arith.truncf %317 : vector<5x8xf32> to vector<5x8xbf16>
    %319 = vector.extract_strided_slice %295 {offsets = [0, 72], sizes = [5, 8], strides = [1, 1]} : vector<10x96xf32> to vector<5x8xf32>
    %320 = arith.truncf %319 : vector<5x8xf32> to vector<5x8xbf16>
    %cst_94 = arith.constant dense<0.000000e+00> : vector<5x5xf32>
    %321 = tpu.matmul %316, %318, %cst_94 {dimension_numbers = #tpu.dot_dimension_numbers<[1], [1], [0], [0], [0, 0, 1, 0], [], []>} : vector<5x8xbf16>, vector<5x8xbf16>, vector<5x5xf32> -> vector<5x5xf32>
    %cst_95 = arith.constant dense<0xFF800000> : vector<5xf32>
    %322 = vector.multi_reduction <maximumf>, %321, %cst_95 [1] : vector<5x5xf32> to vector<5xf32>
    %323 = vector.shape_cast %322 : vector<5xf32> to vector<5x1xf32>
    %324 = vector.broadcast %323 : vector<5x1xf32> to vector<5x5xf32>
    %325 = arith.subf %321, %324 : vector<5x5xf32>
    %326 = math.exp %325 : vector<5x5xf32>
    %cst_96 = arith.constant dense<0.000000e+00> : vector<5xf32>
    %327 = vector.multi_reduction <add>, %326, %cst_96 [1] : vector<5x5xf32> to vector<5xf32>
    %328 = vector.shape_cast %327 : vector<5xf32> to vector<5x1xf32>
    %329 = tpu.reciprocal %328 {approx = true} : vector<5x1xf32> -> vector<5x1xf32>
    %330 = vector.broadcast %329 : vector<5x1xf32> to vector<5x5xf32>
    %331 = arith.mulf %326, %330 : vector<5x5xf32>
    %332 = arith.truncf %331 : vector<5x5xf32> to vector<5x5xbf16>
    %cst_97 = arith.constant dense<0.000000e+00> : vector<5x8xf32>
    %333 = tpu.matmul %332, %320, %cst_97 {dimension_numbers = #tpu.dot_dimension_numbers<[1], [0], [0], [1], [0, 0, 1, 1], [], []>} : vector<5x5xbf16>, vector<5x8xbf16>, vector<5x8xf32> -> vector<5x8xf32>
    %334 = vector.extract_strided_slice %295 {offsets = [0, 16], sizes = [5, 8], strides = [1, 1]} : vector<10x96xf32> to vector<5x8xf32>
    %335 = arith.truncf %334 : vector<5x8xf32> to vector<5x8xbf16>
    %336 = vector.extract_strided_slice %295 {offsets = [0, 48], sizes = [5, 8], strides = [1, 1]} : vector<10x96xf32> to vector<5x8xf32>
    %337 = arith.truncf %336 : vector<5x8xf32> to vector<5x8xbf16>
    %338 = vector.extract_strided_slice %295 {offsets = [0, 80], sizes = [5, 8], strides = [1, 1]} : vector<10x96xf32> to vector<5x8xf32>
    %339 = arith.truncf %338 : vector<5x8xf32> to vector<5x8xbf16>
    %cst_98 = arith.constant dense<0.000000e+00> : vector<5x5xf32>
    %340 = tpu.matmul %335, %337, %cst_98 {dimension_numbers = #tpu.dot_dimension_numbers<[1], [1], [0], [0], [0, 0, 1, 0], [], []>} : vector<5x8xbf16>, vector<5x8xbf16>, vector<5x5xf32> -> vector<5x5xf32>
    %cst_99 = arith.constant dense<0xFF800000> : vector<5xf32>
    %341 = vector.multi_reduction <maximumf>, %340, %cst_99 [1] : vector<5x5xf32> to vector<5xf32>
    %342 = vector.shape_cast %341 : vector<5xf32> to vector<5x1xf32>
    %343 = vector.broadcast %342 : vector<5x1xf32> to vector<5x5xf32>
    %344 = arith.subf %340, %343 : vector<5x5xf32>
    %345 = math.exp %344 : vector<5x5xf32>
    %cst_100 = arith.constant dense<0.000000e+00> : vector<5xf32>
    %346 = vector.multi_reduction <add>, %345, %cst_100 [1] : vector<5x5xf32> to vector<5xf32>
    %347 = vector.shape_cast %346 : vector<5xf32> to vector<5x1xf32>
    %348 = tpu.reciprocal %347 {approx = true} : vector<5x1xf32> -> vector<5x1xf32>
    %349 = vector.broadcast %348 : vector<5x1xf32> to vector<5x5xf32>
    %350 = arith.mulf %345, %349 : vector<5x5xf32>
    %351 = arith.truncf %350 : vector<5x5xf32> to vector<5x5xbf16>
    %cst_101 = arith.constant dense<0.000000e+00> : vector<5x8xf32>
    %352 = tpu.matmul %351, %339, %cst_101 {dimension_numbers = #tpu.dot_dimension_numbers<[1], [0], [0], [1], [0, 0, 1, 1], [], []>} : vector<5x5xbf16>, vector<5x8xbf16>, vector<5x8xf32> -> vector<5x8xf32>
    %353 = vector.extract_strided_slice %295 {offsets = [0, 24], sizes = [5, 8], strides = [1, 1]} : vector<10x96xf32> to vector<5x8xf32>
    %354 = arith.truncf %353 : vector<5x8xf32> to vector<5x8xbf16>
    %355 = vector.extract_strided_slice %295 {offsets = [0, 56], sizes = [5, 8], strides = [1, 1]} : vector<10x96xf32> to vector<5x8xf32>
    %356 = arith.truncf %355 : vector<5x8xf32> to vector<5x8xbf16>
    %357 = vector.extract_strided_slice %295 {offsets = [0, 88], sizes = [5, 8], strides = [1, 1]} : vector<10x96xf32> to vector<5x8xf32>
    %358 = arith.truncf %357 : vector<5x8xf32> to vector<5x8xbf16>
    %cst_102 = arith.constant dense<0.000000e+00> : vector<5x5xf32>
    %359 = tpu.matmul %354, %356, %cst_102 {dimension_numbers = #tpu.dot_dimension_numbers<[1], [1], [0], [0], [0, 0, 1, 0], [], []>} : vector<5x8xbf16>, vector<5x8xbf16>, vector<5x5xf32> -> vector<5x5xf32>
    %cst_103 = arith.constant dense<0xFF800000> : vector<5xf32>
    %360 = vector.multi_reduction <maximumf>, %359, %cst_103 [1] : vector<5x5xf32> to vector<5xf32>
    %361 = vector.shape_cast %360 : vector<5xf32> to vector<5x1xf32>
    %362 = vector.broadcast %361 : vector<5x1xf32> to vector<5x5xf32>
    %363 = arith.subf %359, %362 : vector<5x5xf32>
    %364 = math.exp %363 : vector<5x5xf32>
    %cst_104 = arith.constant dense<0.000000e+00> : vector<5xf32>
    %365 = vector.multi_reduction <add>, %364, %cst_104 [1] : vector<5x5xf32> to vector<5xf32>
    %366 = vector.shape_cast %365 : vector<5xf32> to vector<5x1xf32>
    %367 = tpu.reciprocal %366 {approx = true} : vector<5x1xf32> -> vector<5x1xf32>
    %368 = vector.broadcast %367 : vector<5x1xf32> to vector<5x5xf32>
    %369 = arith.mulf %364, %368 : vector<5x5xf32>
    %370 = arith.truncf %369 : vector<5x5xf32> to vector<5x5xbf16>
    %cst_105 = arith.constant dense<0.000000e+00> : vector<5x8xf32>
    %371 = tpu.matmul %370, %358, %cst_105 {dimension_numbers = #tpu.dot_dimension_numbers<[1], [0], [0], [1], [0, 0, 1, 1], [], []>} : vector<5x5xbf16>, vector<5x8xbf16>, vector<5x8xf32> -> vector<5x8xf32>
    %372 = tpu.concatenate %314, %333, %352, %371 in 1 : vector<5x8xf32>, vector<5x8xf32>, vector<5x8xf32>, vector<5x8xf32> -> vector<5x32xf32>
    %373 = vector.extract_strided_slice %295 {offsets = [5, 0], sizes = [5, 8], strides = [1, 1]} : vector<10x96xf32> to vector<5x8xf32>
    %374 = arith.truncf %373 : vector<5x8xf32> to vector<5x8xbf16>
    %375 = vector.extract_strided_slice %295 {offsets = [5, 32], sizes = [5, 8], strides = [1, 1]} : vector<10x96xf32> to vector<5x8xf32>
    %376 = arith.truncf %375 : vector<5x8xf32> to vector<5x8xbf16>
    %377 = vector.extract_strided_slice %295 {offsets = [5, 64], sizes = [5, 8], strides = [1, 1]} : vector<10x96xf32> to vector<5x8xf32>
    %378 = arith.truncf %377 : vector<5x8xf32> to vector<5x8xbf16>
    %cst_106 = arith.constant dense<0.000000e+00> : vector<5x5xf32>
    %379 = tpu.matmul %374, %376, %cst_106 {dimension_numbers = #tpu.dot_dimension_numbers<[1], [1], [0], [0], [0, 0, 1, 0], [], []>} : vector<5x8xbf16>, vector<5x8xbf16>, vector<5x5xf32> -> vector<5x5xf32>
    %cst_107 = arith.constant dense<0xFF800000> : vector<5xf32>
    %380 = vector.multi_reduction <maximumf>, %379, %cst_107 [1] : vector<5x5xf32> to vector<5xf32>
    %381 = vector.shape_cast %380 : vector<5xf32> to vector<5x1xf32>
    %382 = vector.broadcast %381 : vector<5x1xf32> to vector<5x5xf32>
    %383 = arith.subf %379, %382 : vector<5x5xf32>
    %384 = math.exp %383 : vector<5x5xf32>
    %cst_108 = arith.constant dense<0.000000e+00> : vector<5xf32>
    %385 = vector.multi_reduction <add>, %384, %cst_108 [1] : vector<5x5xf32> to vector<5xf32>
    %386 = vector.shape_cast %385 : vector<5xf32> to vector<5x1xf32>
    %387 = tpu.reciprocal %386 {approx = true} : vector<5x1xf32> -> vector<5x1xf32>
    %388 = vector.broadcast %387 : vector<5x1xf32> to vector<5x5xf32>
    %389 = arith.mulf %384, %388 : vector<5x5xf32>
    %390 = arith.truncf %389 : vector<5x5xf32> to vector<5x5xbf16>
    %cst_109 = arith.constant dense<0.000000e+00> : vector<5x8xf32>
    %391 = tpu.matmul %390, %378, %cst_109 {dimension_numbers = #tpu.dot_dimension_numbers<[1], [0], [0], [1], [0, 0, 1, 1], [], []>} : vector<5x5xbf16>, vector<5x8xbf16>, vector<5x8xf32> -> vector<5x8xf32>
    %392 = vector.extract_strided_slice %295 {offsets = [5, 8], sizes = [5, 8], strides = [1, 1]} : vector<10x96xf32> to vector<5x8xf32>
    %393 = arith.truncf %392 : vector<5x8xf32> to vector<5x8xbf16>
    %394 = vector.extract_strided_slice %295 {offsets = [5, 40], sizes = [5, 8], strides = [1, 1]} : vector<10x96xf32> to vector<5x8xf32>
    %395 = arith.truncf %394 : vector<5x8xf32> to vector<5x8xbf16>
    %396 = vector.extract_strided_slice %295 {offsets = [5, 72], sizes = [5, 8], strides = [1, 1]} : vector<10x96xf32> to vector<5x8xf32>
    %397 = arith.truncf %396 : vector<5x8xf32> to vector<5x8xbf16>
    %cst_110 = arith.constant dense<0.000000e+00> : vector<5x5xf32>
    %398 = tpu.matmul %393, %395, %cst_110 {dimension_numbers = #tpu.dot_dimension_numbers<[1], [1], [0], [0], [0, 0, 1, 0], [], []>} : vector<5x8xbf16>, vector<5x8xbf16>, vector<5x5xf32> -> vector<5x5xf32>
    %cst_111 = arith.constant dense<0xFF800000> : vector<5xf32>
    %399 = vector.multi_reduction <maximumf>, %398, %cst_111 [1] : vector<5x5xf32> to vector<5xf32>
    %400 = vector.shape_cast %399 : vector<5xf32> to vector<5x1xf32>
    %401 = vector.broadcast %400 : vector<5x1xf32> to vector<5x5xf32>
    %402 = arith.subf %398, %401 : vector<5x5xf32>
    %403 = math.exp %402 : vector<5x5xf32>
    %cst_112 = arith.constant dense<0.000000e+00> : vector<5xf32>
    %404 = vector.multi_reduction <add>, %403, %cst_112 [1] : vector<5x5xf32> to vector<5xf32>
    %405 = vector.shape_cast %404 : vector<5xf32> to vector<5x1xf32>
    %406 = tpu.reciprocal %405 {approx = true} : vector<5x1xf32> -> vector<5x1xf32>
    %407 = vector.broadcast %406 : vector<5x1xf32> to vector<5x5xf32>
    %408 = arith.mulf %403, %407 : vector<5x5xf32>
    %409 = arith.truncf %408 : vector<5x5xf32> to vector<5x5xbf16>
    %cst_113 = arith.constant dense<0.000000e+00> : vector<5x8xf32>
    %410 = tpu.matmul %409, %397, %cst_113 {dimension_numbers = #tpu.dot_dimension_numbers<[1], [0], [0], [1], [0, 0, 1, 1], [], []>} : vector<5x5xbf16>, vector<5x8xbf16>, vector<5x8xf32> -> vector<5x8xf32>
    %411 = vector.extract_strided_slice %295 {offsets = [5, 16], sizes = [5, 8], strides = [1, 1]} : vector<10x96xf32> to vector<5x8xf32>
    %412 = arith.truncf %411 : vector<5x8xf32> to vector<5x8xbf16>
    %413 = vector.extract_strided_slice %295 {offsets = [5, 48], sizes = [5, 8], strides = [1, 1]} : vector<10x96xf32> to vector<5x8xf32>
    %414 = arith.truncf %413 : vector<5x8xf32> to vector<5x8xbf16>
    %415 = vector.extract_strided_slice %295 {offsets = [5, 80], sizes = [5, 8], strides = [1, 1]} : vector<10x96xf32> to vector<5x8xf32>
    %416 = arith.truncf %415 : vector<5x8xf32> to vector<5x8xbf16>
    %cst_114 = arith.constant dense<0.000000e+00> : vector<5x5xf32>
    %417 = tpu.matmul %412, %414, %cst_114 {dimension_numbers = #tpu.dot_dimension_numbers<[1], [1], [0], [0], [0, 0, 1, 0], [], []>} : vector<5x8xbf16>, vector<5x8xbf16>, vector<5x5xf32> -> vector<5x5xf32>
    %cst_115 = arith.constant dense<0xFF800000> : vector<5xf32>
    %418 = vector.multi_reduction <maximumf>, %417, %cst_115 [1] : vector<5x5xf32> to vector<5xf32>
    %419 = vector.shape_cast %418 : vector<5xf32> to vector<5x1xf32>
    %420 = vector.broadcast %419 : vector<5x1xf32> to vector<5x5xf32>
    %421 = arith.subf %417, %420 : vector<5x5xf32>
    %422 = math.exp %421 : vector<5x5xf32>
    %cst_116 = arith.constant dense<0.000000e+00> : vector<5xf32>
    %423 = vector.multi_reduction <add>, %422, %cst_116 [1] : vector<5x5xf32> to vector<5xf32>
    %424 = vector.shape_cast %423 : vector<5xf32> to vector<5x1xf32>
    %425 = tpu.reciprocal %424 {approx = true} : vector<5x1xf32> -> vector<5x1xf32>
    %426 = vector.broadcast %425 : vector<5x1xf32> to vector<5x5xf32>
    %427 = arith.mulf %422, %426 : vector<5x5xf32>
    %428 = arith.truncf %427 : vector<5x5xf32> to vector<5x5xbf16>
    %cst_117 = arith.constant dense<0.000000e+00> : vector<5x8xf32>
    %429 = tpu.matmul %428, %416, %cst_117 {dimension_numbers = #tpu.dot_dimension_numbers<[1], [0], [0], [1], [0, 0, 1, 1], [], []>} : vector<5x5xbf16>, vector<5x8xbf16>, vector<5x8xf32> -> vector<5x8xf32>
    %430 = vector.extract_strided_slice %295 {offsets = [5, 24], sizes = [5, 8], strides = [1, 1]} : vector<10x96xf32> to vector<5x8xf32>
    %431 = arith.truncf %430 : vector<5x8xf32> to vector<5x8xbf16>
    %432 = vector.extract_strided_slice %295 {offsets = [5, 56], sizes = [5, 8], strides = [1, 1]} : vector<10x96xf32> to vector<5x8xf32>
    %433 = arith.truncf %432 : vector<5x8xf32> to vector<5x8xbf16>
    %434 = vector.extract_strided_slice %295 {offsets = [5, 88], sizes = [5, 8], strides = [1, 1]} : vector<10x96xf32> to vector<5x8xf32>
    %435 = arith.truncf %434 : vector<5x8xf32> to vector<5x8xbf16>
    %cst_118 = arith.constant dense<0.000000e+00> : vector<5x5xf32>
    %436 = tpu.matmul %431, %433, %cst_118 {dimension_numbers = #tpu.dot_dimension_numbers<[1], [1], [0], [0], [0, 0, 1, 0], [], []>} : vector<5x8xbf16>, vector<5x8xbf16>, vector<5x5xf32> -> vector<5x5xf32>
    %cst_119 = arith.constant dense<0xFF800000> : vector<5xf32>
    %437 = vector.multi_reduction <maximumf>, %436, %cst_119 [1] : vector<5x5xf32> to vector<5xf32>
    %438 = vector.shape_cast %437 : vector<5xf32> to vector<5x1xf32>
    %439 = vector.broadcast %438 : vector<5x1xf32> to vector<5x5xf32>
    %440 = arith.subf %436, %439 : vector<5x5xf32>
    %441 = math.exp %440 : vector<5x5xf32>
    %cst_120 = arith.constant dense<0.000000e+00> : vector<5xf32>
    %442 = vector.multi_reduction <add>, %441, %cst_120 [1] : vector<5x5xf32> to vector<5xf32>
    %443 = vector.shape_cast %442 : vector<5xf32> to vector<5x1xf32>
    %444 = tpu.reciprocal %443 {approx = true} : vector<5x1xf32> -> vector<5x1xf32>
    %445 = vector.broadcast %444 : vector<5x1xf32> to vector<5x5xf32>
    %446 = arith.mulf %441, %445 : vector<5x5xf32>
    %447 = arith.truncf %446 : vector<5x5xf32> to vector<5x5xbf16>
    %cst_121 = arith.constant dense<0.000000e+00> : vector<5x8xf32>
    %448 = tpu.matmul %447, %435, %cst_121 {dimension_numbers = #tpu.dot_dimension_numbers<[1], [0], [0], [1], [0, 0, 1, 1], [], []>} : vector<5x5xbf16>, vector<5x8xbf16>, vector<5x8xf32> -> vector<5x8xf32>
    %449 = tpu.concatenate %391, %410, %429, %448 in 1 : vector<5x8xf32>, vector<5x8xf32>, vector<5x8xf32>, vector<5x8xf32> -> vector<5x32xf32>
    %450 = tpu.concatenate %372, %449 in 0 : vector<5x32xf32>, vector<5x32xf32> -> vector<10x32xf32>
    %451 = arith.truncf %450 : vector<10x32xf32> to vector<10x32xbf16>
    %c1_122 = arith.constant 1 : index
    %c0_123 = arith.constant 0 : index
    %c0_124 = arith.constant 0 : index
    %452 = vector.load %arg6[%c1_122, %c0_123, %c0_124] : memref<2x32x32xbf16, #tpu.memory_space<vmem>>, vector<1x32x32xbf16>
    %453 = vector.shape_cast %452 : vector<1x32x32xbf16> to vector<32x32xbf16>
    %cst_125 = arith.constant dense<0.000000e+00> : vector<10x32xf32>
    %454 = tpu.matmul %451, %453, %cst_125 {dimension_numbers = #tpu.dot_dimension_numbers<[1], [0], [0], [1], [0, 0, 1, 1], [], []>} : vector<10x32xbf16>, vector<32x32xbf16>, vector<10x32xf32> -> vector<10x32xf32>
    %455 = arith.addf %257, %454 : vector<10x32xf32>
    %456 = vector.broadcast %264 : vector<1x32xf32> to vector<10x32xf32>
    %457 = arith.addf %455, %456 : vector<10x32xf32>
    %cst_126 = arith.constant dense<0.000000e+00> : vector<10xf32>
    %458 = vector.multi_reduction <add>, %457, %cst_126 [1] : vector<10x32xf32> to vector<10xf32>
    %459 = vector.shape_cast %458 : vector<10xf32> to vector<10x1xf32>
    %cst_127 = arith.constant 3.200000e+01 : f32
    %460 = vector.broadcast %cst_127 : f32 to vector<10x1xf32>
    %461 = arith.divf %459, %460 : vector<10x1xf32>
    %462 = vector.broadcast %461 : vector<10x1xf32> to vector<10x32xf32>
    %463 = arith.subf %457, %462 : vector<10x32xf32>
    %464 = arith.mulf %463, %463 : vector<10x32xf32>
    %cst_128 = arith.constant dense<0.000000e+00> : vector<10xf32>
    %465 = vector.multi_reduction <add>, %464, %cst_128 [1] : vector<10x32xf32> to vector<10xf32>
    %466 = vector.shape_cast %465 : vector<10xf32> to vector<10x1xf32>
    %cst_129 = arith.constant 3.200000e+01 : f32
    %467 = vector.broadcast %cst_129 : f32 to vector<10x1xf32>
    %468 = arith.divf %466, %467 : vector<10x1xf32>
    %469 = vector.broadcast %461 : vector<10x1xf32> to vector<10x32xf32>
    %470 = arith.subf %457, %469 : vector<10x32xf32>
    %cst_130 = arith.constant 9.99999996E-13 : f32
    %471 = vector.broadcast %cst_130 : f32 to vector<10x1xf32>
    %472 = arith.addf %468, %471 : vector<10x1xf32>
    %473 = math.rsqrt %472 : vector<10x1xf32>
    %474 = vector.broadcast %473 : vector<10x1xf32> to vector<10x32xf32>
    %475 = arith.mulf %470, %474 : vector<10x32xf32>
    %476 = vector.broadcast %262 : vector<1x32xf32> to vector<10x32xf32>
    %477 = arith.mulf %475, %476 : vector<10x32xf32>
    %478 = vector.broadcast %263 : vector<1x32xf32> to vector<10x32xf32>
    %479 = arith.addf %477, %478 : vector<10x32xf32>
    %480 = arith.truncf %479 : vector<10x32xf32> to vector<10x32xbf16>
    %c1_131 = arith.constant 1 : index
    %c0_132 = arith.constant 0 : index
    %c0_133 = arith.constant 0 : index
    %481 = vector.load %arg7[%c1_131, %c0_132, %c0_133] : memref<2x32x64xbf16, #tpu.memory_space<vmem>>, vector<1x32x64xbf16>
    %482 = vector.shape_cast %481 : vector<1x32x64xbf16> to vector<32x64xbf16>
    %cst_134 = arith.constant dense<0.000000e+00> : vector<10x64xf32>
    %483 = tpu.matmul %480, %482, %cst_134 {dimension_numbers = #tpu.dot_dimension_numbers<[1], [0], [0], [1], [0, 0, 1, 1], [], []>} : vector<10x32xbf16>, vector<32x64xbf16>, vector<10x64xf32> -> vector<10x64xf32>
    %c1_135 = arith.constant 1 : index
    %c0_136 = arith.constant 0 : index
    %c0_137 = arith.constant 0 : index
    %484 = vector.load %arg8[%c1_135, %c0_136, %c0_137] : memref<2x1x64xf32, #tpu.memory_space<vmem>>, vector<1x1x64xf32>
    %485 = vector.shape_cast %484 : vector<1x1x64xf32> to vector<1x64xf32>
    %486 = vector.broadcast %485 : vector<1x64xf32> to vector<10x64xf32>
    %487 = arith.addf %483, %486 : vector<10x64xf32>
    %cst_138 = arith.constant 5.000000e-01 : f32
    %488 = vector.broadcast %cst_138 : f32 to vector<10x64xf32>
    %489 = arith.mulf %488, %487 : vector<10x64xf32>
    %cst_139 = arith.constant 0.707106769 : f32
    %490 = vector.broadcast %cst_139 : f32 to vector<10x64xf32>
    %491 = arith.mulf %487, %490 : vector<10x64xf32>
    %492 = math.erf %491 : vector<10x64xf32>
    %cst_140 = arith.constant 1.000000e+00 : f32
    %493 = vector.broadcast %cst_140 : f32 to vector<10x64xf32>
    %494 = arith.addf %493, %492 : vector<10x64xf32>
    %495 = arith.mulf %489, %494 : vector<10x64xf32>
    %496 = arith.truncf %495 : vector<10x64xf32> to vector<10x64xbf16>
    %c1_141 = arith.constant 1 : index
    %c0_142 = arith.constant 0 : index
    %c0_143 = arith.constant 0 : index
    %497 = vector.load %arg9[%c1_141, %c0_142, %c0_143] : memref<2x64x32xbf16, #tpu.memory_space<vmem>>, vector<1x64x32xbf16>
    %498 = vector.shape_cast %497 : vector<1x64x32xbf16> to vector<64x32xbf16>
    %cst_144 = arith.constant dense<0.000000e+00> : vector<10x32xf32>
    %499 = tpu.matmul %496, %498, %cst_144 {dimension_numbers = #tpu.dot_dimension_numbers<[1], [0], [0], [1], [0, 0, 1, 1], [], []>} : vector<10x64xbf16>, vector<64x32xbf16>, vector<10x32xf32> -> vector<10x32xf32>
    %500 = arith.addf %457, %499 : vector<10x32xf32>
    %501 = vector.broadcast %265 : vector<1x32xf32> to vector<10x32xf32>
    %502 = arith.addf %500, %501 : vector<10x32xf32>
    %c0_145 = arith.constant 0 : index
    %c0_146 = arith.constant 0 : index
    %503 = vector.load %arg11[%c0_145, %c0_146] : memref<2x32xf32, #tpu.memory_space<vmem>>, vector<2x32xf32>
    %504 = vector.extract_strided_slice %502 {offsets = [0, 0], sizes = [1, 32], strides = [1, 1]} : vector<10x32xf32> to vector<1x32xf32>
    %505 = vector.extract_strided_slice %502 {offsets = [5, 0], sizes = [1, 32], strides = [1, 1]} : vector<10x32xf32> to vector<1x32xf32>
    %506 = tpu.concatenate %504, %505 in 0 : vector<1x32xf32>, vector<1x32xf32> -> vector<2x32xf32>
    %507 = vector.extract_strided_slice %503 {offsets = [0, 0], sizes = [1, 32], strides = [1, 1]} : vector<2x32xf32> to vector<1x32xf32>
    %508 = vector.extract_strided_slice %503 {offsets = [1, 0], sizes = [1, 32], strides = [1, 1]} : vector<2x32xf32> to vector<1x32xf32>
    %cst_147 = arith.constant dense<0.000000e+00> : vector<2xf32>
    %509 = vector.multi_reduction <add>, %506, %cst_147 [1] : vector<2x32xf32> to vector<2xf32>
    %510 = vector.shape_cast %509 : vector<2xf32> to vector<2x1xf32>
    %cst_148 = arith.constant 3.200000e+01 : f32
    %511 = vector.broadcast %cst_148 : f32 to vector<2x1xf32>
    %512 = arith.divf %510, %511 : vector<2x1xf32>
    %513 = vector.broadcast %512 : vector<2x1xf32> to vector<2x32xf32>
    %514 = arith.subf %506, %513 : vector<2x32xf32>
    %515 = arith.mulf %514, %514 : vector<2x32xf32>
    %cst_149 = arith.constant dense<0.000000e+00> : vector<2xf32>
    %516 = vector.multi_reduction <add>, %515, %cst_149 [1] : vector<2x32xf32> to vector<2xf32>
    %517 = vector.shape_cast %516 : vector<2xf32> to vector<2x1xf32>
    %cst_150 = arith.constant 3.200000e+01 : f32
    %518 = vector.broadcast %cst_150 : f32 to vector<2x1xf32>
    %519 = arith.divf %517, %518 : vector<2x1xf32>
    %520 = vector.broadcast %512 : vector<2x1xf32> to vector<2x32xf32>
    %521 = arith.subf %506, %520 : vector<2x32xf32>
    %cst_151 = arith.constant 9.99999996E-13 : f32
    %522 = vector.broadcast %cst_151 : f32 to vector<2x1xf32>
    %523 = arith.addf %519, %522 : vector<2x1xf32>
    %524 = math.rsqrt %523 : vector<2x1xf32>
    %525 = vector.broadcast %524 : vector<2x1xf32> to vector<2x32xf32>
    %526 = arith.mulf %521, %525 : vector<2x32xf32>
    %527 = vector.broadcast %507 : vector<1x32xf32> to vector<2x32xf32>
    %528 = arith.mulf %526, %527 : vector<2x32xf32>
    %529 = vector.broadcast %508 : vector<1x32xf32> to vector<2x32xf32>
    %530 = arith.addf %528, %529 : vector<2x32xf32>
    %531 = arith.truncf %530 : vector<2x32xf32> to vector<2x32xbf16>
    %c0_152 = arith.constant 0 : index
    %c0_153 = arith.constant 0 : index
    %532 = vector.load %arg12[%c0_152, %c0_153] : memref<32x128xbf16, #tpu.memory_space<vmem>>, vector<32x128xbf16>
    %cst_154 = arith.constant dense<0.000000e+00> : vector<2x128xf32>
    %533 = tpu.matmul %531, %532, %cst_154 {dimension_numbers = #tpu.dot_dimension_numbers<[1], [0], [0], [1], [0, 0, 1, 1], [], []>} : vector<2x32xbf16>, vector<32x128xbf16>, vector<2x128xf32> -> vector<2x128xf32>
    %c0_155 = arith.constant 0 : index
    %c0_156 = arith.constant 0 : index
    %534 = vector.load %arg13[%c0_155, %c0_156] : memref<1x128xf32, #tpu.memory_space<vmem>>, vector<1x128xf32>
    %535 = vector.broadcast %534 : vector<1x128xf32> to vector<2x128xf32>
    %536 = arith.addf %533, %535 : vector<2x128xf32>
    %cst_157 = arith.constant 0.000000e+00 : f32
    %537 = vector.broadcast %cst_157 : f32 to vector<6x128xf32>
    %538 = tpu.concatenate %536, %537 in 0 : vector<2x128xf32>, vector<6x128xf32> -> vector<8x128xf32>
    %c0_158 = arith.constant 0 : index
    %c0_159 = arith.constant 0 : index
    %539 = vector.load %arg14[%c0_158, %c0_159] : memref<8x128xf32, #tpu.memory_space<vmem>>, vector<8x128xf32>
    tpu.vector_store %arg14[%c0_158, %c0_159], %538 {strides = array<i32>} : memref<8x128xf32, #tpu.memory_space<vmem>>, vector<8x128xf32>,
    return
  }
  func.func @transform_0(%arg0: i32) -> (i32, i32) {
    %c0_i32 = arith.constant 0 : i32
    %c0_i32_0 = arith.constant 0 : i32
    %c0_i32_1 = arith.constant 0 : i32
    return %c0_i32, %c0_i32_0 : i32, i32
  }
  func.func @transform_1(%arg0: i32) -> (i32, i32) {
    %c0_i32 = arith.constant 0 : i32
    %c0_i32_0 = arith.constant 0 : i32
    %c0_i32_1 = arith.constant 0 : i32
    return %c0_i32, %c0_i32_0 : i32, i32
  }
  func.func @transform_2(%arg0: i32) -> (i32, i32) {
    %c0_i32 = arith.constant 0 : i32
    %c0_i32_0 = arith.constant 0 : i32
    %c0_i32_1 = arith.constant 0 : i32
    return %c0_i32, %c0_i32_0 : i32, i32
  }
  func.func @transform_3(%arg0: i32) -> (i32, i32, i32) {
    %c0_i32 = arith.constant 0 : i32
    %c0_i32_0 = arith.constant 0 : i32
    %c0_i32_1 = arith.constant 0 : i32
    %c0_i32_2 = arith.constant 0 : i32
    return %c0_i32, %c0_i32_0, %c0_i32_1 : i32, i32, i32
  }
  func.func @transform_4(%arg0: i32) -> (i32, i32, i32) {
    %c0_i32 = arith.constant 0 : i32
    %c0_i32_0 = arith.constant 0 : i32
    %c0_i32_1 = arith.constant 0 : i32
    %c0_i32_2 = arith.constant 0 : i32
    return %c0_i32, %c0_i32_0, %c0_i32_1 : i32, i32, i32
  }
  func.func @transform_5(%arg0: i32) -> (i32, i32, i32) {
    %c0_i32 = arith.constant 0 : i32
    %c0_i32_0 = arith.constant 0 : i32
    %c0_i32_1 = arith.constant 0 : i32
    %c0_i32_2 = arith.constant 0 : i32
    return %c0_i32, %c0_i32_0, %c0_i32_1 : i32, i32, i32
  }
  func.func @transform_6(%arg0: i32) -> (i32, i32, i32) {
    %c0_i32 = arith.constant 0 : i32
    %c0_i32_0 = arith.constant 0 : i32
    %c0_i32_1 = arith.constant 0 : i32
    %c0_i32_2 = arith.constant 0 : i32
    return %c0_i32, %c0_i32_0, %c0_i32_1 : i32, i32, i32
  }
  func.func @transform_7(%arg0: i32) -> (i32, i32, i32) {
    %c0_i32 = arith.constant 0 : i32
    %c0_i32_0 = arith.constant 0 : i32
    %c0_i32_1 = arith.constant 0 : i32
    %c0_i32_2 = arith.constant 0 : i32
    return %c0_i32, %c0_i32_0, %c0_i32_1 : i32, i32, i32
  }
  func.func @transform_8(%arg0: i32) -> (i32, i32, i32) {
    %c0_i32 = arith.constant 0 : i32
    %c0_i32_0 = arith.constant 0 : i32
    %c0_i32_1 = arith.constant 0 : i32
    %c0_i32_2 = arith.constant 0 : i32
    return %c0_i32, %c0_i32_0, %c0_i32_1 : i32, i32, i32
  }
  func.func @transform_9(%arg0: i32) -> (i32, i32, i32) {
    %c0_i32 = arith.constant 0 : i32
    %c0_i32_0 = arith.constant 0 : i32
    %c0_i32_1 = arith.constant 0 : i32
    %c0_i32_2 = arith.constant 0 : i32
    return %c0_i32, %c0_i32_0, %c0_i32_1 : i32, i32, i32
  }
  func.func @transform_10(%arg0: i32) -> (i32, i32) {
    %c0_i32 = arith.constant 0 : i32
    %c0_i32_0 = arith.constant 0 : i32
    %c0_i32_1 = arith.constant 0 : i32
    return %c0_i32, %c0_i32_0 : i32, i32
  }
  func.func @transform_11(%arg0: i32) -> (i32, i32) {
    %c0_i32 = arith.constant 0 : i32
    %c0_i32_0 = arith.constant 0 : i32
    %c0_i32_1 = arith.constant 0 : i32
    return %c0_i32, %c0_i32_0 : i32, i32
  }
  func.func @transform_12(%arg0: i32) -> (i32, i32) {
    %c0_i32 = arith.constant 0 : i32
    %c0_i32_0 = arith.constant 0 : i32
    %c0_i32_1 = arith.constant 0 : i32
    return %c0_i32, %c0_i32_0 : i32, i32
  }
  func.func @transform_13(%arg0: i32) -> (i32, i32) {
    %c0_i32 = arith.constant 0 : i32
    %c0_i32_0 = arith.constant 0 : i32
    %c0_i32_1 = arith.constant 0 : i32
    return %c0_i32, %c0_i32_0 : i32, i32
  }
}

</mosaic_0001>

<bundles_post_ra>
// kernel: vit_forward.1
= control target key start
LH: loop header
LB: loop body
LE: loop exit
PB: predicated region body
PF: predicated region fallthrough
CT: control target
= control target key end

     0   :  { %vm221_vm0 = vcmask 1040384   ;;  %vm231_vm1 = vcmask 1044480   ;;  %vm234_vm2 = vcmask 261120   ;;  %vm238_vm3 = vcmask 254976   ;;  %s3611_s17 = smov 96   ;;  %s3612_s18 = smov 88   ;;  %s4382_s2 = inlined_call_operand.vmem [shape: bf16[256,32], index: 2, kind: input, shape index: {}]   ;;  %s4383_s0 = inlined_call_operand.vmem [shape: f32[8,256], index: 0, kind: input, shape index: {}]   ;;  %s4384_s1 = inlined_call_operand.vmem [shape: f32[5,32], index: 1, kind: input, shape index: {}]   ;;  %s4385_s3 = inlined_call_operand.vmem [shape: bf16[2,32,96], index: 3, kind: input, shape index: {}]   ;;  %s4386_s9 = inlined_call_operand.vmem [shape: f32[2,8,32], index: 9, kind: input, shape index: {}]   ;;  %s4387_s4 = inlined_call_operand.vmem [shape: f32[2,1,96], index: 4, kind: input, shape index: {}]   ;;  %s4388_s5 = inlined_call_operand.vmem [shape: bf16[2,32,32], index: 5, kind: input, shape index: {}]   ;;  %s4389_s6 = inlined_call_operand.vmem [shape: bf16[2,32,64], index: 6, kind: input, shape index: {}]   ;;  %s4390_s8 = inlined_call_operand.vmem [shape: bf16[2,64,32], index: 8, kind: input, shape index: {}]   ;;  %s4391_s7 = inlined_call_operand.vmem [shape: f32[2,1,64], index: 7, kind: input, shape index: {}]   ;;  %s4392_s11 = inlined_call_operand.vmem [shape: bf16[32,128], index: 11, kind: input, shape index: {}]   ;;  %s4393_s10 = inlined_call_operand.vmem [shape: f32[2,32], index: 10, kind: input, shape index: {}]   ;;  %s4394_s12 = inlined_call_operand.vmem [shape: f32[1,128], index: 12, kind: input, shape index: {}]   ;;  %s4395_s13 = inlined_call_operand.vmem [shape: f32[8,128], index: 13, kind: output, shape index: {}]  }
   0x1   :  { %v3480_v0 = vld [vmem:[%s4382_s2 + $0x40] sm:$0xff]   ;;  %v3482_v2 = vld [vmem:[%s4382_s2 + $0x48] sm:$0xff]   ;;  %v3484_v4 = vld [vmem:[%s4382_s2 + $0x50] sm:$0xff]   ;;  %v3609_v47 = vmov 0.0   ;;  %vm3610_vm4 = vmmov 0   ;;  %v263_v53 = vlaneseq  ;;  %s3613_s19 = smov 80  }
   0x2   :  { %v3481_v1 = vld [vmem:[%s4382_s2] sm:$0xff]   ;;  %3054 = vmatprep.subr.bf16.mxu0 %v3480_v0  ;;  %v3483_v3 = vld [vmem:[%s4382_s2 + $0x8] sm:$0xff]   ;;  %v3485_v5 = vld [vmem:[%s4382_s2 + $0x10] sm:$0xff]   ;;  %3171 = vmatprep.subr.bf16.mxu1 %v3609_v47  ;;  %s3614_s20 = smov 72   ;;  %s3615_s21 = smov 120   ;;  %vm347_vm5 = vcmask 64512  }
   0x3   :  { %3055 = vmatpush3.bf16.msra.mxu0 %v3481_v1  ;;  %v3486_v6 = vld [vmem:[%s4382_s2 + $0x58] sm:$0xff]   ;;  %v3488_v8 = vld [vmem:[%s4382_s2 + $0x60] sm:$0xff]   ;;  %v3490_v10 = vld [vmem:[%s4382_s2 + $0x68] sm:$0xff]   ;;  %3175 = vmatprep.mubr.msk.bf16.mxu1 %vm3610_vm4, %v3609_v47  ;;  %v3783_v56 = vshrl.u32 %v263_v53, 7  ;;  %s3616_s22 = smov 112   ;;  %s3617_s23 = smov 104  }
   0x4   :  { %3056 = vmatprep.subr.bf16.mxu0 %v3482_v2  ;;  %v3487_v7 = vld [vmem:[%s4382_s2 + $0x18] sm:$0xff]   ;;  %v3489_v9 = vld [vmem:[%s4382_s2 + $0x20] sm:$0xff]   ;;  %v46_v11 = vld [vmem:[%s4383_s0 + $0x8] sm:$0xff]  ;;  %vm394_vm6 = vcmask 36864   ;;  %s3618_s24 = smov 64   ;;  %vm413_vm7 = vcmask 1041408  }
   0x5   :  { %v48_v12 = vpack.c.bf16 %v46_v11, %v46_v11  ;;  %v3491_v13 = vld [vmem:[%s4382_s2 + $0x28] sm:$0xff]   ;;  %v3492_v14 = vld [vmem:[%s4382_s2 + $0x70] sm:$0xff]   ;;  %v3494_v16 = vld [vmem:[%s4382_s2 + $0x78] sm:$0xff]   ;;  %v3786_v57 = vsub.s32 0, %v3783_v56  ;;  %v3796_v62 = vsub.s32 1, %v3783_v56  ;;  %vm414_vm8 = vcmask 1042432  }
   0x6   :  { %v3493_v15 = vld [vmem:[%s4382_s2 + $0x30] sm:$0xff]   ;;  %v3495_v17 = vld [vmem:[%s4382_s2 + $0x38] sm:$0xff]   ;;  %v45_v18 = vld [vmem:[%s4383_s0] sm:$0xff]  ;;  %vm409_vm9 = vcmask 39936   ;;  %s3620_s25 = smov 48   ;;  %s3621_s26 = smov 56  }
   0x7   :  { %3057 = vmatpush3.bf16.msra.mxu0 %v3483_v3  ;;  %209 = vmatprep.mubr.bf16.mxu0 %v48_v12  ;;  %v47_v19 = vpack.c.bf16 %v45_v18, %v45_v18  ;;  %v217_v25 = vld [vmem:[%s4384_s1] sm:$0x1f]  ;;  %v3497_v48 = vld [vmem:[%s4385_s3 + $0x8] sm:$0xff]   ;;  %s3622_s27 = smov 40   ;;  %s3623_s28 = smov 8   ;;  %vm803_vm10 = vcmask 130048  }
   0x8   :  { %3058 = vmatprep.subr.bf16.mxu0 %v3484_v4  ;;  %v3496_v46 = vld [vmem:[%s4385_s3] sm:$0xff]   ;;  %s3624_s30 = smov 16   ;;  %s4396_s14 = smov 24   ;;  %vm805_vm11 = vcmask 195584   ;;  %vm1491_vm12 = vcmask 523264  }
   0x9   :  { %3172 = vmatpush3.bf16.msra.mxu1 %v3496_v46  ;;  %v3791_v58 = vld [vmem:[%s4386_s9] sm:$0xff] }
   0xa   :  { %3173 = vmatprep.subr.bf16.mxu1 %v3609_v47  ;;  %v266_v61 = vrot.slane %v3791_v58, %v3786_v57  ;;  %v272_v2 = vrot.slane %v3791_v58, %v3796_v62 }
   0xb   :  { %3059 = vmatpush3.bf16.msra.mxu0 %v3485_v5 }
   0xc   :  { %3060 = vmatprep.subr.bf16.mxu0 %v3486_v6 }
   0xd   :  { %3174 = vmatpush3.bf16.msra.mxu1 %v3497_v48 }
   0xe   :  { %3179 = vmatprep.subr.bf16.mxu1 %v3609_v47 }
   0xf   :  { %3061 = vmatpush3.bf16.msra.mxu0 %v3487_v7  ;;  %v2963_v7 = vld [vmem:[%s4387_s4] ss:$0 sm:$0xff] }
  0x10   :  { %3062 = vmatprep.subr.bf16.mxu0 %v3488_v8 }
  0x13   :  { %3063 = vmatpush3.bf16.msra.mxu0 %v3489_v9 }
  0x14   :  { %3064 = vmatprep.subr.bf16.mxu0 %v3490_v10 }
  0x17   :  { %3065 = vmatpush3.bf16.msra.mxu0 %v3491_v13 }
  0x18   :  { %3066 = vmatprep.subr.bf16.mxu0 %v3492_v14 }
  0x1b   :  { %3067 = vmatpush3.bf16.msra.mxu0 %v3493_v15 }
  0x1c   :  { %3068 = vmatprep.subr.bf16.mxu0 %v3494_v16 }
  0x1f   :  { %3069 = vmatpush3.bf16.msra.mxu0 %v3495_v17 }
  0x20   :  { %3197 = vmatprep.subr.bf16.mxu0 %v3609_v47 }
  0x22   :  { %210 = vmatmul.mubr.bf16.vlgmr.msra.gmra.mrb[0].mxu0 %v47_v19 }
  0x23   :  { %3199 = vmatprep.mubr.msk.bf16.mxu0 %vm3610_vm4, %v3609_v47 }
  0xf5   :  { %v3070_v20 = vpop.f32.mrb[0].mxu0 }
  0xf6   :  { %v3071_v21 = vpop.f32.mrb[1].mxu0 }
  0xf7   :  { %v3072_v22 = vadd.f32 %v3071_v21, %v3070_v20  ;;  %v3073_v23 = vpop.f32.mrb[2].mxu0 }
  0xf8   :  { %v3074_v24 = vpop.f32.mrb[3].mxu0 }
  0xf9   :  { %v219_v26 = vrot.slane %v3072_v22, 7  ;;  %v224_v27 = vrot.slane %v3072_v22, 3 }
  0xfb   :  { %v222_v28 = vsel %vm221_vm0, 0.0, %v219_v26  ;;  %v226_v29 = vsel %vm221_vm0, 0.0, %v224_v27 }
  0xfc   :  { %v227_v30 = vadd.f32 %v226_v29, %v217_v25  ;;  %v223_v31 = vadd.f32 %v222_v28, %v217_v25 }
  0xfe   :  { %v3755_v32 = vrot.slane %v227_v30, 3 }
 0x100   :  { %v3759_v33 = vsel %vm231_vm1, %v223_v31, %v3755_v32  ;;  %v239_v35 = vsel %vm238_vm3, %v3755_v32, 0.0 }
 0x101   :  { %v235_v34 = vsel %vm234_vm2, %v3759_v33, 0.0 }
 0x102   :  { %236 = vadd.xlane.f32.xlu0 %v235_v34 }
 0x106   :  { %240 = vadd.xlane.f32.xlu0 %v239_v35  ;;  %v3619_v35 = vmov 65535  }
 0x18f   :  { %v237_v36 = vpop.xlane.xlu0 %236 }
 0x190   :  { %v243_v37 = vmul.f32 0.03125, %v237_v36  ;;  %v415_v36 = vsel %vm413_vm7, 4294967295, %v3619_v35 }
 0x192   :  { %v245_v38 = vsub.f32 %v3759_v33, %v243_v37 }
 0x193   :  { %v241_v39 = vpop.xlane.xlu0 %240 }
 0x194   :  { %v244_v40 = vmul.f32 0.03125, %v241_v39  ;;  %v247_v41 = vmul.f32 %v245_v38, %v245_v38 }
 0x196   :  { %v246_v42 = vsub.f32 %v3755_v32, %v244_v40  ;;  %v249_v43 = vsel %vm234_vm2, %v247_v41, 0.0 }
 0x197   :  { %250 = vadd.xlane.f32.xlu1 %v249_v43 }
 0x198   :  { %v248_v44 = vmul.f32 %v246_v42, %v246_v42 }
 0x19a   :  { %v252_v45 = vsel %vm238_vm3, %v248_v44, 0.0 }
 0x19b   :  { %253 = vadd.xlane.f32.xlu1 %v252_v45 }
 0x224   :  { %v251_v49 = vpop.xlane.xlu1 %250 }
 0x225   :  { %v255_v50 = vmul.f32 0.03125, %v251_v49 }
 0x227   :  { %v257_v51 = vadd.f32 1e-12, %v255_v50 }
 0x228   :  { %v254_v52 = vpop.xlane.xlu1 %253 }
 0x229   :  { %3518 = vrsqrt.f32 %v257_v51  ;;  %v256_v54 = vmul.f32 0.03125, %v254_v52 }
 0x22b   :  { %v258_v55 = vadd.f32 1e-12, %v256_v54 }
 0x22d   :  { %3520 = vrsqrt.f32 %v258_v55 }
 0x233   :  { %v3519_v59 = vpop.eup %3518 }
 0x234   :  { %v261_v60 = vmul.f32 %v3519_v59, %v245_v38  ;;  %v3849_v38 = vsel %vm414_vm8, %v415_v36, 0 }
 0x236   :  { %v267_v1 = vmul.f32 %v266_v61, %v261_v60 }
 0x237   :  { %v3521_v63 = vpop.eup %3520 }
 0x238   :  { %v262_v0 = vmul.f32 %v3521_v63, %v246_v42  ;;  %v273_v4 = vadd.f32 %v272_v2, %v267_v1 }
 0x23a   :  { %v268_v3 = vmul.f32 %v266_v61, %v262_v0 }
 0x23c   :  { %v274_v5 = vadd.f32 %v272_v2, %v268_v3 }
 0x23e   :  { %v275_v6 = vpack.c.bf16 %v274_v5, %v273_v4 }
 0x240   :  { %3176 = vmatmul.mubr.msk.bf16.vlgmr.msra.gmra.mrb[0].mxu1 %vm234_vm2, %v275_v6 }
 0x241   :  { %3181 = vmatprep.mubr.msk.bf16.mxu1 %vm3610_vm4, %v3609_v47 }
 0x313   :  { %v336_v8 = vpop.f32.mrb[0].mxu1 }
 0x314   :  { %v337_v9 = vadd.f32 %v2963_v7, %v336_v8  ;;  %v3177_v10 = vpop.f32.mrb[1].mxu1 }
 0x315   :  { %v339_v11 = vpop.f32.mrb[2].mxu1 }
 0x316   :  { %v3806_v12 = vpack.c.bf16 %v337_v9, %v337_v9  ;;  %v340_v13 = vadd.f32 %v2963_v7, %v339_v11  ;;  %v3178_v14 = vpop.f32.mrb[3].mxu1 }
 0x318   :  { %v807_v15 = vpack.c.bf16 %v340_v13, %v337_v9  ;;  %345 = vrot.lane.b32.xlu0 %v3806_v12, %s3611_s17 }
 0x31a   :  { %v809_v16 = vshrl.u32 %v807_v15, 16  ;;  %v812_v17 = vshll.u32 %v807_v15, 16 }
 0x31c   :  { %462 = vrot.lane.b32.xlu0 %v3806_v12, %s3612_s18  ;;  %v811_v18 = vrot.slane %v809_v16, 2  ;;  %v814_v19 = vrot.slane %v812_v17, 3 }
 0x31e   :  { %v3816_v20 = vor.u32 %v814_v19, %v811_v18 }
 0x320   :  { %572 = vrot.lane.b32.xlu0 %v3806_v12, %s3613_s19 }
 0x324   :  { %682 = vrot.lane.b32.xlu0 %v3806_v12, %s3614_s20 }
 0x328   :  { %816 = vrot.lane.b32.xlu0 %v3816_v20, %s3611_s17 }
 0x32c   :  { %924 = vrot.lane.b32.xlu0 %v3816_v20, %s3615_s21 }
 0x330   :  { %1034 = vrot.lane.b32.xlu0 %v3816_v20, %s3616_s22 }
 0x334   :  { %1144 = vrot.lane.b32.xlu0 %v3816_v20, %s3617_s23 }
 0x38a   :  { %v346_v21 = vpop.permute.xlu0 %345 }
 0x38b   :  { %v352_v22 = vsel %vm347_vm5, %v346_v21, 0 }
 0x38c   :  { %3180 = vmatpush3.bf16.xpose.msra.mxu1 %v352_v22 }
 0x38d   :  { %3185 = vmatprep.subr.bf16.mxu1 %v3609_v47 }
 0x38e   :  { %v463_v43 = vpop.permute.xlu0 %462 }
 0x38f   :  { %v468_v45 = vsel %vm347_vm5, %v463_v43, 0 }
 0x392   :  { %v573_v46 = vpop.permute.xlu0 %572 }
 0x393   :  { %3182 = vmatmul.mubr.msk.bf16.vlgmr.msra.gmra.mrb[4].mxu1 %vm347_vm5, %v3806_v12  ;;  %v578_v49 = vsel %vm347_vm5, %v573_v46, 0 }
 0x394   :  { %3187 = vmatprep.mubr.msk.bf16.mxu1 %vm3610_vm4, %v3609_v47 }
 0x396   :  { %v683_v50 = vpop.permute.xlu0 %682 }
 0x397   :  { %v688_v52 = vsel %vm347_vm5, %v683_v50, 0 }
 0x39a   :  { %v817_v53 = vpop.permute.xlu0 %816 }
 0x39b   :  { %v822_v55 = vsel %vm347_vm5, %v817_v53, 0 }
 0x39e   :  { %v925_v63 = vpop.permute.xlu0 %924 }
 0x3a2   :  { %v1035_v2 = vpop.permute.xlu0 %1034 }
 0x3a6   :  { %v1145_v4 = vpop.permute.xlu0 %1144 }
 0x466   :  { %v388_v23 = vpop.f32.mrb[4].mxu1 }
 0x467   :  { %v3183_v24 = vpop.f32.mrb[5].mxu1  ;;  %v395_v25 = vsel %vm394_vm6, %v388_v23, -inf }
 0x468   :  { %396 = vmax.xlane.f32.xlu1 %v395_v25  ;;  %v391_v26 = vpop.f32.mrb[6].mxu1 }
 0x469   :  { %v3184_v27 = vpop.f32.mrb[7].mxu1 }
 0x4f5   :  { %v397_v28 = vpop.xlane.xlu1 %396 }
 0x4f6   :  { %v398_v29 = vsub.f32 %v388_v23, %v397_v28 }
 0x4f8   :  { %v399_v30 = vmul.f32 1.442695, %v398_v29 }
 0x4fa   :  { %3522 = vpow2.f32 %v399_v30 }
 0x504   :  { %v3523_v31 = vpop.eup %3522 }
 0x505   :  { %v401_v34 = vsel %vm394_vm6, %v3523_v31, 0.0 }
 0x506   :  { %402 = vadd.xlane.f32.xlu1 %v401_v34 }
 0x517   :  { %407 = vrot.lane.b32.xlu1 %v3806_v12, %s3618_s24 }
 0x51b   :  { %460 = vrot.lane.b32.xlu1 %v3806_v12, %s3615_s21 }
 0x51f   :  { %570 = vrot.lane.b32.xlu1 %v3806_v12, %s3616_s22 }
 0x523   :  { %680 = vrot.lane.b32.xlu1 %v3806_v12, %s3617_s23 }
 0x527   :  { %926 = vrot.lane.b32.xlu1 %v3816_v20, %s3612_s18 }
 0x52b   :  { %1036 = vrot.lane.b32.xlu1 %v3816_v20, %s3613_s19 }
 0x52f   :  { %1146 = vrot.lane.b32.xlu1 %v3816_v20, %s3614_s20 }
 0x593   :  { %v403_v37 = vpop.xlane.xlu1 %402 }
 0x594   :  { %3524 = vrcp.f32 %v403_v37 }
 0x597   :  { %v408_v39 = vpop.permute.xlu1 %407 }
 0x598   :  { %v418_v40 = vand.u32 %v3849_v38, %v408_v39 }
 0x59a   :  { %3186 = vmatpush3.bf16.msra.mxu1 %v418_v40 }
 0x59b   :  { %3191 = vmatprep.subr.bf16.mxu1 %v3609_v47  ;;  %v461_v48 = vpop.permute.xlu1 %460 }
 0x59e   :  { %v3525_v41 = vpop.eup %3524 }
 0x59f   :  { %v405_v42 = vmul.f32 %v3525_v41, %v3523_v31  ;;  %v571_v51 = vpop.permute.xlu1 %570 }
 0x5a1   :  { %v406_v44 = vpack.c.bf16 %v405_v42, %v405_v42 }
 0x5a3   :  { %3188 = vmatmul.mubr.msk.bf16.vlgmr.msra.gmra.mrb[8].mxu1 %vm409_vm9, %v406_v44  ;;  %v681_v54 = vpop.permute.xlu1 %680 }
 0x5a4   :  { %3192 = vmatpush3.bf16.xpose.msra.mxu1 %v468_v45  ;;  %3193 = vmatprep.mubr.msk.bf16.mxu1 %vm3610_vm4, %v3609_v47 }
 0x5a5   :  { %3203 = vmatprep.subr.bf16.mxu1 %v3609_v47 }
 0x5a7   :  { %v927_v59 = vpop.permute.xlu1 %926 }
 0x5a8   :  { %v932_v60 = vsel %vm347_vm5, %v927_v59, 0 }
 0x5ab   :  { %3194 = vmatmul.mubr.msk.bf16.vlgmr.msra.gmra.mrb[12].mxu1 %vm347_vm5, %v461_v48  ;;  %v1037_v61 = vpop.permute.xlu1 %1036 }
 0x5ac   :  { %3204 = vmatpush3.bf16.xpose.msra.mxu1 %v578_v49  ;;  %3205 = vmatprep.mubr.msk.bf16.mxu1 %vm3610_vm4, %v3609_v47  ;;  %v1042_v0 = vsel %vm347_vm5, %v1037_v61, 0 }
 0x5ad   :  { %3215 = vmatprep.subr.bf16.mxu1 %v3609_v47 }
 0x5af   :  { %v1147_v1 = vpop.permute.xlu1 %1146 }
 0x5b0   :  { %v1152_v3 = vsel %vm347_vm5, %v1147_v1, 0 }
 0x5b3   :  { %3206 = vmatmul.mubr.msk.bf16.vlgmr.msra.gmra.mrb[16].mxu1 %vm347_vm5, %v571_v51 }
 0x5b4   :  { %3216 = vmatpush3.bf16.xpose.msra.mxu1 %v688_v52  ;;  %3217 = vmatprep.mubr.msk.bf16.mxu1 %vm3610_vm4, %v3609_v47 }
 0x5b5   :  { %3227 = vmatprep.subr.bf16.mxu1 %v3609_v47 }
 0x5bb   :  { %3218 = vmatmul.mubr.msk.bf16.vlgmr.msra.gmra.mrb[20].mxu1 %vm347_vm5, %v681_v54 }
 0x5bc   :  { %3228 = vmatpush3.bf16.xpose.msra.mxu1 %v822_v55  ;;  %3229 = vmatprep.mubr.msk.bf16.mxu1 %vm3610_vm4, %v3609_v47 }
 0x5bd   :  { %3239 = vmatprep.subr.bf16.mxu1 %v3609_v47 }
 0x5c3   :  { %3230 = vmatmul.mubr.msk.bf16.vlgmr.msra.gmra.mrb[24].mxu1 %vm347_vm5, %v3816_v20 }
 0x5c4   :  { %3240 = vmatpush3.bf16.xpose.msra.mxu1 %v932_v60  ;;  %3241 = vmatprep.mubr.msk.bf16.mxu1 %vm3610_vm4, %v3609_v47 }
 0x5c5   :  { %3251 = vmatprep.subr.bf16.mxu1 %v3609_v47 }
 0x5cb   :  { %3242 = vmatmul.mubr.msk.bf16.vlgmr.msra.gmra.mrb[28].mxu1 %vm347_vm5, %v925_v63 }
 0x5cc   :  { %3252 = vmatpush3.bf16.xpose.msra.mxu1 %v1042_v0  ;;  %3253 = vmatprep.mubr.msk.bf16.mxu1 %vm3610_vm4, %v3609_v47 }
 0x5cd   :  { %3263 = vmatprep.subr.bf16.mxu1 %v3609_v47 }
 0x5d3   :  { %3254 = vmatmul.mubr.msk.bf16.vlgmr.msra.gmra.mrb[32].mxu1 %vm347_vm5, %v1035_v2 }
 0x5d4   :  { %3264 = vmatpush3.bf16.xpose.msra.mxu1 %v1152_v3  ;;  %3265 = vmatprep.mubr.msk.bf16.mxu1 %vm3610_vm4, %v3609_v47 }
 0x5d5   :  { %3275 = vmatprep.subr.bf16.mxu1 %v3609_v47 }
 0x5db   :  { %3266 = vmatmul.mubr.msk.bf16.vlgmr.msra.gmra.mrb[36].mxu1 %vm347_vm5, %v1145_v4 }
 0x5dc   :  { %3279 = vmatprep.mubr.msk.bf16.mxu1 %vm3610_vm4, %v3609_v47 }
 0x676   :  { %v3892_v5 = vpop.f32.mrb[8].mxu1 }
 0x677   :  { %v3189_v6 = vpop.f32.mrb[9].mxu1 }
 0x678   :  { %v457_v7 = vpop.f32.mrb[10].mxu1 }
 0x679   :  { %v3190_v8 = vpop.f32.mrb[11].mxu1 }
 0x67e   :  { %v504_v9 = vpop.f32.mrb[12].mxu1 }
 0x67f   :  { %v3195_v10 = vpop.f32.mrb[13].mxu1  ;;  %v510_v11 = vsel %vm394_vm6, %v504_v9, -inf }
 0x680   :  { %511 = vmax.xlane.f32.xlu1 %v510_v11  ;;  %v507_v13 = vpop.f32.mrb[14].mxu1 }
 0x681   :  { %v3196_v14 = vpop.f32.mrb[15].mxu1 }
 0x686   :  { %v614_v15 = vpop.f32.mrb[16].mxu1 }
 0x687   :  { %v3207_v16 = vpop.f32.mrb[17].mxu1  ;;  %v620_v17 = vsel %vm394_vm6, %v614_v15, -inf }
 0x688   :  { %621 = vmax.xlane.f32.xlu0 %v620_v17  ;;  %v617_v18 = vpop.f32.mrb[18].mxu1 }
 0x689   :  { %v3208_v19 = vpop.f32.mrb[19].mxu1 }
 0x68e   :  { %v724_v21 = vpop.f32.mrb[20].mxu1 }
 0x68f   :  { %v3219_v22 = vpop.f32.mrb[21].mxu1  ;;  %v730_v23 = vsel %vm394_vm6, %v724_v21, -inf }
 0x690   :  { %731 = vmax.xlane.f32.xlu0 %v730_v23  ;;  %v727_v24 = vpop.f32.mrb[22].mxu1 }
 0x691   :  { %v3220_v25 = vpop.f32.mrb[23].mxu1 }
 0x696   :  { %v858_v26 = vpop.f32.mrb[24].mxu1 }
 0x697   :  { %v3231_v27 = vpop.f32.mrb[25].mxu1  ;;  %v864_v28 = vsel %vm394_vm6, %v858_v26, -inf }
 0x698   :  { %865 = vmax.xlane.f32.xlu0 %v864_v28  ;;  %v861_v29 = vpop.f32.mrb[26].mxu1 }
 0x699   :  { %v3232_v30 = vpop.f32.mrb[27].mxu1 }
 0x69e   :  { %v968_v31 = vpop.f32.mrb[28].mxu1 }
 0x69f   :  { %v3243_v34 = vpop.f32.mrb[29].mxu1  ;;  %v974_v35 = vsel %vm394_vm6, %v968_v31, -inf }
 0x6a0   :  { %975 = vmax.xlane.f32.xlu1 %v974_v35  ;;  %v971_v36 = vpop.f32.mrb[30].mxu1 }
 0x6a1   :  { %v3244_v37 = vpop.f32.mrb[31].mxu1 }
 0x6a6   :  { %v1078_v39 = vpop.f32.mrb[32].mxu1 }
 0x6a7   :  { %v3255_v40 = vpop.f32.mrb[33].mxu1  ;;  %v1084_v41 = vsel %vm394_vm6, %v1078_v39, -inf }
 0x6a8   :  { %1085 = vmax.xlane.f32.xlu0 %v1084_v41  ;;  %v1081_v42 = vpop.f32.mrb[34].mxu1 }
 0x6a9   :  { %v3256_v43 = vpop.f32.mrb[35].mxu1 }
 0x6ae   :  { %v1188_v44 = vpop.f32.mrb[36].mxu1 }
 0x6af   :  { %v3267_v45 = vpop.f32.mrb[37].mxu1  ;;  %v1194_v46 = vsel %vm394_vm6, %v1188_v44, -inf }
 0x6b0   :  { %1195 = vmax.xlane.f32.xlu1 %v1194_v46  ;;  %v1191_v48 = vpop.f32.mrb[38].mxu1 }
 0x6b1   :  { %v3268_v49 = vpop.f32.mrb[39].mxu1 }
 0x6be   :  { %632 = vrot.lane.b32.xlu0 %v3806_v12, %s3620_s25 }
 0x6c1   :  { %522 = vrot.lane.b32.xlu1 %v3806_v12, %s3621_s26 }
 0x70d   :  { %v512_v50 = vpop.xlane.xlu1 %511 }
 0x70e   :  { %v513_v51 = vsub.f32 %v504_v9, %v512_v50 }
 0x710   :  { %v514_v52 = vmul.f32 1.442695, %v513_v51 }
 0x712   :  { %3526 = vpow2.f32 %v514_v52 }
 0x715   :  { %v622_v53 = vpop.xlane.xlu0 %621 }
 0x716   :  { %v623_v54 = vsub.f32 %v614_v15, %v622_v53 }
 0x718   :  { %v624_v55 = vmul.f32 1.442695, %v623_v54 }
 0x71a   :  { %3528 = vpow2.f32 %v624_v55 }
 0x71c   :  { %v3527_v59 = vpop.eup %3526 }
 0x71d   :  { %v516_v60 = vsel %vm394_vm6, %v3527_v59, 0.0  ;;  %v732_v1 = vpop.xlane.xlu0 %731 }
 0x71e   :  { %517 = vadd.xlane.f32.xlu0 %v516_v60  ;;  %v733_v2 = vsub.f32 %v724_v21, %v732_v1 }
 0x720   :  { %v734_v6 = vmul.f32 1.442695, %v733_v2 }
 0x722   :  { %3530 = vpow2.f32 %v734_v6 }
 0x724   :  { %v3906_v61 = vpop.eup %3528 }
 0x725   :  { %v626_v63 = vsel %vm394_vm6, %v3906_v61, 0.0  ;;  %v866_v4 = vpop.xlane.xlu0 %865 }
 0x726   :  { %627 = vadd.xlane.f32.xlu1 %v626_v63  ;;  %v867_v7 = vsub.f32 %v858_v26, %v866_v4 }
 0x728   :  { %v868_v13 = vmul.f32 1.442695, %v867_v7 }
 0x72a   :  { %3532 = vpow2.f32 %v868_v13 }
 0x72c   :  { %v3531_v18 = vpop.eup %3530 }
 0x72d   :  { %v976_v0 = vpop.xlane.xlu1 %975  ;;  %v736_v19 = vsel %vm394_vm6, %v3531_v18, 0.0 }
 0x72e   :  { %v977_v11 = vsub.f32 %v968_v31, %v976_v0 }
 0x734   :  { %742 = vrot.lane.b32.xlu0 %v3806_v12, %s3622_s27  ;;  %v978_v12 = vmul.f32 1.442695, %v977_v11  ;;  %v3533_v21 = vpop.eup %3532 }
 0x735   :  { %v1086_v9 = vpop.xlane.xlu0 %1085  ;;  %v870_v23 = vsel %vm394_vm6, %v3533_v21, 0.0 }
 0x736   :  { %v1087_v14 = vsub.f32 %v1078_v39, %v1086_v9  ;;  %3534 = vpow2.f32 %v978_v12 }
 0x737   :  { %876 = vrot.lane.b32.xlu1 %v3816_v20, %s3618_s24 }
 0x738   :  { %v1088_v15 = vmul.f32 1.442695, %v1087_v14 }
 0x739   :  { %v633_v29 = vpop.permute.xlu0 %632 }
 0x73a   :  { %3536 = vpow2.f32 %v1088_v15  ;;  %v638_v37 = vand.u32 %v633_v29, %v3849_v38 }
 0x73d   :  { %v1196_v3 = vpop.xlane.xlu1 %1195 }
 0x73e   :  { %v1197_v16 = vsub.f32 %v1188_v44, %v1196_v3 }
 0x740   :  { %v1198_v17 = vmul.f32 1.442695, %v1197_v16  ;;  %v3917_v22 = vpop.eup %3534 }
 0x741   :  { %v523_v8 = vpop.permute.xlu1 %522  ;;  %v980_v26 = vsel %vm394_vm6, %v3917_v22, 0.0 }
 0x742   :  { %v528_v10 = vand.u32 %v523_v8, %v3849_v38  ;;  %3538 = vpow2.f32 %v1198_v17 }
 0x744   :  { %3198 = vmatpush3.bf16.msra.mxu0 %v528_v10  ;;  %v3920_v24 = vpop.eup %3536 }
 0x745   :  { %3209 = vmatprep.subr.bf16.mxu0 %v3609_v47  ;;  %v1090_v25 = vsel %vm394_vm6, %v3920_v24, 0.0 }
 0x74c   :  { %v3926_v27 = vpop.eup %3538 }
 0x74d   :  { %v1200_v28 = vsel %vm394_vm6, %v3926_v27, 0.0 }
 0x753   :  { %737 = vadd.xlane.f32.xlu0 %v736_v19 }
 0x757   :  { %871 = vadd.xlane.f32.xlu0 %v870_v23 }
 0x75b   :  { %1091 = vadd.xlane.f32.xlu0 %v1090_v25  ;;  %981 = vadd.xlane.f32.xlu1 %v980_v26 }
 0x75f   :  { %1201 = vadd.xlane.f32.xlu0 %v1200_v28 }
 0x76c   :  { %1096 = vrot.lane.b32.xlu1 %v3816_v20, %s3620_s25 }
 0x770   :  { %1206 = vrot.lane.b32.xlu1 %v3816_v20, %s3622_s27 }
 0x775   :  { %986 = vrot.lane.b32.xlu0 %v3816_v20, %s3621_s26 }
 0x7ab   :  { %v518_v30 = vpop.xlane.xlu0 %517 }
 0x7ac   :  { %3540 = vrcp.f32 %v518_v30 }
 0x7af   :  { %v743_v20 = vpop.permute.xlu0 %742 }
 0x7b0   :  { %v748_v42 = vand.u32 %v743_v20, %v3849_v38  ;;  %v3499_v20 = vld [vmem:[%s4388_s5 + $0x8] sm:$0xff]  }
 0x7b3   :  { %v628_v31 = vpop.xlane.xlu1 %627 }
 0x7b4   :  { %3542 = vrcp.f32 %v628_v31 }
 0x7b6   :  { %v3541_v34 = vpop.eup %3540 }
 0x7b7   :  { %v520_v35 = vmul.f32 %v3541_v34, %v3527_v59  ;;  %v877_v45 = vpop.permute.xlu1 %876 }
 0x7b8   :  { %v882_v54 = vand.u32 %v877_v45, %v3849_v38 }
 0x7b9   :  { %v521_v36 = vpack.c.bf16 %v520_v35, %v520_v35 }
 0x7bb   :  { %3200 = vmatmul.mubr.msk.bf16.vlgmr.msra.gmra.mrb[4].mxu0 %vm409_vm9, %v521_v36 }
 0x7bc   :  { %3210 = vmatpush3.bf16.msra.mxu0 %v638_v37  ;;  %3211 = vmatprep.mubr.msk.bf16.mxu0 %vm3610_vm4, %v3609_v47  ;;  %v3498_v37 = vld [vmem:[%s4388_s5] sm:$0xff]  }
 0x7bd   :  { %3221 = vmatprep.subr.bf16.mxu0 %v3609_v47  ;;  %3276 = vmatpush3.bf16.msra.mxu1 %v3498_v37  ;;  %v1370_v37 = vsub.s32 2, %v3783_v56 }
 0x7be   :  { %v3543_v39 = vpop.eup %3542  ;;  %3277 = vmatprep.subr.bf16.mxu1 %v3609_v47 }
 0x7bf   :  { %v630_v40 = vmul.f32 %v3543_v39, %v3906_v61 }
 0x7c1   :  { %v631_v41 = vpack.c.bf16 %v630_v40, %v630_v40  ;;  %3278 = vmatpush3.bf16.msra.mxu1 %v3499_v20  ;;  %v1371_v20 = vrot.slane %v3791_v58, %v1370_v37 }
 0x7c2   :  { %3291 = vmatprep.subr.bf16.mxu1 %v3609_v47 }
 0x7c3   :  { %3212 = vmatmul.mubr.msk.bf16.vlgmr.msra.gmra.mrb[8].mxu0 %vm409_vm9, %v631_v41 }
 0x7c4   :  { %3222 = vmatpush3.bf16.msra.mxu0 %v748_v42  ;;  %3223 = vmatprep.mubr.msk.bf16.mxu0 %vm3610_vm4, %v3609_v47 }
 0x7c5   :  { %3233 = vmatprep.subr.bf16.mxu0 %v3609_v47 }
 0x7e0   :  { %v738_v43 = vpop.xlane.xlu0 %737 }
 0x7e1   :  { %3544 = vrcp.f32 %v738_v43 }
 0x7e4   :  { %v872_v44 = vpop.xlane.xlu0 %871 }
 0x7e5   :  { %3546 = vrcp.f32 %v872_v44 }
 0x7e8   :  { %v1092_v46 = vpop.xlane.xlu0 %1091  ;;  %v982_v48 = vpop.xlane.xlu1 %981 }
 0x7e9   :  { %3548 = vrcp.f32 %v982_v48 }
 0x7ea   :  { %3550 = vrcp.f32 %v1092_v46 }
 0x7eb   :  { %v3545_v49 = vpop.eup %3544 }
 0x7ec   :  { %v740_v50 = vmul.f32 %v3545_v49, %v3531_v18  ;;  %v1202_v51 = vpop.xlane.xlu0 %1201  ;;  %v1097_v1 = vpop.permute.xlu1 %1096 }
 0x7ed   :  { %3552 = vrcp.f32 %v1202_v51  ;;  %v1102_v4 = vand.u32 %v1097_v1, %v3849_v38 }
 0x7ee   :  { %v741_v52 = vpack.c.bf16 %v740_v50, %v740_v50 }
 0x7ef   :  { %v3547_v53 = vpop.eup %3546 }
 0x7f0   :  { %3224 = vmatmul.mubr.msk.bf16.vlgmr.msra.gmra.mrb[12].mxu0 %vm409_vm9, %v741_v52  ;;  %v874_v55 = vmul.f32 %v3547_v53, %v3533_v21  ;;  %v987_v59 = vpop.permute.xlu0 %986  ;;  %v1207_v7 = vpop.permute.xlu1 %1206 }
 0x7f1   :  { %3234 = vmatpush3.bf16.msra.mxu0 %v882_v54  ;;  %3235 = vmatprep.mubr.msk.bf16.mxu0 %vm3610_vm4, %v3609_v47  ;;  %v992_v63 = vand.u32 %v987_v59, %v3849_v38  ;;  %v1212_v10 = vand.u32 %v1207_v7, %v3849_v38  ;;  %v1338_v7 = vsub.s32 4, %v3783_v56 }
 0x7f2   :  { %3245 = vmatprep.subr.bf16.mxu0 %v3609_v47  ;;  %v875_v60 = vpack.c.bf16 %v874_v55, %v874_v55 }
 0x7f3   :  { %v3549_v61 = vpop.eup %3548 }
 0x7f4   :  { %v984_v0 = vmul.f32 %v3549_v61, %v3917_v22  ;;  %v3551_v3 = vpop.eup %3550 }
 0x7f5   :  { %v1094_v6 = vmul.f32 %v3551_v3, %v3920_v24 }
 0x7f6   :  { %v985_v2 = vpack.c.bf16 %v984_v0, %v984_v0 }
 0x7f7   :  { %v1095_v8 = vpack.c.bf16 %v1094_v6, %v1094_v6  ;;  %v3553_v9 = vpop.eup %3552 }
 0x7f8   :  { %3236 = vmatmul.mubr.msk.bf16.vlgmr.msra.gmra.mrb[16].mxu0 %vm409_vm9, %v875_v60  ;;  %v1204_v11 = vmul.f32 %v3553_v9, %v3926_v27 }
 0x7f9   :  { %3246 = vmatpush3.bf16.msra.mxu0 %v992_v63  ;;  %3247 = vmatprep.mubr.msk.bf16.mxu0 %vm3610_vm4, %v3609_v47 }
 0x7fa   :  { %3257 = vmatprep.subr.bf16.mxu0 %v3609_v47  ;;  %v1205_v13 = vpack.c.bf16 %v1204_v11, %v1204_v11 }
 0x800   :  { %3248 = vmatmul.mubr.msk.bf16.vlgmr.msra.gmra.mrb[20].mxu0 %vm409_vm9, %v985_v2 }
 0x801   :  { %3258 = vmatpush3.bf16.msra.mxu0 %v1102_v4  ;;  %3259 = vmatprep.mubr.msk.bf16.mxu0 %vm3610_vm4, %v3609_v47 }
 0x802   :  { %3269 = vmatprep.subr.bf16.mxu0 %v3609_v47 }
 0x808   :  { %3260 = vmatmul.mubr.msk.bf16.vlgmr.msra.gmra.mrb[24].mxu0 %vm409_vm9, %v1095_v8 }
 0x809   :  { %3270 = vmatpush3.bf16.msra.mxu0 %v1212_v10  ;;  %3271 = vmatprep.mubr.msk.bf16.mxu0 %vm3610_vm4, %v3609_v47 }
 0x80a   :  { %3283 = vmatprep.subr.bf16.mxu0 %v3609_v47 }
 0x810   :  { %3272 = vmatmul.mubr.msk.bf16.vlgmr.msra.gmra.mrb[28].mxu0 %vm409_vm9, %v1205_v13 }
 0x811   :  { %3287 = vmatprep.mubr.msk.bf16.mxu0 %vm3610_vm4, %v3609_v47 }
 0x88e   :  { %v564_v14 = vpop.f32.mrb[4].mxu0 }
 0x88f   :  { %v3201_v12 = vpop.f32.mrb[5].mxu0 }
 0x890   :  { %v567_v15 = vpop.f32.mrb[6].mxu0 }
 0x891   :  { %v3202_v16 = vpop.f32.mrb[7].mxu0 }
 0x896   :  { %v674_v17 = vpop.f32.mrb[8].mxu0 }
 0x897   :  { %v3213_v18 = vpop.f32.mrb[9].mxu0 }
 0x898   :  { %v677_v19 = vpop.f32.mrb[10].mxu0 }
 0x899   :  { %v3214_v21 = vpop.f32.mrb[11].mxu0 }
 0x8c3   :  { %v784_v22 = vpop.f32.mrb[12].mxu0 }
 0x8c4   :  { %v3225_v23 = vpop.f32.mrb[13].mxu0 }
 0x8c5   :  { %v787_v24 = vpop.f32.mrb[14].mxu0 }
 0x8c6   :  { %v3226_v25 = vpop.f32.mrb[15].mxu0 }
 0x8cb   :  { %v918_v26 = vpop.f32.mrb[16].mxu0 }
 0x8cc   :  { %v3237_v27 = vpop.f32.mrb[17].mxu0 }
 0x8cd   :  { %v921_v28 = vpop.f32.mrb[18].mxu0  ;;  %v3500_v27 = vld [vmem:[%s4389_s6] sm:$0xff]  }
 0x8ce   :  { %v3238_v29 = vpop.f32.mrb[19].mxu0  ;;  %3284 = vmatpush3.bf16.msra.mxu0 %v3500_v27  ;;  %v3501_v28 = vld [vmem:[%s4389_s6 + $0x8] sm:$0xff]  }
 0x8cf   :  { %3285 = vmatprep.subr.bf16.mxu0 %v3609_v47 }
 0x8d2   :  { %3286 = vmatpush3.bf16.msra.mxu0 %v3501_v28 }
 0x8d3   :  { %v1028_v30 = vpop.f32.mrb[20].mxu0  ;;  %3303 = vmatprep.subr.bf16.mxu0 %v3609_v47 }
 0x8d4   :  { %v3460_v31 = vpack.i.bf16 %v564_v14, %v1028_v30  ;;  %v3249_v34 = vpop.f32.mrb[21].mxu0 }
 0x8d5   :  { %v1031_v35 = vpop.f32.mrb[22].mxu0 }
 0x8d6   :  { %3461 = vrot.lane.b32.xlu1 %v3460_v31, %s3623_s28  ;;  %v3250_v36 = vpop.f32.mrb[23].mxu0 }
 0x8db   :  { %v1138_v39 = vpop.f32.mrb[24].mxu0 }
 0x8dc   :  { %v3465_v40 = vpack.i.bf16 %v674_v17, %v1138_v39  ;;  %v3261_v41 = vpop.f32.mrb[25].mxu0 }
 0x8dd   :  { %v1141_v42 = vpop.f32.mrb[26].mxu0  ;;  %v1376_v41 = vsub.s32 3, %v3783_v56 }
 0x8de   :  { %3466 = vrot.lane.b32.xlu1 %v3465_v40, %s3624_s30  ;;  %v3262_v43 = vpop.f32.mrb[27].mxu0 }
 0x8e3   :  { %v1248_v44 = vpop.f32.mrb[28].mxu0 }
 0x8e4   :  { %1263 = vrot.lane.b32.xlu1 %v1248_v44, %s4396_s14  ;;  %v3273_v45 = vpop.f32.mrb[29].mxu0 }
 0x8e5   :  { %v1251_v46 = vpop.f32.mrb[30].mxu0  ;;  %v1377_v45 = vrot.slane %v3791_v58, %v1376_v41 }
 0x8e6   :  { %v3274_v48 = vpop.f32.mrb[31].mxu0 }
 0x8e8   :  { %799 = vrot.lane.b32.xlu1 %v784_v22, %s4396_s14 }
 0x948   :  { %v3462_v49 = vpop.permute.xlu1 %3461 }
 0x949   :  { %v3463_v51 = vunpack.i.l.bf16 %v3462_v49  ;;  %v3464_v53 = vunpack.i.h.bf16 %v3462_v49 }
 0x94b   :  { %v1266_v54 = vsel %vm347_vm5, %v918_v26, %v3463_v51  ;;  %v802_v63 = vsel %vm347_vm5, %v3892_v5, %v3464_v53  ;;  %v1339_v5 = vrot.slane %v3791_v58, %v1338_v7  ;;  %v3502_v51 = vld [vmem:[%s4390_s8] sm:$0xff]   ;;  %v3503_v58 = vld [vmem:[%s4390_s8 + $0x8] sm:$0xff]   ;;  %v3505_v53 = vld [vmem:[%s4390_s8 + $0x18] sm:$0xff]  }
 0x950   :  { %v3467_v50 = vpop.permute.xlu1 %3466 }
 0x951   :  { %v3468_v52 = vunpack.i.l.bf16 %v3467_v50  ;;  %v3469_v55 = vunpack.i.h.bf16 %v3467_v50 }
 0x953   :  { %v1267_v60 = vsel %vm803_vm10, %v1266_v54, %v3468_v52  ;;  %v804_v2 = vsel %vm803_vm10, %v802_v63, %v3469_v55  ;;  %v3504_v52 = vld [vmem:[%s4390_s8 + $0x10] sm:$0xff]   ;;  %v2986_v54 = vld [vmem:[%s4391_s7] ss:$0 sm:$0xff] }
 0x956   :  { %v1264_v59 = vpop.permute.xlu1 %1263 }
 0x957   :  { %v1268_v61 = vsel %vm805_vm11, %v1267_v60, %v1264_v59 }
 0x958   :  { %v1270_v0 = vrot.slane %v1268_v61, 3 }
 0x95a   :  { %v800_v1 = vpop.permute.xlu1 %799 }
 0x95b   :  { %v806_v3 = vsel %vm805_vm11, %v804_v2, %v800_v1 }
 0x95c   :  { %v1272_v4 = vsel %vm231_vm1, %v806_v3, %v1270_v0 }
 0x95d   :  { %v1273_v6 = vpack.c.bf16 %v1270_v0, %v1272_v4 }
 0x95f   :  { %3280 = vmatmul.mubr.msk.bf16.vlgmr.msra.gmra.mrb[40].mxu1 %vm234_vm2, %v1273_v6 }
 0x960   :  { %3299 = vmatprep.mubr.msk.bf16.mxu1 %vm3610_vm4, %v3609_v47  ;;  %3292 = vmatpush3.bf16.msra.mxu1 %v3502_v51 }
 0x961   :  { %3293 = vmatprep.subr.bf16.mxu1 %v3609_v47 }
 0x964   :  { %3294 = vmatpush3.bf16.msra.mxu1 %v3503_v58 }
 0x965   :  { %3295 = vmatprep.subr.bf16.mxu1 %v3609_v47 }
 0x968   :  { %3296 = vmatpush3.bf16.msra.mxu1 %v3504_v52 }
 0x969   :  { %3297 = vmatprep.subr.bf16.mxu1 %v3609_v47 }
 0x96c   :  { %3298 = vmatpush3.bf16.msra.mxu1 %v3505_v53 }
 0x96d   :  { %3317 = vmatprep.subr.bf16.mxu1 %v3609_v47 }
 0xa32   :  { %v1327_v8 = vpop.f32.mrb[40].mxu1 }
 0xa33   :  { %v1334_v9 = vadd.f32 %v1327_v8, %v3759_v33  ;;  %v3281_v10 = vpop.f32.mrb[41].mxu1 }
 0xa34   :  { %v1330_v11 = vpop.f32.mrb[42].mxu1 }
 0xa35   :  { %v4001_v13 = vadd.f32 %v1339_v5, %v1334_v9  ;;  %v1335_v14 = vadd.f32 %v1330_v11, %v3755_v32  ;;  %v3282_v12 = vpop.f32.mrb[43].mxu1 }
 0xa36   :  { %v1540_v12 = vsub.s32 5, %v3783_v56 }
 0xa37   :  { %v4004_v15 = vadd.f32 %v1339_v5, %v1335_v14  ;;  %v1342_v16 = vsel %vm234_vm2, %v4001_v13, 0.0 }
 0xa38   :  { %1343 = vadd.xlane.f32.xlu0 %v1342_v16  ;;  %v3608_v16 = vld [vmem:[%s4386_s9] sm:$0xff] }
 0xa39   :  { %v1345_v17 = vsel %vm238_vm3, %v4004_v15, 0.0 }
 0xa3a   :  { %1346 = vadd.xlane.f32.xlu1 %v1345_v17  ;;  %v1541_v17 = vrot.slane %v3608_v16, %v1540_v12 }
 0xac5   :  { %v1344_v18 = vpop.xlane.xlu0 %1343 }
 0xac6   :  { %v1348_v19 = vmul.f32 0.03125, %v1344_v18 }
 0xac7   :  { %v1347_v33 = vpop.xlane.xlu1 %1346 }
 0xac8   :  { %v1350_v21 = vsub.f32 %v4001_v13, %v1348_v19  ;;  %v1349_v22 = vmul.f32 0.03125, %v1347_v33 }
 0xaca   :  { %v1351_v23 = vsub.f32 %v4004_v15, %v1349_v22  ;;  %v1352_v32 = vmul.f32 %v1350_v21, %v1350_v21 }
 0xacc   :  { %v1354_v24 = vsel %vm234_vm2, %v1352_v32, 0.0  ;;  %v1353_v25 = vmul.f32 %v1351_v23, %v1351_v23 }
 0xacd   :  { %1355 = vadd.xlane.f32.xlu0 %v1354_v24 }
 0xace   :  { %v1357_v26 = vsel %vm238_vm3, %v1353_v25, 0.0 }
 0xad1   :  { %1358 = vadd.xlane.f32.xlu0 %v1357_v26 }
 0xb5a   :  { %v1356_v29 = vpop.xlane.xlu0 %1355 }
 0xb5b   :  { %v1360_v30 = vmul.f32 0.03125, %v1356_v29 }
 0xb5d   :  { %v1362_v31 = vadd.f32 1e-12, %v1360_v30 }
 0xb5e   :  { %v1359_v34 = vpop.xlane.xlu0 %1358 }
 0xb5f   :  { %3554 = vrsqrt.f32 %v1362_v31  ;;  %v1361_v35 = vmul.f32 0.03125, %v1359_v34 }
 0xb61   :  { %v1363_v36 = vadd.f32 1e-12, %v1361_v35 }
 0xb63   :  { %3556 = vrsqrt.f32 %v1363_v36 }
 0xb69   :  { %v3555_v39 = vpop.eup %3554 }
 0xb6a   :  { %v1366_v40 = vmul.f32 %v3555_v39, %v1350_v21  ;;  %v3506_v39 = vld [vmem:[%s4385_s3 + $0x10] sm:$0xff]  }
 0xb6c   :  { %v1372_v43 = vmul.f32 %v1371_v20, %v1366_v40 }
 0xb6d   :  { %v3557_v42 = vpop.eup %3556 }
 0xb6e   :  { %v1367_v44 = vmul.f32 %v3557_v42, %v1351_v23  ;;  %v1378_v48 = vadd.f32 %v1377_v45, %v1372_v43 }
 0xb70   :  { %v1373_v46 = vmul.f32 %v1371_v20, %v1367_v44  ;;  %v3507_v20 = vld [vmem:[%s4385_s3 + $0x18] sm:$0xff]  }
 0xb72   :  { %v1379_v49 = vadd.f32 %v1377_v45, %v1373_v46 }
 0xb74   :  { %v1380_v50 = vpack.c.bf16 %v1379_v49, %v1378_v48  ;;  %v4086_v48 = vld [vmem:[%s4386_s9 + $0x8] sm:$0xff] }
 0xb75   :  { %v1575_v49 = vrot.slane %v4086_v48, %v3786_v57 }
 0xb76   :  { %3288 = vmatmul.mubr.msk.bf16.vlgmr.msra.gmra.mrb[32].mxu0 %vm234_vm2, %v1380_v50 }
 0xb77   :  { %3307 = vmatprep.mubr.msk.bf16.mxu0 %vm3610_vm4, %v3609_v47  ;;  %3304 = vmatpush3.bf16.msra.mxu0 %v3506_v39 }
 0xb78   :  { %3305 = vmatprep.subr.bf16.mxu0 %v3609_v47 }
 0xb7b   :  { %3306 = vmatpush3.bf16.msra.mxu0 %v3507_v20 }
 0xb7c   :  { %3311 = vmatprep.subr.bf16.mxu0 %v3609_v47 }
 0xc49   :  { %v1441_v55 = vpop.f32.mrb[32].mxu0 }
 0xc4a   :  { %v1442_v59 = vadd.f32 %v2986_v54, %v1441_v55  ;;  %v3289_v60 = vpop.f32.mrb[33].mxu0 }
 0xc4b   :  { %v1444_v61 = vpop.f32.mrb[34].mxu0 }
 0xc4c   :  { %v1450_v63 = vmul.f32 0.70710677, %v1442_v59  ;;  %v1445_v0 = vadd.f32 %v2986_v54, %v1444_v61  ;;  %v3290_v1 = vpop.f32.mrb[35].mxu0  ;;  %v1448_v5 = vmul.f32 0.5, %v1442_v59  ;;  %v1581_v54 = vrot.slane %v4086_v48, %v3796_v62 }
 0xc4e   :  { %3558 = verf.f32 %v1450_v63  ;;  %v1451_v2 = vmul.f32 0.70710677, %v1445_v0  ;;  %v1449_v8 = vmul.f32 0.5, %v1445_v0  ;;  %v3001_v63 = vld [vmem:[%s4387_s4 + $0x1] ss:$0 sm:$0xff] }
 0xc50   :  { %3560 = verf.f32 %v1451_v2 }
 0xc58   :  { %v3559_v3 = vpop.eup %3558 }
 0xc59   :  { %v1454_v4 = vadd.f32 1.0, %v3559_v3 }
 0xc5a   :  { %v3561_v6 = vpop.eup %3560 }
 0xc5b   :  { %v1455_v9 = vadd.f32 1.0, %v3561_v6  ;;  %v1456_v10 = vmul.f32 %v1454_v4, %v1448_v5 }
 0xc5d   :  { %v1457_v11 = vmul.f32 %v1455_v9, %v1449_v8 }
 0xc5f   :  { %v1458_v14 = vpack.c.bf16 %v1457_v11, %v1456_v10 }
 0xc61   :  { %3300 = vmatmul.mubr.msk.bf16.vlgmr.msra.gmra.mrb[44].mxu1 %vm1491_vm12, %v1458_v14 }
 0xc62   :  { %3319 = vmatprep.mubr.msk.bf16.mxu1 %vm3610_vm4, %v3609_v47 }
 0xd34   :  { %v1529_v18 = vpop.f32.mrb[44].mxu1 }
 0xd35   :  { %v1536_v19 = vadd.f32 %v1529_v18, %v4001_v13  ;;  %v3301_v33 = vpop.f32.mrb[45].mxu1 }
 0xd36   :  { %v1532_v21 = vpop.f32.mrb[46].mxu1 }
 0xd37   :  { %v4062_v22 = vadd.f32 %v1541_v17, %v1536_v19  ;;  %v1537_v23 = vadd.f32 %v1532_v21, %v4004_v15  ;;  %v3302_v32 = vpop.f32.mrb[47].mxu1 }
 0xd39   :  { %v4065_v24 = vadd.f32 %v1541_v17, %v1537_v23  ;;  %v1546_v25 = vsel %vm234_vm2, %v4062_v22, 0.0 }
 0xd3a   :  { %1547 = vadd.xlane.f32.xlu0 %v1546_v25 }
 0xd3b   :  { %v1549_v26 = vsel %vm238_vm3, %v4065_v24, 0.0 }
 0xd3c   :  { %1550 = vadd.xlane.f32.xlu1 %v1549_v26 }
 0xdc7   :  { %v1548_v27 = vpop.xlane.xlu0 %1547 }
 0xdc8   :  { %v1552_v28 = vmul.f32 0.03125, %v1548_v27 }
 0xdc9   :  { %v1551_v13 = vpop.xlane.xlu1 %1550 }
 0xdca   :  { %v1554_v29 = vsub.f32 %v4062_v22, %v1552_v28  ;;  %v1553_v30 = vmul.f32 0.03125, %v1551_v13 }
 0xdcc   :  { %v1555_v31 = vsub.f32 %v4065_v24, %v1553_v30  ;;  %v1556_v15 = vmul.f32 %v1554_v29, %v1554_v29 }
 0xdce   :  { %v1558_v34 = vsel %vm234_vm2, %v1556_v15, 0.0  ;;  %v1557_v35 = vmul.f32 %v1555_v31, %v1555_v31 }
 0xdcf   :  { %1559 = vadd.xlane.f32.xlu0 %v1558_v34 }
 0xdd0   :  { %v1561_v36 = vsel %vm238_vm3, %v1557_v35, 0.0 }
 0xdd1   :  { %1562 = vadd.xlane.f32.xlu1 %v1561_v36 }
 0xe5c   :  { %v1560_v40 = vpop.xlane.xlu0 %1559 }
 0xe5d   :  { %v1564_v42 = vmul.f32 0.03125, %v1560_v40 }
 0xe5e   :  { %v1563_v43 = vpop.xlane.xlu1 %1562 }
 0xe5f   :  { %v1566_v44 = vadd.f32 1e-12, %v1564_v42  ;;  %v1565_v45 = vmul.f32 0.03125, %v1563_v43 }
 0xe61   :  { %3562 = vrsqrt.f32 %v1566_v44  ;;  %v1567_v46 = vadd.f32 1e-12, %v1565_v45 }
 0xe63   :  { %3564 = vrsqrt.f32 %v1567_v46 }
 0xe6b   :  { %v3563_v50 = vpop.eup %3562 }
 0xe6c   :  { %v1570_v51 = vmul.f32 %v3563_v50, %v1554_v29 }
 0xe6d   :  { %v3565_v58 = vpop.eup %3564 }
 0xe6e   :  { %v1576_v52 = vmul.f32 %v1575_v49, %v1570_v51  ;;  %v1571_v53 = vmul.f32 %v3565_v58, %v1555_v31 }
 0xe70   :  { %v1577_v55 = vmul.f32 %v1575_v49, %v1571_v53  ;;  %v1582_v59 = vadd.f32 %v1581_v54, %v1576_v52 }
 0xe72   :  { %v1583_v60 = vadd.f32 %v1581_v54, %v1577_v55 }
 0xe74   :  { %v1584_v61 = vpack.c.bf16 %v1583_v60, %v1582_v59 }
 0xe76   :  { %3308 = vmatmul.mubr.msk.bf16.vlgmr.msra.gmra.mrb[36].mxu0 %vm234_vm2, %v1584_v61 }
 0xe77   :  { %3313 = vmatprep.mubr.msk.bf16.mxu0 %vm3610_vm4, %v3609_v47 }
 0xf49   :  { %v1647_v0 = vpop.f32.mrb[36].mxu0 }
 0xf4a   :  { %v1648_v1 = vadd.f32 %v3001_v63, %v1647_v0  ;;  %v3309_v2 = vpop.f32.mrb[37].mxu0 }
 0xf4b   :  { %v1650_v3 = vpop.f32.mrb[38].mxu0 }
 0xf4c   :  { %v4098_v4 = vpack.c.bf16 %v1648_v1, %v1648_v1  ;;  %v1651_v6 = vadd.f32 %v3001_v63, %v1650_v3  ;;  %v3310_v5 = vpop.f32.mrb[39].mxu0 }
 0xf4e   :  { %v2109_v8 = vpack.c.bf16 %v1651_v6, %v1648_v1  ;;  %1766 = vrot.lane.b32.xlu1 %v4098_v4, %s3612_s18  ;;  %1656 = vrot.lane.b32.xlu0 %v4098_v4, %s3611_s17 }
 0xf50   :  { %v2111_v9 = vshrl.u32 %v2109_v8, 16  ;;  %v2114_v10 = vshll.u32 %v2109_v8, 16 }
 0xf52   :  { %1764 = vrot.lane.b32.xlu1 %v4098_v4, %s3615_s21  ;;  %1874 = vrot.lane.b32.xlu0 %v4098_v4, %s3616_s22  ;;  %v2113_v11 = vrot.slane %v2111_v9, 2  ;;  %v2116_v14 = vrot.slane %v2114_v10, 3 }
 0xf54   :  { %v4112_v16 = vor.u32 %v2116_v14, %v2113_v11 }
 0xf56   :  { %1876 = vrot.lane.b32.xlu1 %v4098_v4, %s3613_s19  ;;  %1984 = vrot.lane.b32.xlu0 %v4098_v4, %s3617_s23 }
 0xf5a   :  { %1986 = vrot.lane.b32.xlu1 %v4098_v4, %s3614_s20  ;;  %2228 = vrot.lane.b32.xlu0 %v4112_v16, %s3612_s18 }
 0xf5e   :  { %2338 = vrot.lane.b32.xlu0 %v4112_v16, %s3613_s19  ;;  %2118 = vrot.lane.b32.xlu1 %v4112_v16, %s3611_s17 }
 0xf62   :  { %2448 = vrot.lane.b32.xlu0 %v4112_v16, %s3614_s20  ;;  %2226 = vrot.lane.b32.xlu1 %v4112_v16, %s3615_s21  ;;  %s4398_s20 = smov 24  }
 0xf66   :  { %2336 = vrot.lane.b32.xlu1 %v4112_v16, %s3616_s22 }
 0xf6a   :  { %2446 = vrot.lane.b32.xlu1 %v4112_v16, %s3617_s23 }
 0xfc0   :  { %v1657_v17 = vpop.permute.xlu0 %1656  ;;  %v1767_v19 = vpop.permute.xlu1 %1766 }
 0xfc1   :  { %v1662_v18 = vsel %vm347_vm5, %v1657_v17, 0  ;;  %v1772_v21 = vsel %vm347_vm5, %v1767_v19, 0 }
 0xfc2   :  { %3312 = vmatpush3.bf16.xpose.msra.mxu0 %v1662_v18 }
 0xfc3   :  { %3323 = vmatprep.subr.bf16.mxu0 %v3609_v47 }
 0xfc4   :  { %v1765_v33 = vpop.permute.xlu1 %1764  ;;  %v1875_v26 = vpop.permute.xlu0 %1874 }
 0xfc8   :  { %v1877_v23 = vpop.permute.xlu1 %1876  ;;  %v1985_v13 = vpop.permute.xlu0 %1984 }
 0xfc9   :  { %3314 = vmatmul.mubr.msk.bf16.vlgmr.msra.gmra.mrb[40].mxu0 %vm347_vm5, %v4098_v4  ;;  %v1882_v32 = vsel %vm347_vm5, %v1877_v23, 0 }
 0xfca   :  { %3324 = vmatpush3.bf16.xpose.msra.mxu0 %v1772_v21  ;;  %3325 = vmatprep.mubr.msk.bf16.mxu0 %vm3610_vm4, %v3609_v47 }
 0xfcb   :  { %3335 = vmatprep.subr.bf16.mxu0 %v3609_v47 }
 0xfcc   :  { %v1987_v25 = vpop.permute.xlu1 %1986  ;;  %v2229_v30 = vpop.permute.xlu0 %2228 }
 0xfcd   :  { %v1992_v27 = vsel %vm347_vm5, %v1987_v25, 0  ;;  %v2234_v31 = vsel %vm347_vm5, %v2229_v30, 0 }
 0xfd0   :  { %v2119_v28 = vpop.permute.xlu1 %2118  ;;  %v2339_v15 = vpop.permute.xlu0 %2338 }
 0xfd1   :  { %3326 = vmatmul.mubr.msk.bf16.vlgmr.msra.gmra.mrb[44].mxu0 %vm347_vm5, %v1765_v33  ;;  %v2124_v29 = vsel %vm347_vm5, %v2119_v28, 0  ;;  %v2344_v35 = vsel %vm347_vm5, %v2339_v15, 0 }
 0xfd2   :  { %3336 = vmatpush3.bf16.xpose.msra.mxu0 %v1882_v32  ;;  %3337 = vmatprep.mubr.msk.bf16.mxu0 %vm3610_vm4, %v3609_v47 }
 0xfd3   :  { %3347 = vmatprep.subr.bf16.mxu0 %v3609_v47 }
 0xfd4   :  { %v2227_v34 = vpop.permute.xlu1 %2226  ;;  %v2449_v36 = vpop.permute.xlu0 %2448 }
 0xfd5   :  { %v2454_v20 = vsel %vm347_vm5, %v2449_v36, 0 }
 0xfd8   :  { %v2337_v39 = vpop.permute.xlu1 %2336 }
 0xfd9   :  { %3338 = vmatmul.mubr.msk.bf16.vlgmr.msra.gmra.mrb[48].mxu0 %vm347_vm5, %v1875_v26 }
 0xfda   :  { %3348 = vmatpush3.bf16.xpose.msra.mxu0 %v1992_v27  ;;  %3349 = vmatprep.mubr.msk.bf16.mxu0 %vm3610_vm4, %v3609_v47 }
 0xfdb   :  { %3359 = vmatprep.subr.bf16.mxu0 %v3609_v47 }
 0xfdc   :  { %v2447_v40 = vpop.permute.xlu1 %2446 }
 0xfe1   :  { %3350 = vmatmul.mubr.msk.bf16.vlgmr.msra.gmra.mrb[52].mxu0 %vm347_vm5, %v1985_v13 }
 0xfe2   :  { %3360 = vmatpush3.bf16.xpose.msra.mxu0 %v2124_v29  ;;  %3361 = vmatprep.mubr.msk.bf16.mxu0 %vm3610_vm4, %v3609_v47 }
 0xfe3   :  { %3371 = vmatprep.subr.bf16.mxu0 %v3609_v47 }
 0xfe9   :  { %3362 = vmatmul.mubr.msk.bf16.vlgmr.msra.gmra.mrb[56].mxu0 %vm347_vm5, %v4112_v16 }
 0xfea   :  { %3372 = vmatpush3.bf16.xpose.msra.mxu0 %v2234_v31  ;;  %3373 = vmatprep.mubr.msk.bf16.mxu0 %vm3610_vm4, %v3609_v47 }
 0xfeb   :  { %3383 = vmatprep.subr.bf16.mxu0 %v3609_v47 }
 0xff1   :  { %3374 = vmatmul.mubr.msk.bf16.vlgmr.msra.gmra.mrb[60].mxu0 %vm347_vm5, %v2227_v34 }
 0xff2   :  { %3384 = vmatpush3.bf16.xpose.msra.mxu0 %v2344_v35  ;;  %3385 = vmatprep.mubr.msk.bf16.mxu0 %vm3610_vm4, %v3609_v47 }
 0xff3   :  { %3395 = vmatprep.subr.bf16.mxu0 %v3609_v47 }
 0xff9   :  { %3386 = vmatmul.mubr.msk.bf16.vlgmr.msra.gmra.mrb[64].mxu0 %vm347_vm5, %v2337_v39 }
 0xffa   :  { %3396 = vmatpush3.bf16.xpose.msra.mxu0 %v2454_v20  ;;  %3397 = vmatprep.mubr.msk.bf16.mxu0 %vm3610_vm4, %v3609_v47 }
 0xffb   :  { %3407 = vmatprep.subr.bf16.mxu0 %v3609_v47 }
0x1001   :  { %3398 = vmatmul.mubr.msk.bf16.vlgmr.msra.gmra.mrb[68].mxu0 %vm347_vm5, %v2447_v40 }
0x1002   :  { %3411 = vmatprep.mubr.msk.bf16.mxu0 %vm3610_vm4, %v3609_v47 }
0x109c   :  { %v1698_v42 = vpop.f32.mrb[40].mxu0 }
0x109d   :  { %v3315_v43 = vpop.f32.mrb[41].mxu0  ;;  %v1704_v44 = vsel %vm394_vm6, %v1698_v42, -inf }
0x109e   :  { %1705 = vmax.xlane.f32.xlu0 %v1704_v44  ;;  %v1701_v45 = vpop.f32.mrb[42].mxu0 }
0x109f   :  { %v3316_v46 = vpop.f32.mrb[43].mxu0 }
0x10a4   :  { %v1808_v49 = vpop.f32.mrb[44].mxu0 }
0x10a5   :  { %v3327_v50 = vpop.f32.mrb[45].mxu0  ;;  %v1814_v51 = vsel %vm394_vm6, %v1808_v49, -inf }
0x10a6   :  { %1815 = vmax.xlane.f32.xlu1 %v1814_v51  ;;  %v1811_v58 = vpop.f32.mrb[46].mxu0 }
0x10a7   :  { %v3328_v52 = vpop.f32.mrb[47].mxu0 }
0x10ac   :  { %v1918_v53 = vpop.f32.mrb[48].mxu0 }
0x10ad   :  { %v3339_v54 = vpop.f32.mrb[49].mxu0  ;;  %v1924_v55 = vsel %vm394_vm6, %v1918_v53, -inf }
0x10ae   :  { %1925 = vmax.xlane.f32.xlu0 %v1924_v55  ;;  %v1921_v59 = vpop.f32.mrb[50].mxu0 }
0x10af   :  { %v3340_v60 = vpop.f32.mrb[51].mxu0 }
0x10b4   :  { %v2028_v61 = vpop.f32.mrb[52].mxu0 }
0x10b5   :  { %v3351_v63 = vpop.f32.mrb[53].mxu0  ;;  %v2034_v0 = vsel %vm394_vm6, %v2028_v61, -inf }
0x10b6   :  { %2035 = vmax.xlane.f32.xlu0 %v2034_v0  ;;  %v2031_v1 = vpop.f32.mrb[54].mxu0 }
0x10b7   :  { %v3352_v2 = vpop.f32.mrb[55].mxu0 }
0x10bc   :  { %v2160_v3 = vpop.f32.mrb[56].mxu0 }
0x10bd   :  { %v3363_v6 = vpop.f32.mrb[57].mxu0  ;;  %v2166_v5 = vsel %vm394_vm6, %v2160_v3, -inf }
0x10be   :  { %2167 = vmax.xlane.f32.xlu0 %v2166_v5  ;;  %v2163_v8 = vpop.f32.mrb[58].mxu0 }
0x10bf   :  { %v3364_v9 = vpop.f32.mrb[59].mxu0 }
0x10c4   :  { %v4177_v10 = vpop.f32.mrb[60].mxu0 }
0x10c5   :  { %v3375_v11 = vpop.f32.mrb[61].mxu0  ;;  %v2276_v14 = vsel %vm394_vm6, %v4177_v10, -inf }
0x10c6   :  { %2277 = vmax.xlane.f32.xlu1 %v2276_v14  ;;  %v2273_v17 = vpop.f32.mrb[62].mxu0 }
0x10c7   :  { %v3376_v18 = vpop.f32.mrb[63].mxu0 }
0x10cc   :  { %v4181_v19 = vpop.f32.mrb[64].mxu0 }
0x10cd   :  { %v3387_v33 = vpop.f32.mrb[65].mxu0  ;;  %v2386_v21 = vsel %vm394_vm6, %v4181_v19, -inf }
0x10ce   :  { %2387 = vmax.xlane.f32.xlu0 %v2386_v21  ;;  %v2383_v23 = vpop.f32.mrb[66].mxu0 }
0x10cf   :  { %v3388_v32 = vpop.f32.mrb[67].mxu0 }
0x10d4   :  { %v2490_v25 = vpop.f32.mrb[68].mxu0 }
0x10d5   :  { %v3399_v26 = vpop.f32.mrb[69].mxu0  ;;  %v2496_v27 = vsel %vm394_vm6, %v2490_v25, -inf }
0x10d6   :  { %2497 = vmax.xlane.f32.xlu1 %v2496_v27  ;;  %v2493_v28 = vpop.f32.mrb[70].mxu0 }
0x10d7   :  { %v3400_v13 = vpop.f32.mrb[71].mxu0 }
0x10e4   :  { %1826 = vrot.lane.b32.xlu0 %v4098_v4, %s3621_s26 }
0x10e7   :  { %1716 = vrot.lane.b32.xlu1 %v4098_v4, %s3618_s24 }
0x10e8   :  { %1936 = vrot.lane.b32.xlu0 %v4098_v4, %s3620_s25 }
0x112b   :  { %v1706_v29 = vpop.xlane.xlu0 %1705 }
0x112c   :  { %v1707_v30 = vsub.f32 %v1698_v42, %v1706_v29 }
0x112e   :  { %v1708_v31 = vmul.f32 1.442695, %v1707_v30 }
0x1130   :  { %3566 = vpow2.f32 %v1708_v31 }
0x1133   :  { %v1816_v15 = vpop.xlane.xlu1 %1815 }
0x1134   :  { %v1817_v34 = vsub.f32 %v1808_v49, %v1816_v15 }
0x1136   :  { %v1818_v35 = vmul.f32 1.442695, %v1817_v34 }
0x1138   :  { %3568 = vpow2.f32 %v1818_v35 }
0x113a   :  { %v4192_v36 = vpop.eup %3566 }
0x113b   :  { %v1926_v39 = vpop.xlane.xlu0 %1925  ;;  %v1710_v20 = vsel %vm394_vm6, %v4192_v36, 0.0 }
0x113c   :  { %v1927_v40 = vsub.f32 %v1918_v53, %v1926_v39  ;;  %1711 = vadd.xlane.f32.xlu0 %v1710_v20 }
0x113e   :  { %v1928_v43 = vmul.f32 1.442695, %v1927_v40 }
0x1140   :  { %3570 = vpow2.f32 %v1928_v43 }
0x1142   :  { %v4196_v44 = vpop.eup %3568 }
0x1143   :  { %v2036_v45 = vpop.xlane.xlu0 %2035  ;;  %v1820_v42 = vsel %vm394_vm6, %v4196_v44, 0.0 }
0x1144   :  { %v2037_v46 = vsub.f32 %v2028_v61, %v2036_v45  ;;  %1821 = vadd.xlane.f32.xlu1 %v1820_v42 }
0x1146   :  { %v2038_v49 = vmul.f32 1.442695, %v2037_v46 }
0x1148   :  { %3572 = vpow2.f32 %v2038_v49 }
0x114a   :  { %v4200_v50 = vpop.eup %3570 }
0x114b   :  { %v2168_v51 = vpop.xlane.xlu0 %2167  ;;  %v1930_v58 = vsel %vm394_vm6, %v4200_v50, 0.0 }
0x114c   :  { %v2169_v52 = vsub.f32 %v2160_v3, %v2168_v51  ;;  %1931 = vadd.xlane.f32.xlu0 %v1930_v58 }
0x114e   :  { %v2170_v53 = vmul.f32 1.442695, %v2169_v52 }
0x1150   :  { %3574 = vpow2.f32 %v2170_v53 }
0x1152   :  { %v4204_v54 = vpop.eup %3572 }
0x1153   :  { %v2040_v55 = vsel %vm394_vm6, %v4204_v54, 0.0  ;;  %v2278_v61 = vpop.xlane.xlu1 %2277 }
0x1154   :  { %2041 = vadd.xlane.f32.xlu0 %v2040_v55  ;;  %v2279_v2 = vsub.f32 %v4177_v10, %v2278_v61 }
0x1156   :  { %v2280_v6 = vmul.f32 1.442695, %v2279_v2 }
0x1158   :  { %3576 = vpow2.f32 %v2280_v6 }
0x115a   :  { %v4208_v59 = vpop.eup %3574 }
0x115b   :  { %v2172_v60 = vsel %vm394_vm6, %v4208_v59, 0.0  ;;  %v2388_v3 = vpop.xlane.xlu0 %2387 }
0x115c   :  { %2173 = vadd.xlane.f32.xlu1 %v2172_v60  ;;  %v2389_v5 = vsub.f32 %v4181_v19, %v2388_v3 }
0x115e   :  { %v2390_v8 = vmul.f32 1.442695, %v2389_v5 }
0x115f   :  { %v1827_v33 = vpop.permute.xlu0 %1826 }
0x1160   :  { %3578 = vpow2.f32 %v2390_v8  ;;  %v1832_v28 = vand.u32 %v1827_v33, %v3849_v38 }
0x1162   :  { %v4220_v14 = vpop.eup %3576 }
0x1163   :  { %v2498_v63 = vpop.xlane.xlu1 %2497  ;;  %v2282_v17 = vsel %vm394_vm6, %v4220_v14, 0.0  ;;  %v1937_v21 = vpop.permute.xlu0 %1936 }
0x1164   :  { %v2499_v9 = vsub.f32 %v2490_v25, %v2498_v63  ;;  %v1942_v31 = vand.u32 %v1937_v21, %v3849_v38 }
0x1166   :  { %v2500_v11 = vmul.f32 1.442695, %v2499_v9 }
0x1167   :  { %v1717_v0 = vpop.permute.xlu1 %1716 }
0x1168   :  { %v1722_v1 = vand.u32 %v1717_v0, %v3849_v38  ;;  %3580 = vpow2.f32 %v2500_v11 }
0x116a   :  { %2178 = vrot.lane.b32.xlu0 %v4112_v16, %s3618_s24  ;;  %3318 = vmatpush3.bf16.msra.mxu1 %v1722_v1  ;;  %v4224_v18 = vpop.eup %3578 }
0x116b   :  { %3329 = vmatprep.subr.bf16.mxu1 %v3609_v47 }
0x116d   :  { %2046 = vrot.lane.b32.xlu1 %v4098_v4, %s3622_s27  ;;  %v2392_v4 = vsel %vm394_vm6, %v4224_v18, 0.0 }
0x1172   :  { %v4228_v10 = vpop.eup %3580 }
0x1173   :  { %v2502_v19 = vsel %vm394_vm6, %v4228_v10, 0.0 }
0x1189   :  { %2283 = vadd.xlane.f32.xlu0 %v2282_v17 }
0x118d   :  { %2393 = vadd.xlane.f32.xlu0 %v2392_v4 }
0x1191   :  { %2503 = vadd.xlane.f32.xlu1 %v2502_v19 }
0x11a3   :  { %2288 = vrot.lane.b32.xlu0 %v4112_v16, %s3621_s26 }
0x11a7   :  { %2398 = vrot.lane.b32.xlu0 %v4112_v16, %s3620_s25 }
0x11ab   :  { %2508 = vrot.lane.b32.xlu0 %v4112_v16, %s3622_s27 }
0x11c9   :  { %v1712_v23 = vpop.xlane.xlu0 %1711 }
0x11ca   :  { %3582 = vrcp.f32 %v1712_v23 }
0x11d1   :  { %v1822_v32 = vpop.xlane.xlu1 %1821 }
0x11d2   :  { %3584 = vrcp.f32 %v1822_v32 }
0x11d4   :  { %v3583_v25 = vpop.eup %3582 }
0x11d5   :  { %v1714_v26 = vmul.f32 %v3583_v25, %v4192_v36 }
0x11d7   :  { %v1715_v27 = vpack.c.bf16 %v1714_v26, %v1714_v26 }
0x11d9   :  { %v1932_v13 = vpop.xlane.xlu0 %1931  ;;  %3320 = vmatmul.mubr.msk.bf16.vlgmr.msra.gmra.mrb[48].mxu1 %vm409_vm9, %v1715_v27 }
0x11da   :  { %3586 = vrcp.f32 %v1932_v13  ;;  %3330 = vmatpush3.bf16.msra.mxu1 %v1832_v28  ;;  %3331 = vmatprep.mubr.msk.bf16.mxu1 %vm3610_vm4, %v3609_v47 }
0x11db   :  { %3341 = vmatprep.subr.bf16.mxu1 %v3609_v47 }
0x11dc   :  { %v3585_v16 = vpop.eup %3584 }
0x11dd   :  { %v1824_v29 = vmul.f32 %v3585_v16, %v4196_v44 }
0x11df   :  { %v1825_v30 = vpack.c.bf16 %v1824_v29, %v1824_v29 }
0x11e1   :  { %v2042_v15 = vpop.xlane.xlu0 %2041  ;;  %3332 = vmatmul.mubr.msk.bf16.vlgmr.msra.gmra.mrb[52].mxu1 %vm409_vm9, %v1825_v30 }
0x11e2   :  { %3588 = vrcp.f32 %v2042_v15  ;;  %3342 = vmatpush3.bf16.msra.mxu1 %v1942_v31  ;;  %3343 = vmatprep.mubr.msk.bf16.mxu1 %vm3610_vm4, %v3609_v47 }
0x11e3   :  { %3353 = vmatprep.subr.bf16.mxu1 %v3609_v47 }
0x11e4   :  { %v3587_v34 = vpop.eup %3586 }
0x11e5   :  { %v1934_v35 = vmul.f32 %v3587_v34, %v4200_v50  ;;  %v2179_v45 = vpop.permute.xlu0 %2178 }
0x11e6   :  { %v2184_v46 = vand.u32 %v2179_v45, %v3849_v38 }
0x11e7   :  { %v1935_v36 = vpack.c.bf16 %v1934_v35, %v1934_v35 }
0x11e9   :  { %3344 = vmatmul.mubr.msk.bf16.vlgmr.msra.gmra.mrb[56].mxu1 %vm409_vm9, %v1935_v36  ;;  %v2174_v39 = vpop.xlane.xlu1 %2173 }
0x11ea   :  { %3590 = vrcp.f32 %v2174_v39  ;;  %3355 = vmatprep.mubr.msk.bf16.mxu1 %vm3610_vm4, %v3609_v47 }
0x11ec   :  { %v3589_v20 = vpop.eup %3588 }
0x11ed   :  { %v2044_v40 = vmul.f32 %v3589_v20, %v4204_v54  ;;  %v2047_v43 = vpop.permute.xlu1 %2046  ;;  %v3508_v20 = vld [vmem:[%s4388_s5 + $0x10] sm:$0xff]  }
0x11ee   :  { %v2052_v44 = vand.u32 %v2047_v43, %v3849_v38  ;;  %3408 = vmatpush3.bf16.msra.mxu0 %v3508_v20  ;;  %v3509_v43 = vld [vmem:[%s4388_s5 + $0x18] sm:$0xff]  }
0x11ef   :  { %v2045_v42 = vpack.c.bf16 %v2044_v40, %v2044_v40  ;;  %3409 = vmatprep.subr.bf16.mxu0 %v3609_v47 }
0x11f0   :  { %3354 = vmatpush3.bf16.msra.mxu1 %v2052_v44 }
0x11f1   :  { %3365 = vmatprep.subr.bf16.mxu1 %v3609_v47 }
0x11f2   :  { %3410 = vmatpush3.bf16.msra.mxu0 %v3509_v43  ;;  %v2674_v43 = vrot.slane %v4086_v48, %v1370_v37  ;;  %v3512_v37 = vld [vmem:[%s4390_s8 + $0x20] sm:$0xff]  }
0x11f3   :  { %3356 = vmatmul.mubr.msk.bf16.vlgmr.msra.gmra.mrb[60].mxu1 %vm409_vm9, %v2045_v42  ;;  %3423 = vmatprep.subr.bf16.mxu0 %v3609_v47 }
0x11f4   :  { %v3591_v49 = vpop.eup %3590  ;;  %3366 = vmatpush3.bf16.msra.mxu1 %v2184_v46  ;;  %3367 = vmatprep.mubr.msk.bf16.mxu1 %vm3610_vm4, %v3609_v47 }
0x11f5   :  { %v2176_v50 = vmul.f32 %v3591_v49, %v4208_v59  ;;  %3377 = vmatprep.subr.bf16.mxu1 %v3609_v47 }
0x11f7   :  { %v2177_v51 = vpack.c.bf16 %v2176_v50, %v2176_v50 }
0x11fb   :  { %3368 = vmatmul.mubr.msk.bf16.vlgmr.msra.gmra.mrb[64].mxu1 %vm409_vm9, %v2177_v51 }
0x11fc   :  { %3379 = vmatprep.mubr.msk.bf16.mxu1 %vm3610_vm4, %v3609_v47 }
0x1216   :  { %v2284_v58 = vpop.xlane.xlu0 %2283 }
0x1217   :  { %3592 = vrcp.f32 %v2284_v58 }
0x121a   :  { %v2394_v52 = vpop.xlane.xlu0 %2393 }
0x121b   :  { %3594 = vrcp.f32 %v2394_v52 }
0x121e   :  { %v2289_v53 = vpop.permute.xlu0 %2288  ;;  %v2504_v55 = vpop.xlane.xlu1 %2503 }
0x121f   :  { %v2294_v54 = vand.u32 %v2289_v53, %v3849_v38  ;;  %3596 = vrcp.f32 %v2504_v55 }
0x1221   :  { %v3593_v60 = vpop.eup %3592  ;;  %3378 = vmatpush3.bf16.msra.mxu1 %v2294_v54 }
0x1222   :  { %v2286_v59 = vmul.f32 %v3593_v60, %v4220_v14  ;;  %v2399_v61 = vpop.permute.xlu0 %2398  ;;  %3389 = vmatprep.subr.bf16.mxu1 %v3609_v47 }
0x1223   :  { %v2404_v63 = vand.u32 %v2399_v61, %v3849_v38 }
0x1224   :  { %v2287_v0 = vpack.c.bf16 %v2286_v59, %v2286_v59 }
0x1225   :  { %v3595_v1 = vpop.eup %3594 }
0x1226   :  { %3380 = vmatmul.mubr.msk.bf16.vlgmr.msra.gmra.mrb[68].mxu1 %vm409_vm9, %v2287_v0  ;;  %v2396_v2 = vmul.f32 %v3595_v1, %v4224_v18  ;;  %v2509_v3 = vpop.permute.xlu0 %2508 }
0x1227   :  { %3390 = vmatpush3.bf16.msra.mxu1 %v2404_v63  ;;  %3391 = vmatprep.mubr.msk.bf16.mxu1 %vm3610_vm4, %v3609_v47  ;;  %v2514_v8 = vand.u32 %v2509_v3, %v3849_v38 }
0x1228   :  { %3401 = vmatprep.subr.bf16.mxu1 %v3609_v47  ;;  %v2397_v6 = vpack.c.bf16 %v2396_v2, %v2396_v2 }
0x1229   :  { %v3597_v5 = vpop.eup %3596 }
0x122a   :  { %v2506_v9 = vmul.f32 %v3597_v5, %v4228_v10 }
0x122c   :  { %v2507_v11 = vpack.c.bf16 %v2506_v9, %v2506_v9 }
0x122e   :  { %3392 = vmatmul.mubr.msk.bf16.vlgmr.msra.gmra.mrb[72].mxu1 %vm409_vm9, %v2397_v6 }
0x122f   :  { %3402 = vmatpush3.bf16.msra.mxu1 %v2514_v8  ;;  %3403 = vmatprep.mubr.msk.bf16.mxu1 %vm3610_vm4, %v3609_v47 }
0x1230   :  { %3415 = vmatprep.subr.bf16.mxu1 %v3609_v47 }
0x1236   :  { %3404 = vmatmul.mubr.msk.bf16.vlgmr.msra.gmra.mrb[76].mxu1 %vm409_vm9, %v2507_v11 }
0x1237   :  { %3419 = vmatprep.mubr.msk.bf16.mxu1 %vm3610_vm4, %v3609_v47 }
0x12ac   :  { %v1758_v14 = vpop.f32.mrb[48].mxu1 }
0x12ad   :  { %v3321_v17 = vpop.f32.mrb[49].mxu1 }
0x12ae   :  { %v1761_v18 = vpop.f32.mrb[50].mxu1  ;;  %v2642_v17 = vrot.slane %v4086_v48, %v1338_v7 }
0x12af   :  { %v3322_v38 = vpop.f32.mrb[51].mxu1 }
0x12b4   :  { %v1868_v4 = vpop.f32.mrb[52].mxu1 }
0x12b5   :  { %v3333_v19 = vpop.f32.mrb[53].mxu1 }
0x12b6   :  { %v1871_v33 = vpop.f32.mrb[54].mxu1 }
0x12b7   :  { %v3334_v21 = vpop.f32.mrb[55].mxu1 }
0x12bc   :  { %v1978_v23 = vpop.f32.mrb[56].mxu1 }
0x12bd   :  { %v3345_v32 = vpop.f32.mrb[57].mxu1 }
0x12be   :  { %v1981_v25 = vpop.f32.mrb[58].mxu1 }
0x12bf   :  { %v3346_v10 = vpop.f32.mrb[59].mxu1 }
0x12c6   :  { %v2088_v26 = vpop.f32.mrb[60].mxu1 }
0x12c7   :  { %v3357_v27 = vpop.f32.mrb[61].mxu1 }
0x12c8   :  { %v2091_v28 = vpop.f32.mrb[62].mxu1 }
0x12c9   :  { %v3358_v13 = vpop.f32.mrb[63].mxu1 }
0x12ce   :  { %v2220_v16 = vpop.f32.mrb[64].mxu1 }
0x12cf   :  { %v3369_v29 = vpop.f32.mrb[65].mxu1 }
0x12d0   :  { %v2223_v30 = vpop.f32.mrb[66].mxu1 }
0x12d1   :  { %v3370_v31 = vpop.f32.mrb[67].mxu1  ;;  %v3510_v30 = vld [vmem:[%s4389_s6 + $0x10] sm:$0xff]  }
0x12d2   :  { %3416 = vmatpush3.bf16.msra.mxu1 %v3510_v30  ;;  %v3511_v31 = vld [vmem:[%s4389_s6 + $0x18] sm:$0xff]   ;;  %v2846_v30 = vld [vmem:[%s4393_s10] sm:$0x3] }
0x12d3   :  { %3417 = vmatprep.subr.bf16.mxu1 %v3609_v47 }
0x12d6   :  { %3418 = vmatpush3.bf16.msra.mxu1 %v3511_v31  ;;  %v2867_v31 = vrot.slane %v2846_v30, %v3786_v57 }
0x12d7   :  { %3435 = vmatprep.subr.bf16.mxu1 %v3609_v47 }
0x12f9   :  { %v2330_v15 = vpop.f32.mrb[68].mxu1 }
0x12fa   :  { %v3470_v34 = vpack.i.bf16 %v1868_v4, %v2330_v15  ;;  %v3381_v35 = vpop.f32.mrb[69].mxu1 }
0x12fb   :  { %v2333_v36 = vpop.f32.mrb[70].mxu1 }
0x12fc   :  { %3471 = vrot.lane.b32.xlu0 %v3470_v34, %s3623_s28  ;;  %v3382_v39 = vpop.f32.mrb[71].mxu1 }
0x1301   :  { %v2440_v40 = vpop.f32.mrb[72].mxu1 }
0x1302   :  { %v3475_v44 = vpack.i.bf16 %v1978_v23, %v2440_v40  ;;  %v3393_v45 = vpop.f32.mrb[73].mxu1 }
0x1303   :  { %v2443_v42 = vpop.f32.mrb[74].mxu1 }
0x1304   :  { %3476 = vrot.lane.b32.xlu1 %v3475_v44, %s3624_s30  ;;  %v3394_v46 = vpop.f32.mrb[75].mxu1 }
0x1309   :  { %v2550_v49 = vpop.f32.mrb[76].mxu1 }
0x130a   :  { %2565 = vrot.lane.b32.xlu0 %v2550_v49, %s4398_s20  ;;  %v3405_v50 = vpop.f32.mrb[77].mxu1  ;;  %v2680_v49 = vrot.slane %v4086_v48, %v1376_v41  ;;  %v3513_v41 = vld [vmem:[%s4390_s8 + $0x28] sm:$0xff]  }
0x130b   :  { %v2553_v51 = vpop.f32.mrb[78].mxu1 }
0x130c   :  { %v3406_v58 = vpop.f32.mrb[79].mxu1 }
0x130e   :  { %2103 = vrot.lane.b32.xlu0 %v2088_v26, %s4398_s20 }
0x136e   :  { %v3472_v52 = vpop.permute.xlu0 %3471 }
0x136f   :  { %v3473_v54 = vunpack.i.l.bf16 %v3472_v52  ;;  %v3474_v60 = vunpack.i.h.bf16 %v3472_v52 }
0x1371   :  { %v2568_v59 = vsel %vm347_vm5, %v2220_v16, %v3473_v54  ;;  %v2106_v2 = vsel %vm347_vm5, %v1758_v14, %v3474_v60  ;;  %v3515_v54 = vld [vmem:[%s4390_s8 + $0x38] sm:$0xff]  }
0x1376   :  { %v3477_v53 = vpop.permute.xlu1 %3476 }
0x1377   :  { %v3478_v55 = vunpack.i.l.bf16 %v3477_v53  ;;  %v3479_v61 = vunpack.i.h.bf16 %v3477_v53  ;;  %v3514_v53 = vld [vmem:[%s4390_s8 + $0x30] sm:$0xff]  }
0x1379   :  { %v2569_v63 = vsel %vm803_vm10, %v2568_v59, %v3478_v55  ;;  %v2107_v6 = vsel %vm803_vm10, %v2106_v2, %v3479_v61  ;;  %v3033_v55 = vld [vmem:[%s4391_s7 + $0x1] ss:$0 sm:$0xff] }
0x137c   :  { %v2566_v0 = vpop.permute.xlu0 %2565 }
0x137d   :  { %v2570_v1 = vsel %vm805_vm11, %v2569_v63, %v2566_v0 }
0x137e   :  { %v2572_v3 = vrot.slane %v2570_v1, 3 }
0x1380   :  { %v2104_v5 = vpop.permute.xlu0 %2103 }
0x1381   :  { %v2108_v8 = vsel %vm805_vm11, %v2107_v6, %v2104_v5 }
0x1382   :  { %v2574_v9 = vsel %vm231_vm1, %v2108_v8, %v2572_v3 }
0x1383   :  { %v2575_v11 = vpack.c.bf16 %v2572_v3, %v2574_v9 }
0x1385   :  { %3412 = vmatmul.mubr.msk.bf16.vlgmr.msra.gmra.mrb[72].mxu0 %vm234_vm2, %v2575_v11 }
0x1386   :  { %3431 = vmatprep.mubr.msk.bf16.mxu0 %vm3610_vm4, %v3609_v47  ;;  %3424 = vmatpush3.bf16.msra.mxu0 %v3512_v37 }
0x1387   :  { %3425 = vmatprep.subr.bf16.mxu0 %v3609_v47 }
0x138a   :  { %3426 = vmatpush3.bf16.msra.mxu0 %v3513_v41 }
0x138b   :  { %3427 = vmatprep.subr.bf16.mxu0 %v3609_v47 }
0x138e   :  { %3428 = vmatpush3.bf16.msra.mxu0 %v3514_v53 }
0x138f   :  { %3429 = vmatprep.subr.bf16.mxu0 %v3609_v47 }
0x1392   :  { %3430 = vmatpush3.bf16.msra.mxu0 %v3515_v54 }
0x1458   :  { %v2630_v18 = vpop.f32.mrb[72].mxu0 }
0x1459   :  { %v2637_v14 = vadd.f32 %v2630_v18, %v4062_v22  ;;  %v3413_v38 = vpop.f32.mrb[73].mxu0 }
0x145a   :  { %v2633_v4 = vpop.f32.mrb[74].mxu0 }
0x145b   :  { %v4310_v19 = vadd.f32 %v2642_v17, %v2637_v14  ;;  %v2638_v33 = vadd.f32 %v2633_v4, %v4065_v24  ;;  %v3414_v21 = vpop.f32.mrb[75].mxu0  ;;  %v2844_v4 = vrot.slane %v4086_v48, %v1540_v12  ;;  %v3516_v12 = vld [vmem:[%s4392_s11] sm:$0xff]   ;;  %v3517_v48 = vld [vmem:[%s4392_s11 + $0x8] sm:$0xff]  }
0x145d   :  { %v2645_v23 = vsel %vm234_vm2, %v4310_v19, 0.0  ;;  %v2644_v32 = vadd.f32 %v2642_v17, %v2638_v33 }
0x145e   :  { %2646 = vadd.xlane.f32.xlu0 %v2645_v23 }
0x145f   :  { %v2648_v25 = vsel %vm238_vm3, %v2644_v32, 0.0 }
0x1460   :  { %2649 = vadd.xlane.f32.xlu1 %v2648_v25 }
0x14eb   :  { %v2647_v10 = vpop.xlane.xlu0 %2646 }
0x14ec   :  { %v2651_v7 = vmul.f32 0.03125, %v2647_v10 }
0x14ed   :  { %v2650_v26 = vpop.xlane.xlu1 %2649 }
0x14ee   :  { %v2653_v22 = vsub.f32 %v4310_v19, %v2651_v7  ;;  %v2652_v27 = vmul.f32 0.03125, %v2650_v26 }
0x14f0   :  { %v2654_v28 = vsub.f32 %v2644_v32, %v2652_v27  ;;  %v2655_v13 = vmul.f32 %v2653_v22, %v2653_v22 }
0x14f2   :  { %v2657_v16 = vsel %vm234_vm2, %v2655_v13, 0.0  ;;  %v2656_v24 = vmul.f32 %v2654_v28, %v2654_v28 }
0x14f3   :  { %2658 = vadd.xlane.f32.xlu0 %v2657_v16 }
0x14f4   :  { %v2660_v29 = vsel %vm238_vm3, %v2656_v24, 0.0 }
0x14f7   :  { %2661 = vadd.xlane.f32.xlu0 %v2660_v29 }
0x1580   :  { %v2659_v15 = vpop.xlane.xlu0 %2658 }
0x1581   :  { %v2663_v34 = vmul.f32 0.03125, %v2659_v15 }
0x1583   :  { %v2665_v35 = vadd.f32 1e-12, %v2663_v34 }
0x1584   :  { %v2662_v36 = vpop.xlane.xlu0 %2661 }
0x1585   :  { %3598 = vrsqrt.f32 %v2665_v35  ;;  %v2664_v39 = vmul.f32 0.03125, %v2662_v36  ;;  %v2872_v35 = vrot.slane %v2846_v30, %v3796_v62 }
0x1587   :  { %v2666_v20 = vadd.f32 1e-12, %v2664_v39 }
0x1589   :  { %3600 = vrsqrt.f32 %v2666_v20 }
0x158f   :  { %v3599_v40 = vpop.eup %3598 }
0x1590   :  { %v2669_v44 = vmul.f32 %v3599_v40, %v2653_v22 }
0x1592   :  { %v2675_v42 = vmul.f32 %v2674_v43, %v2669_v44 }
0x1593   :  { %v3601_v45 = vpop.eup %3600 }
0x1594   :  { %v2670_v46 = vmul.f32 %v3601_v45, %v2654_v28  ;;  %v2681_v51 = vadd.f32 %v2680_v49, %v2675_v42 }
0x1596   :  { %v2676_v50 = vmul.f32 %v2674_v43, %v2670_v46 }
0x1598   :  { %v2682_v58 = vadd.f32 %v2680_v49, %v2676_v50 }
0x159a   :  { %v2683_v52 = vpack.c.bf16 %v2682_v58, %v2681_v51 }
0x159c   :  { %3420 = vmatmul.mubr.msk.bf16.vlgmr.msra.gmra.mrb[80].mxu1 %vm234_vm2, %v2683_v52 }
0x159d   :  { %3439 = vmatprep.mubr.msk.bf16.mxu1 %vm3610_vm4, %v3609_v47  ;;  %3436 = vmatpush3.bf16.msra.mxu1 %v3516_v12 }
0x159e   :  { %3437 = vmatprep.subr.bf16.mxu1 %v3609_v47  ;;  %v3050_v47 = vld [vmem:[%s4394_s12] ss:$0 sm:$0xff] }
0x15a1   :  { %3438 = vmatpush3.bf16.msra.mxu1 %v3517_v48 }
0x166f   :  { %v2746_v60 = vpop.f32.mrb[80].mxu1 }
0x1670   :  { %v2747_v59 = vadd.f32 %v3033_v55, %v2746_v60  ;;  %v3421_v61 = vpop.f32.mrb[81].mxu1 }
0x1671   :  { %v2749_v63 = vpop.f32.mrb[82].mxu1 }
0x1672   :  { %v2755_v0 = vmul.f32 0.70710677, %v2747_v59  ;;  %v2750_v1 = vadd.f32 %v3033_v55, %v2749_v63  ;;  %v3422_v2 = vpop.f32.mrb[83].mxu1  ;;  %v2753_v9 = vmul.f32 0.5, %v2747_v59 }
0x1674   :  { %3602 = verf.f32 %v2755_v0  ;;  %v2756_v3 = vmul.f32 0.70710677, %v2750_v1  ;;  %v2754_v11 = vmul.f32 0.5, %v2750_v1 }
0x1676   :  { %3604 = verf.f32 %v2756_v3 }
0x167e   :  { %v3603_v6 = vpop.eup %3602 }
0x167f   :  { %v2759_v5 = vadd.f32 1.0, %v3603_v6 }
0x1680   :  { %v3605_v8 = vpop.eup %3604 }
0x1681   :  { %v2760_v17 = vadd.f32 1.0, %v3605_v8  ;;  %v2761_v18 = vmul.f32 %v2759_v5, %v2753_v9 }
0x1683   :  { %v2762_v14 = vmul.f32 %v2760_v17, %v2754_v11 }
0x1685   :  { %v2763_v38 = vpack.c.bf16 %v2762_v14, %v2761_v18 }
0x1687   :  { %3432 = vmatmul.mubr.msk.bf16.vlgmr.msra.gmra.mrb[76].mxu0 %vm1491_vm12, %v2763_v38 }
0x175a   :  { %v2834_v33 = vpop.f32.mrb[76].mxu0 }
0x175b   :  { %v2840_v21 = vadd.f32 %v2834_v33, %v4310_v19  ;;  %v3433_v23 = vpop.f32.mrb[77].mxu0 }
0x175c   :  { %v2837_v32 = vpop.f32.mrb[78].mxu0 }
0x175d   :  { %v2845_v25 = vadd.f32 %v2844_v4, %v2840_v21  ;;  %v3434_v10 = vpop.f32.mrb[79].mxu0 }
0x175f   :  { %v2848_v7 = vrot.slane %v2845_v25, 4 }
0x1761   :  { %v2850_v26 = vsel %vm221_vm0, %v2845_v25, %v2848_v7 }
0x1762   :  { %v2851_v22 = vsel %vm238_vm3, %v2850_v26, 0.0 }
0x1763   :  { %2852 = vadd.xlane.f32.xlu0 %v2851_v22 }
0x17f0   :  { %v2853_v27 = vpop.xlane.xlu0 %2852 }
0x17f1   :  { %v2854_v28 = vmul.f32 0.03125, %v2853_v27 }
0x17f3   :  { %v2855_v13 = vsub.f32 %v2850_v26, %v2854_v28 }
0x17f5   :  { %v2856_v16 = vmul.f32 %v2855_v13, %v2855_v13 }
0x17f7   :  { %v2857_v56 = vsel %vm238_vm3, %v2856_v16, 0.0 }
0x17f8   :  { %2858 = vadd.xlane.f32.xlu0 %v2857_v56 }
0x1885   :  { %v2859_v19 = vpop.xlane.xlu0 %2858 }
0x1886   :  { %v2860_v24 = vmul.f32 0.03125, %v2859_v19 }
0x1888   :  { %v2861_v29 = vadd.f32 1e-12, %v2860_v24 }
0x188a   :  { %3606 = vrsqrt.f32 %v2861_v29 }
0x1894   :  { %v3607_v15 = vpop.eup %3606 }
0x1895   :  { %v2863_v34 = vmul.f32 %v3607_v15, %v2855_v13 }
0x1897   :  { %v2868_v36 = vmul.f32 %v2867_v31, %v2863_v34 }
0x1899   :  { %v2873_v39 = vadd.f32 %v2872_v35, %v2868_v36 }
0x189b   :  { %v2874_v20 = vpack.c.bf16 %v2873_v39, %v2873_v39 }
0x189d   :  { %3440 = vmatmul.mubr.msk.bf16.vlgmr.msra.gmra.mrb[84].mxu1 %vm234_vm2, %v2874_v20 }
0x1970   :  { %v2935_v40 = vpop.f32.mrb[84].mxu1 }
0x1971   :  { %v2936_v43 = vadd.f32 %v3050_v47, %v2935_v40  ;;  %v3441_v44 = vpop.f32.mrb[85].mxu1 }
0x1972   :  { %v2938_v45 = vpop.f32.mrb[86].mxu1 }
0x1973   :  { %v2941_v42 = vsel %vm413_vm7, %v2936_v43, 0.0  ;;  %v3442_v57 = vpop.f32.mrb[87].mxu1 }
0x1974   :  { %2942 = vst [vmem:[%s4395_s13] sm:$0xff] %v2941_v42 }

</bundles_post_ra>
